<compile_context>
chip_gen: v7x
topology: tpu7x:2x2x1
jax: 0.10.0
libtpu: 0.0.40
codegen_flags: <defaults>
</compile_context>

<pallas_src>
import jax
import jax.numpy as jnp
from jax.experimental import pallas as pl
from jax.experimental.pallas import tpu as pltpu


def _interp_matrix(out_size, in_size, dtype=jnp.float32):
    """Linear-interpolation matrix M (out_size, in_size): y = M @ x.
    Matches PyTorch linear/bilinear with align_corners=False."""
    if in_size == 1:
        return jnp.ones((out_size, 1), dtype)
    i = jnp.arange(out_size, dtype=jnp.float32)
    scale = in_size / out_size
    src = jnp.maximum((i + 0.5) * scale - 0.5, 0.0)
    src = jnp.minimum(src, float(in_size - 1))
    i0 = jnp.floor(src).astype(jnp.int32)
    i1 = jnp.minimum(i0 + 1, in_size - 1)
    w1 = src - i0.astype(jnp.float32)
    w0 = 1.0 - w1
    m = (w0[:, None] * jax.nn.one_hot(i0, in_size, dtype=jnp.float32)
         + w1[:, None] * jax.nn.one_hot(i1, in_size, dtype=jnp.float32))
    return m.astype(dtype)


def _bcast_add_kernel(up_ref, t_ref, o_ref):
    # up_ref: (1, tile_l) f32; t_ref/o_ref: (tile_r, tile_l) target dtype.
    # Add in f32 (required on v5e which lacks bf16 VPU), cast once on store.
    o_ref[...] = (t_ref[...].astype(jnp.float32) + up_ref[...]).astype(o_ref.dtype)


def _round_down(v, align):
    return (v // align) * align


def _block_budget_bytes():
    """~4 MiB block everywhere; ~8 MiB when physical VMEM is large (v5e/v6e)."""
    try:
        info = pltpu.get_tpu_info()
        vmem = getattr(info, "vmem_capacity_bytes", None)
        if vmem is not None and vmem >= 100 * 1024 * 1024:
            return 8 * 1024 * 1024
    except Exception:
        pass
    return 4 * 1024 * 1024


def _choose_tiles(R, L, dtype_bytes, budget):
    """Pick (tile_r, tile_l): widen lanes first, then rows, within `budget` bytes.
    Caller guarantees L >= 128."""
    rows_min = min(R, 8)
    if L * dtype_bytes * rows_min <= budget:
        tile_l = L
    else:
        tile_l = max(128, _round_down(budget // (rows_min * dtype_bytes), 128))
    rows_fit = max(budget // (tile_l * dtype_bytes), 1)
    if R <= rows_fit:
        tile_r = R                       # full dim (legal even if not mult of 8)
    else:
        tile_r = max(8, _round_down(rows_fit, 8))

    # Guarantee >= 2 blocks total so both v7x TensorCores get work.
    if pl.cdiv(R, tile_r) * pl.cdiv(L, tile_l) < 2:
        if L >= 256:
            tile_l = max(128, _round_down(pl.cdiv(L, 2), 128))
        elif R >= 16:
            tile_r = max(8, _round_down(pl.cdiv(R, 2), 8))
    return tile_r, tile_l


def upsample_linear_add(x, target):
    """x: (1, 1, H_in, W_in); target: (N, C, H_out, W_out)."""
    assert x.shape[0] == 1 and x.shape[1] == 1, "broadcast add requires x N=C=1"
    H_in, W_in = int(x.shape[2]), int(x.shape[3])
    N, C, H_out, W_out = (int(d) for d in target.shape)

    # --- Precompute the tiny upsample in the wrapper (hoisted out of the grid).
    wh = _interp_matrix(H_out, H_in)                 # (H_out, H_in)
    wwT = _interp_matrix(W_out, W_in).T              # (W_in, W_out) — pre-transposed
    x2d = x[0, 0].astype(jnp.float32)                # (H_in, W_in)
    up = jnp.dot(jnp.dot(wh, x2d), wwT)              # (H_out, W_out) f32

    R = N * C
    L = H_out * W_out
    dtype_bytes = jnp.dtype(target.dtype).itemsize
    total_bytes = R * L * dtype_bytes

    # --- Small-problem / narrow-lane / non-float fallback: fused XLA add wins.
    if (total_bytes < (1 << 20)) or (L < 128) or \
            not jnp.issubdtype(target.dtype, jnp.floating):
        res = up[None, None, :, :] + target.astype(jnp.float32)
        return res.astype(target.dtype)

    # --- Lane-dense flattening: rows = broadcast dims, lanes = spatial.
    t2 = target.reshape(R, L)
    up2 = up.reshape(1, L)

    budget = _block_budget_bytes()
    tile_r, tile_l = _choose_tiles(R, L, dtype_bytes, budget)
    grid = (pl.cdiv(R, tile_r), pl.cdiv(L, tile_l))

    # VMEM actually needed: 2x target-in + 2x out (double buffered) + up tiles.
    block_bytes = tile_r * tile_l * dtype_bytes
    need = 4 * block_bytes + 2 * tile_l * 4 + (1 << 20)   # +1 MiB Mosaic scratch margin
    vmem_limit = int(min(max(need, 4 << 20), 48 << 20))

    cost = pl.CostEstimate(
        flops=R * L,
        transcendentals=0,
        bytes_accessed=2 * R * L * dtype_bytes + L * 4,
    )

    out2 = pl.pallas_call(
        _bcast_add_kernel,
        out_shape=jax.ShapeDtypeStruct((R, L), target.dtype),
        grid=grid,
        in_specs=[
            pl.BlockSpec((1, tile_l), lambda i, j: (0, j)),        # up (broadcast rows)
            pl.BlockSpec((tile_r, tile_l), lambda i, j: (i, j)),   # target
        ],
        out_specs=pl.BlockSpec((tile_r, tile_l), lambda i, j: (i, j)),
        compiler_params=pltpu.CompilerParams(
            dimension_semantics=("parallel", "parallel"),
            vmem_limit_bytes=vmem_limit),
        cost_estimate=cost,
    )(up2, t2)

    return out2.reshape(N, C, H_out, W_out)


if __name__ == "__main__":
    key = jax.random.PRNGKey(0)
    kx, kt, kx2, kt2, kx3, kt3 = jax.random.split(key, 6)

    # 1) Module's actual shapes: x = (1,1,2,2), target = (2,4,2,2).
    #    Same spatial size + align_corners=False -> resize is identity -> x + target.
    x = jax.random.normal(kx, (1, 1, 2, 2), dtype=jnp.float32)
    target = jax.random.normal(kt, (2, 4, 2, 2), dtype=jnp.float32)
    out = jax.block_until_ready(upsample_linear_add(x, target))
    ref = x[0, 0][None, None, :, :] + target
    assert out.shape == (2, 4, 2, 2)
    assert jnp.allclose(out, ref, atol=1e-5), "mismatch vs reference (identity resize)"

    # 2) Small case with an actual resize (1,1,4,4) -> (2,4,16,16).
    x2 = jax.random.normal(kx2, (1, 1, 4, 4), dtype=jnp.float32)
    target2 = jax.random.normal(kt2, (2, 4, 16, 16), dtype=jnp.float32)
    out2 = jax.block_until_ready(upsample_linear_add(x2, target2))
    up_ref2 = _interp_matrix(16, 4) @ x2[0, 0] @ _interp_matrix(16, 4).T
    ref2 = up_ref2[None, None, :, :] + target2
    assert out2.shape == (2, 4, 16, 16)
    assert jnp.allclose(out2, ref2, atol=1e-5), "mismatch vs reference (4->16 resize)"

    # 3) Large-enough case to exercise the Pallas path (>= 1 MiB, wide lanes).
    x3 = jax.random.normal(kx3, (1, 1, 8, 8), dtype=jnp.float32)
    target3 = jax.random.normal(kt3, (4, 8, 64, 512), dtype=jnp.float32)
    out3 = jax.block_until_ready(upsample_linear_add(x3, target3))
    up_ref3 = _interp_matrix(64, 8) @ x3[0, 0] @ _interp_matrix(512, 8).T
    ref3 = up_ref3[None, None, :, :] + target3
    assert out3.shape == (4, 8, 64, 512)
    assert jnp.allclose(out3, ref3, atol=1e-5), "mismatch vs reference (8->64/512 resize)"

    print("KERNEL_OK")
</pallas_src>

<mosaic_0001>
module attributes {stable_mosaic.version = 11 : i64} {
  func.func @_bcast_add_kernel(%arg0: i32, %arg1: i32, %arg2: memref<1x16384xf32, #tpu.memory_space<vmem>>, %arg3: memref<32x16384xf32, #tpu.memory_space<vmem>>, %arg4: memref<32x16384xf32, #tpu.memory_space<vmem>>) attributes {dimension_semantics = [#tpu.dimension_semantics<parallel>, #tpu.dimension_semantics<parallel>], iteration_bounds = array<i64: 1, 2>, scalar_prefetch = 0 : i64, scratch_operands = 0 : i64, tpu.core_type = #tpu.core_type<tc>, window_params = [{transform_indices = @transform_0, window_bounds = array<i64: 1, 16384>}, {transform_indices = @transform_1, window_bounds = array<i64: 32, 16384>}, {transform_indices = @transform_2, window_bounds = array<i64: 32, 16384>}]} {
    %c0 = arith.constant 0 : index
    %c0_0 = arith.constant 0 : index
    %0 = vector.load %arg3[%c0, %c0_0] : memref<32x16384xf32, #tpu.memory_space<vmem>>, vector<32x16384xf32>
    %c0_1 = arith.constant 0 : index
    %c0_2 = arith.constant 0 : index
    %1 = vector.load %arg2[%c0_1, %c0_2] : memref<1x16384xf32, #tpu.memory_space<vmem>>, vector<1x16384xf32>
    %2 = vector.broadcast %1 : vector<1x16384xf32> to vector<32x16384xf32>
    %3 = arith.addf %0, %2 : vector<32x16384xf32>
    %c0_3 = arith.constant 0 : index
    %c0_4 = arith.constant 0 : index
    %4 = vector.load %arg4[%c0_3, %c0_4] : memref<32x16384xf32, #tpu.memory_space<vmem>>, vector<32x16384xf32>
    tpu.vector_store %arg4[%c0_3, %c0_4], %3 {strides = array<i32>} : memref<32x16384xf32, #tpu.memory_space<vmem>>, vector<32x16384xf32>,
    return
  }
  func.func @transform_0(%arg0: i32, %arg1: i32) -> (i32, i32) {
    %c0_i32 = arith.constant 0 : i32
    %c0_i32_0 = arith.constant 0 : i32
    return %c0_i32, %arg1 : i32, i32
  }
  func.func @transform_1(%arg0: i32, %arg1: i32) -> (i32, i32) {
    %c0_i32 = arith.constant 0 : i32
    return %arg0, %arg1 : i32, i32
  }
  func.func @transform_2(%arg0: i32, %arg1: i32) -> (i32, i32) {
    %c0_i32 = arith.constant 0 : i32
    return %arg0, %arg1 : i32, i32
  }
}

</mosaic_0001>

<bundles_post_ra>
// kernel: tpu_custom_call.1
= control target key start
LH: loop header
LB: loop body
LE: loop exit
PB: predicated region body
PF: predicated region fallthrough
CT: control target
= control target key end

     0   :  { %7 = vsyncpa [#allocation3], 0  ;;  %s5014_s0 = inlined_call_operand.hbm [shape: f32[1,32768], index: 0, kind: input, shape index: {}]   ;;  %s5015_s1 = inlined_call_operand.hbm [shape: f32[32,32768], index: 1, kind: input, shape index: {}]   ;;  %s5016_s2 = inlined_call_operand.hbm [shape: f32[32,32768], index: 2, kind: output, shape index: {}]  }
   0x1   :  { %9 = vsyncpa [#allocation3 + $0x1], 0 }
   0x2   :  { %10 = vsyncpa [#allocation6], 0 }
   0x3   :  { %12 = vsyncpa [#allocation6 + $0x1], 0 }
   0x4   :  { %13 = vsyncpa [#allocation4], 0 }
   0x5   :  { %15 = vsyncpa [#allocation4 + $0x1], 0  ;;  %s2826_s9 = smov 0   ;;  %s2828_s10 = smov 0  }
   0x6   :  { %s2830_s11 = smov 0   ;;  %s2832_s12 = smov 0  }
   0x7   :  { %s2834_s13 = smov 0   ;;  %s2836_s14 = smov 0  }
   0x8 LB: > { %s2559_s15 = sadd.s32 4294967295, %s2800_s14   ;;  %s2560_s16 = sadd.s32 4294967294, %s2800_s14   ;;  %s2800_s14 = sphi %s2836_s14, %s21_s14   ;;  %s2796_s13 = sphi %s2834_s13, %s5622_s13   ;;  %s2792_s12 = sphi %s2832_s12, %s5621_s12   ;;  %s2788_s11 = sphi %s2830_s11, %s5620_s11   ;;  %s2784_s10 = sphi %s2828_s10, %s5619_s10   ;;  %s2780_s9 = sphi %s2826_s9, %s5618_s9  }
   0x9   : > { %s30_s17 = sadd.s32 1, %s2796_s13  ;;  %s40_s18 = sadd.s32 1, %s2788_s11 }
   0xa   : > { %p31_p0 = scmp.ge.s32.totalorder %s30_s17, 2  ;;  %p47_p1 = scmp.ne.s32.totalorder %s2788_s11, %s2784_s10 }
   0xb   : > { %p48_p2 = scmp.eq.s32.totalorder %s2800_s14, 0  ;;  %p53_p3 = scmp.ne.s32.totalorder %s2784_s10, %s2780_s9 }
   0xc   : > { %s5624_s17 = smov (%p31_p0, %s30_s17), 0  ;;  %p54_p5 = scmp.eq.s32.totalorder %s2559_s15, 0 }
   0xd   : > { %p2867_p4 = por %p48_p2, %p47_p1  ;;  %s37_s20 = ssub.s32 %s2796_s13, %s5624_s17 }
   0xe   : > { %p107_p6 = scmp.eq.s32.totalorder %s2559_s15, 1  ;;  %p38_p7 = scmp.eq.s32.totalorder %s37_s20, 0 }
   0xf   : > { %p2873_p8 = por %p54_p5, %p53_p3  ;;  %p113_p10 = scmp.eq.s32.totalorder %s2560_s16, 1 }
  0x10   : > { %p2877_p9 = por %p107_p6, %p47_p1  ;;  %p2598_p13 = scmp.lt.s32.totalorder %s2800_s14, 2 }
  0x11   : > { %s5230_s21 = scalar_select %p2873_p8, 1, 0 }
  0x12   : > { %s5231_s22 = scalar_select %p2877_p9, 1, 0 }
  0x13   : > { %s2882_s23 = scalar_select %p38_p7, %s2788_s11, %s40_s18  }
  0x14   : > { %p2884_p11 = por %p113_p10, %p53_p3  ;;  %s2891_s25 = sand.u32 1, %s2788_s11  }
  0x15   : > { %s2563_s26 = sshll.u32 %s2891_s25, 7  ;;  %s2578_s27 = sshll.u32 %s2796_s13, 11 }
  0x16   : > { %s5232_s24 = scalar_select %p2884_p11, 1, 0 }
  0x17   : > { %s2898_s30 = scalar_lea.hbm %s5014_s0, %s2578_s27  ;;  %s137_s3 = scalar_lea.vmem [#allocation2], %s2563_s26 }
  0x18   : > { %s145_s4 = sshll.u32 %s137_s3, 4  ;;  %p2904_p0 = pnand %p2598_p13, %p2867_p4  ;;  %s2900_s4 = int_to_ptr.vmem [resolvable:$true] %s145_s4 }
  0x19   : > { %s2566_s6 = sshll.u32 %s2891_s25, 12  ;;  %s134_s7 = scalar_lea.sflag [#allocation3], %s2891_s25 }
  0x1a   : > { %s2654_s8 = scalar_lea.hbm %s2898_s30, 2048  ;;  %p2656_p2 = pneg %p2904_p0 }
  0x1b   : > { %p2655_p1 = scmp.ne.s32.totalorder %s2898_s30, %s2654_s8  ;;  %s2659_s18 = scalar_lea.hbm %s5014_s0, 4096 }
  0x1c   : > { %p2660_p4 = scmp.lt.u32.totalorder %s2898_s30, %s5014_s0  ;;  %p2661_p6 = scmp.lt.u32.totalorder %s2659_s18, %s2654_s8 }
  0x1d   : > { %p2657_p3 = pnand %p2656_p2, %p2655_p1  ;;  %p2663_p10 = scmp.lt.u32.totalorder %s2654_s8, %s2898_s30 }
  0x1e   : > { %p2662_p7 = por %p2661_p6, %p2660_p4 }
  0x1f   : > { %p2658_p5 = pneg %p2657_p3 }
  0x20   : > { %p2664_p13 = por %p2663_p10, %p2662_p7 }
  0x22   : > { %p2665_p12 = pnand %p2664_p13, %p2658_p5 }
  0x24   : > { %2668 = shalt.err (!%p2665_p12)
}
  0x25   : > { %s2669_s26 = scalar_lea.vmem %s2900_s4, 2048  ;;  %s2802_s27 = smov [#allocation2]  }
  0x26   : > { %p2670_p1 = scmp.ne.s32.totalorder %s2900_s4, %s2669_s26  ;;  %s2674_s28 = sshll.u32 %s2802_s27, 4  ;;  %s2675_s28 = int_to_ptr.vmem [resolvable:$false] %s2674_s28 }
  0x27   : > { %s2676_s29 = scalar_lea.vmem %s2675_s28, 4096  ;;  %p2677_p9 = scmp.lt.s32.totalorder %s2900_s4, %s2675_s28 }
  0x28   : > { %p2672_p3 = pnand %p2670_p1, %p2656_p2  ;;  %p2678_p4 = scmp.lt.s32.totalorder %s2676_s29, %s2669_s26 }
  0x2a   : > { %p2673_p11 = pneg %p2672_p3  ;;  %p2679_p6 = por %p2678_p4, %p2677_p9 }
  0x2c   : > { %p2680_p7 = pnand %p2679_p6, %p2673_p11 }
  0x2e   : > { %2683 = shalt.err (!%p2680_p7)
}
  0x2f   : > { %2590 = dma.hbm_to_vmem [thread:$0]  (!%p2904_p0), %s2898_s30, 2048, %s2900_s4, %s134_s7  }
  0x30   : > { %s2579_s3 = sshll.u32 %s2796_s13, 14  ;;  %p2569_p12 = scmp.ge.s32.totalorder %s2800_s14, 1 }
  0x31   : > { %p174_p5 = scmp.lt.s32.totalorder %s2800_s14, 3  ;;  %s2941_s16 = scalar_lea.hbm %s5015_s1, %s2579_s3 }
  0x32   : > { %s156_s18 = scalar_lea.vmem [#allocation5], %s2566_s6  ;;  %s153_s30 = scalar_lea.sflag [#allocation6], %s2891_s25 }
  0x33   : > { %s166_s19 = sshll.u32 %s156_s18, 4  ;;  %p2945_p9 = pnand %p2569_p12, %p174_p5  ;;  %s2949_s19 = int_to_ptr.vmem [resolvable:$true] %s166_s19 }
  0x34   : > { %s2684_s4 = scalar_lea.hbm %s2941_s16, 65536  ;;  %s2689_s27 = scalar_lea.hbm %s5015_s1, 131072 }
  0x35   : > { %p2685_p11 = scmp.ne.s32.totalorder %s2941_s16, %s2684_s4  ;;  %p2690_p1 = scmp.lt.u32.totalorder %s2941_s16, %s5015_s1 }
  0x36   : > { %p2691_p3 = scmp.lt.u32.totalorder %s2689_s27, %s2684_s4  ;;  %p2693_p6 = scmp.lt.u32.totalorder %s2684_s4, %s2941_s16 }
  0x37   : > { %p2687_p10 = pnand %p2685_p11, %p2656_p2 }
  0x38   : > { %p2692_p4 = por %p2691_p3, %p2690_p1 }
  0x39   : > { %p2688_p13 = pneg %p2687_p10 }
  0x3a   : > { %p2694_p7 = por %p2693_p6, %p2692_p4 }
  0x3c   : > { %p2695_p12 = pnand %p2694_p7, %p2688_p13 }
  0x3e   : > { %2698 = shalt.err (!%p2695_p12)
}
  0x3f   : > { %s2699_s29 = scalar_lea.vmem %s2949_s19, 65536  ;;  %s2803_s3 = smov [#allocation5]  }
  0x40   : > { %p2700_p5 = scmp.ne.s32.totalorder %s2949_s19, %s2699_s29  ;;  %s2704_s8 = sshll.u32 %s2803_s3, 4  ;;  %s2705_s8 = int_to_ptr.vmem [resolvable:$false] %s2704_s8 }
  0x41   : > { %s2706_s15 = scalar_lea.vmem %s2705_s8, 131072  ;;  %p2707_p8 = scmp.lt.s32.totalorder %s2949_s19, %s2705_s8 }
  0x42   : > { %p2702_p11 = pnand %p2700_p5, %p2656_p2  ;;  %p2708_p1 = scmp.lt.s32.totalorder %s2706_s15, %s2699_s29 }
  0x44   : > { %p2703_p10 = pneg %p2702_p11  ;;  %p2709_p3 = por %p2708_p1, %p2707_p8 }
  0x46   : > { %p2710_p4 = pnand %p2709_p3, %p2703_p10 }
  0x48   : > { %2713 = shalt.err (!%p2710_p4)
}
  0x49   : > { %s2804_s18 = smov 32768   ;;  %s2805_s4 = smov 16384  }
  0x4a   : > { %s2806_s7 = smov 1024   ;;  %178 = sbr.rel (%p2945_p9) target bundleno = 485 (0x1e5), region = 28 }
  0x4b   : > { %2593 = dma.hbm_to_vmem [thread:$0]  (!%p2904_p0), %s2941_s16, 65536, %s2949_s19, %s153_s30, %s2804_s18, %s2805_s4, %s2806_s7  }
  0x51   : > { %s2980_s26 = sand.u32 1, %s2784_s10   ;;  %p5235_p8 = scmp.ne.s32.totalorder %s5230_s21, 0 }
  0x52   : > { %s2570_s27 = sshll.u32 %s2980_s26, 7  ;;  %s181_s28 = scalar_lea.sflag [#allocation3], %s2980_s26 }
  0x53   : > { %s2984_s6 = scalar_lea.vmem [#allocation2], %s2570_s27 }
  0x54   : > { %2767 = dma.done.wait (%p5235_p8), %s181_s28, 2048  }
  0x55   : > { %2769 = vsyncadd (%p5235_p8), %s181_s28, 4294965248  ;;  %s2571_s25 = sshll.u32 %s2980_s26, 12  ;;  %s190_s5 = scalar_lea.sflag [#allocation6], %s2980_s26 }
  0x56   : > { %s2994_s16 = scalar_lea.vmem [#allocation5], %s2571_s25 }
  0x57   : > { %2771 = dma.done.wait (%p5235_p8), %s190_s5, 65536  }
  0x58   : > { %2773 = vsyncadd (%p5235_p8), %s190_s5, 4294901760  ;;  %v768_v0 = vlaneseq  ;;  %v224_v10 = vld [vmem:[%s2994_s16] sm:$0xff]  ;;  %v225_v12 = vld [vmem:[%s2994_s16 + $0x8] sm:$0xff]  ;;  %s3065_s21 = scalar_lea.vmem [#allocation7], %s2571_s25  ;;  %s2580_s19 = sshll.u32 %s2792_s12, 14 }
  0x59   : > { %v736_v11 = vld [vmem:[%s2984_s6] sm:$0xff]  ;;  %v226_v15 = vld [vmem:[%s2994_s16 + $0x10] sm:$0xff]  ;;  %v227_v17 = vld [vmem:[%s2994_s16 + $0x18] sm:$0xff]  ;;  %s2449_s20 = sshll.u32 %s3065_s21, 4  ;;  %s4942_s3 = scalar_lea.hbm %s5016_s2, %s2580_s19  ;;  %s4953_s20 = int_to_ptr.vmem [resolvable:$true] %s2449_s20 }
  0x5a   : > { %v769_v1 = vshrl.u32 %v768_v0, 7  ;;  %v228_v19 = vld [vmem:[%s2994_s16 + $0x20] sm:$0xff]  ;;  %v229_v21 = vld [vmem:[%s2994_s16 + $0x28] sm:$0xff]  ;;  %v230_v23 = vld [vmem:[%s2994_s16 + $0x30] sm:$0xff]  ;;  %s2433_s12 = scalar_lea.sflag [#allocation4], %s2980_s26  ;;  %s2714_s8 = scalar_lea.vmem %s4953_s20, 65536 }
  0x5b   : > { %v231_v25 = vld [vmem:[%s2994_s16 + $0x38] sm:$0xff]  ;;  %v232_v31 = vld [vmem:[%s2994_s16 + $0x40] sm:$0xff]  ;;  %v737_v32 = vld [vmem:[%s2984_s6 + $0x8] sm:$0xff]  ;;  %p2715_p0 = scmp.ne.s32.totalorder %s4953_s20, %s2714_s8  ;;  %p5615_p2 = scmp.ne.s32.totalorder %s5231_s22, 0 }
  0x5c   : > { %v3000_v2 = vsub.s32 0, %v769_v1  ;;  %v3002_v3 = vsub.s32 1, %v769_v1  ;;  %v3004_v4 = vsub.s32 2, %v769_v1  ;;  %v3006_v5 = vsub.s32 3, %v769_v1  ;;  %v233_v33 = vld [vmem:[%s2994_s16 + $0x48] sm:$0xff]  ;;  %v234_v38 = vld [vmem:[%s2994_s16 + $0x50] sm:$0xff] }
  0x5d   : > { %v3008_v6 = vsub.s32 4, %v769_v1  ;;  %v3010_v7 = vsub.s32 5, %v769_v1  ;;  %v3012_v8 = vsub.s32 6, %v769_v1  ;;  %v3014_v9 = vsub.s32 7, %v769_v1  ;;  %v235_v39 = vld [vmem:[%s2994_s16 + $0x58] sm:$0xff]  ;;  %v236_v40 = vld [vmem:[%s2994_s16 + $0x60] sm:$0xff]  ;;  %p2716_p9 = pnand %p2715_p0, %p5615_p2 }
  0x5e   : > { %v3020_v13 = vrot.slane %v736_v11, %v3000_v2  ;;  %v3023_v14 = vrot.slane %v736_v11, %v3002_v3  ;;  %v3027_v16 = vrot.slane %v736_v11, %v3004_v4  ;;  %v3031_v18 = vrot.slane %v736_v11, %v3006_v5  ;;  %v237_v45 = vld [vmem:[%s2994_s16 + $0x68] sm:$0xff]  ;;  %v238_v46 = vld [vmem:[%s2994_s16 + $0x70] sm:$0xff]  ;;  %v239_v47 = vld [vmem:[%s2994_s16 + $0x78] sm:$0xff]  ;;  %s2807_s15 = smov [#allocation7]  }
  0x5f   : > { %v3035_v20 = vrot.slane %v736_v11, %v3008_v6  ;;  %v3039_v22 = vrot.slane %v736_v11, %v3010_v7  ;;  %v3043_v24 = vrot.slane %v736_v11, %v3012_v8  ;;  %v3047_v26 = vrot.slane %v736_v11, %v3014_v9  ;;  %v738_v52 = vld [vmem:[%s2984_s6 + $0x10] sm:$0xff]  ;;  %v240_v57 = vld [vmem:[%s2994_s16 + $0x80] sm:$0xff]  ;;  %v241_v58 = vld [vmem:[%s2994_s16 + $0x88] sm:$0xff]  ;;  %p2717_p13 = pneg %p2716_p9  ;;  %s2718_s18 = sshll.u32 %s2807_s15, 4  ;;  %s2719_s18 = int_to_ptr.vmem [resolvable:$false] %s2718_s18 }
  0x60   : > { %v1408_v27 = vadd.f32 %v3020_v13, %v224_v10  ;;  %v1409_v28 = vadd.f32 %v3023_v14, %v225_v12  ;;  %v1410_v29 = vadd.f32 %v3027_v16, %v226_v15  ;;  %v1411_v30 = vadd.f32 %v3031_v18, %v227_v17  ;;  %v242_v63 = vld [vmem:[%s2994_s16 + $0x90] sm:$0xff]  ;;  %v243_v0 = vld [vmem:[%s2994_s16 + $0x98] sm:$0xff]  ;;  %v244_v1 = vld [vmem:[%s2994_s16 + $0xa0] sm:$0xff]  ;;  %s2720_s4 = scalar_lea.vmem %s2719_s18, 131072  ;;  %p2721_p6 = scmp.lt.s32.totalorder %s4953_s20, %s2719_s18 }
  0x61   : > { %v1412_v34 = vadd.f32 %v3035_v20, %v228_v19  ;;  %v1413_v35 = vadd.f32 %v3039_v22, %v229_v21  ;;  %v1414_v36 = vadd.f32 %v3043_v24, %v230_v23  ;;  %v1415_v37 = vadd.f32 %v3047_v26, %v231_v25  ;;  %v245_v17 = vld [vmem:[%s2994_s16 + $0xa8] sm:$0xff]  ;;  %v246_v19 = vld [vmem:[%s2994_s16 + $0xb0] sm:$0xff]  ;;  %v247_v21 = vld [vmem:[%s2994_s16 + $0xb8] sm:$0xff]  ;;  %p2722_p7 = scmp.lt.s32.totalorder %s2720_s4, %s2714_s8 }
  0x62   : > { %1920 = vst [vmem:[%s3065_s21] sm:$0xff] %v1408_v27  ;;  %1921 = vst [vmem:[%s3065_s21 + $0x8] sm:$0xff] %v1409_v28  ;;  %v3072_v41 = vrot.slane %v737_v32, %v3000_v2  ;;  %v3075_v42 = vrot.slane %v737_v32, %v3002_v3  ;;  %v3078_v43 = vrot.slane %v737_v32, %v3004_v4 }
  0x63   : > { %1922 = vst [vmem:[%s3065_s21 + $0x10] sm:$0xff] %v1410_v29  ;;  %1923 = vst [vmem:[%s3065_s21 + $0x18] sm:$0xff] %v1411_v30  ;;  %v3081_v44 = vrot.slane %v737_v32, %v3006_v5  ;;  %v3091_v48 = vrot.slane %v737_v32, %v3008_v6  ;;  %v3094_v49 = vrot.slane %v737_v32, %v3010_v7  ;;  %v739_v29 = vld [vmem:[%s2984_s6 + $0x18] sm:$0xff]  ;;  %p2723_p12 = por %p2722_p7, %p2721_p6 }
  0x64   : > { %1924 = vst [vmem:[%s3065_s21 + $0x20] sm:$0xff] %v1412_v34  ;;  %1925 = vst [vmem:[%s3065_s21 + $0x28] sm:$0xff] %v1413_v35  ;;  %v3097_v50 = vrot.slane %v737_v32, %v3012_v8  ;;  %v3100_v51 = vrot.slane %v737_v32, %v3014_v9  ;;  %v1416_v53 = vadd.f32 %v3072_v41, %v232_v31  ;;  %v248_v34 = vld [vmem:[%s2994_s16 + $0xc0] sm:$0xff]  ;;  %v249_v35 = vld [vmem:[%s2994_s16 + $0xc8] sm:$0xff] }
  0x65   : > { %1926 = vst [vmem:[%s3065_s21 + $0x30] sm:$0xff] %v1414_v36  ;;  %1927 = vst [vmem:[%s3065_s21 + $0x38] sm:$0xff] %v1415_v37  ;;  %v1417_v54 = vadd.f32 %v3075_v42, %v233_v33  ;;  %v1418_v55 = vadd.f32 %v3078_v43, %v234_v38  ;;  %v1419_v56 = vadd.f32 %v3081_v44, %v235_v39  ;;  %p2724_p5 = pnand %p2723_p12, %p2717_p13 }
  0x66   : > { %v1420_v59 = vadd.f32 %v3091_v48, %v236_v40  ;;  %v1421_v60 = vadd.f32 %v3094_v49, %v237_v45  ;;  %v1422_v61 = vadd.f32 %v3097_v50, %v238_v46  ;;  %v1423_v62 = vadd.f32 %v3100_v51, %v239_v47  ;;  %1928 = vst [vmem:[%s3065_s21 + $0x40] sm:$0xff] %v1416_v53  ;;  %v250_v40 = vld [vmem:[%s2994_s16 + $0xd0] sm:$0xff]  ;;  %v251_v45 = vld [vmem:[%s2994_s16 + $0xd8] sm:$0xff]  ;;  %v252_v46 = vld [vmem:[%s2994_s16 + $0xe0] sm:$0xff] }
  0x67   : > { %1929 = vst [vmem:[%s3065_s21 + $0x48] sm:$0xff] %v1417_v54  ;;  %1930 = vst [vmem:[%s3065_s21 + $0x50] sm:$0xff] %v1418_v55  ;;  %v3121_v10 = vrot.slane %v738_v52, %v3000_v2  ;;  %v3124_v11 = vrot.slane %v738_v52, %v3002_v3  ;;  %v3127_v12 = vrot.slane %v738_v52, %v3004_v4  ;;  %v253_v55 = vld [vmem:[%s2994_s16 + $0xe8] sm:$0xff] }
  0x68   : > { %1931 = vst [vmem:[%s3065_s21 + $0x58] sm:$0xff] %v1419_v56  ;;  %v3130_v15 = vrot.slane %v738_v52, %v3006_v5  ;;  %1932 = vst [vmem:[%s3065_s21 + $0x60] sm:$0xff] %v1420_v59  ;;  %v3140_v23 = vrot.slane %v738_v52, %v3008_v6  ;;  %v3143_v25 = vrot.slane %v738_v52, %v3010_v7  ;;  %v254_v56 = vld [vmem:[%s2994_s16 + $0xf0] sm:$0xff] }
  0x69   : > { %1933 = vst [vmem:[%s3065_s21 + $0x68] sm:$0xff] %v1421_v60  ;;  %1934 = vst [vmem:[%s3065_s21 + $0x70] sm:$0xff] %v1422_v61  ;;  %v3146_v27 = vrot.slane %v738_v52, %v3012_v8  ;;  %v3149_v28 = vrot.slane %v738_v52, %v3014_v9  ;;  %v1424_v30 = vadd.f32 %v3121_v10, %v240_v57  ;;  %v255_v57 = vld [vmem:[%s2994_s16 + $0xf8] sm:$0xff] }
  0x6a   : > { %1935 = vst [vmem:[%s3065_s21 + $0x78] sm:$0xff] %v1423_v62  ;;  %5236 = vst [vmem:[#allocation11_spill] sm:$0xff] %v3143_v25  ;;  %v1425_v31 = vadd.f32 %v3124_v11, %v241_v58  ;;  %v1426_v32 = vadd.f32 %v3127_v12, %v242_v63  ;;  %v1427_v33 = vadd.f32 %v3130_v15, %v243_v0  ;;  %v740_v62 = vld [vmem:[%s2984_s6 + $0x20] sm:$0xff] }
  0x6b   : > { %5237 = vst [vmem:[#allocation12_spill] sm:$0xff] %v3146_v27  ;;  %5238 = vst [vmem:[#allocation13_spill] sm:$0xff] %v3149_v28  ;;  %v1428_v36 = vadd.f32 %v3140_v23, %v244_v1  ;;  %v1429_v37 = vadd.f32 %v3143_v25, %v245_v17  ;;  %v1430_v38 = vadd.f32 %v3146_v27, %v246_v19  ;;  %v256_v19 = vld [vmem:[%s2994_s16 + $0x100] sm:$0xff] }
  0x6c   : > { %v1431_v39 = vadd.f32 %v3149_v28, %v247_v21  ;;  %1936 = vst [vmem:[%s3065_s21 + $0x80] sm:$0xff] %v1424_v30  ;;  %1937 = vst [vmem:[%s3065_s21 + $0x88] sm:$0xff] %v1425_v31  ;;  %v3170_v47 = vrot.slane %v739_v29, %v3000_v2  ;;  %v3173_v52 = vrot.slane %v739_v29, %v3002_v3  ;;  %v257_v21 = vld [vmem:[%s2994_s16 + $0x108] sm:$0xff] }
  0x6d   : > { %1938 = vst [vmem:[%s3065_s21 + $0x90] sm:$0xff] %v1426_v32  ;;  %1939 = vst [vmem:[%s3065_s21 + $0x98] sm:$0xff] %v1427_v33  ;;  %v3176_v53 = vrot.slane %v739_v29, %v3004_v4  ;;  %v3179_v54 = vrot.slane %v739_v29, %v3006_v5  ;;  %v3189_v58 = vrot.slane %v739_v29, %v3008_v6  ;;  %v258_v33 = vld [vmem:[%s2994_s16 + $0x110] sm:$0xff] }
  0x6e   : > { %5239 = vst [vmem:[#allocation14_spill] sm:$0xff] %v3170_v47  ;;  %5240 = vst [vmem:[#allocation15_spill] sm:$0xff] %v3173_v52  ;;  %v3192_v59 = vrot.slane %v739_v29, %v3010_v7  ;;  %v3195_v60 = vrot.slane %v739_v29, %v3012_v8  ;;  %v3198_v61 = vrot.slane %v739_v29, %v3014_v9 }
  0x6f   : > { %5241 = vst [vmem:[#allocation16_spill] sm:$0xff] %v3176_v53  ;;  %5242 = vst [vmem:[#allocation17_spill] sm:$0xff] %v3179_v54  ;;  %v1432_v63 = vadd.f32 %v3170_v47, %v248_v34  ;;  %v1433_v0 = vadd.f32 %v3173_v52, %v249_v35  ;;  %v1434_v1 = vadd.f32 %v3176_v53, %v250_v40  ;;  %v259_v34 = vld [vmem:[%s2994_s16 + $0x118] sm:$0xff]  ;;  %v260_v35 = vld [vmem:[%s2994_s16 + $0x120] sm:$0xff] }
  0x70   : > { %1940 = vst [vmem:[%s3065_s21 + $0xa0] sm:$0xff] %v1428_v36  ;;  %1941 = vst [vmem:[%s3065_s21 + $0xa8] sm:$0xff] %v1429_v37  ;;  %v1435_v17 = vadd.f32 %v3179_v54, %v251_v45  ;;  %v1436_v30 = vadd.f32 %v3189_v58, %v252_v46  ;;  %v1437_v29 = vadd.f32 %v3192_v59, %v253_v55  ;;  %v261_v40 = vld [vmem:[%s2994_s16 + $0x128] sm:$0xff]  ;;  %v262_v45 = vld [vmem:[%s2994_s16 + $0x130] sm:$0xff] }
  0x71   : > { %1942 = vst [vmem:[%s3065_s21 + $0xb0] sm:$0xff] %v1430_v38  ;;  %1943 = vst [vmem:[%s3065_s21 + $0xb8] sm:$0xff] %v1431_v39  ;;  %v1438_v31 = vadd.f32 %v3195_v60, %v254_v56  ;;  %v1439_v32 = vadd.f32 %v3198_v61, %v255_v57  ;;  %v3219_v36 = vrot.slane %v740_v62, %v3000_v2  ;;  %v263_v46 = vld [vmem:[%s2994_s16 + $0x138] sm:$0xff] }
  0x72   : > { %5243 = vst [vmem:[#allocation18_spill] sm:$0xff] %v3189_v58  ;;  %5244 = vst [vmem:[#allocation19_spill] sm:$0xff] %v3192_v59  ;;  %v3222_v37 = vrot.slane %v740_v62, %v3002_v3  ;;  %v3225_v38 = vrot.slane %v740_v62, %v3004_v4  ;;  %v3228_v39 = vrot.slane %v740_v62, %v3006_v5  ;;  %v349_v59 = vld [vmem:[%s2994_s16 + $0x3e8] sm:$0xff]  ;;  %v350_v58 = vld [vmem:[%s2994_s16 + $0x3f0] sm:$0xff] }
  0x73   : > { %5245 = vst [vmem:[#allocation20_spill] sm:$0xff] %v3195_v60  ;;  %5246 = vst [vmem:[#allocation21_spill] sm:$0xff] %v3198_v61  ;;  %v3238_v55 = vrot.slane %v740_v62, %v3008_v6  ;;  %v3241_v56 = vrot.slane %v740_v62, %v3010_v7  ;;  %v3244_v57 = vrot.slane %v740_v62, %v3012_v8  ;;  %v351_v54 = vld [vmem:[%s2994_s16 + $0x3f8] sm:$0xff] }
  0x74   : > { %1944 = vst [vmem:[%s3065_s21 + $0xc0] sm:$0xff] %v1432_v63  ;;  %1945 = vst [vmem:[%s3065_s21 + $0xc8] sm:$0xff] %v1433_v0  ;;  %v3247_v63 = vrot.slane %v740_v62, %v3014_v9  ;;  %v741_v0 = vld [vmem:[%s2984_s6 + $0x28] sm:$0xff] }
  0x75   : > { %1946 = vst [vmem:[%s3065_s21 + $0xd0] sm:$0xff] %v1434_v1  ;;  %1947 = vst [vmem:[%s3065_s21 + $0xd8] sm:$0xff] %v1435_v17  ;;  %v1440_v1 = vadd.f32 %v3219_v36, %v256_v19  ;;  %v1441_v17 = vadd.f32 %v3222_v37, %v257_v21  ;;  %v1444_v61 = vadd.f32 %v3238_v55, %v260_v35  ;;  %v266_v21 = vld [vmem:[%s2994_s16 + $0x150] sm:$0xff] }
  0x76   : > { %5247 = vst [vmem:[#allocation22_spill] sm:$0xff] %v3219_v36  ;;  %5248 = vst [vmem:[#allocation23_spill] sm:$0xff] %v3222_v37  ;;  %v1445_v62 = vadd.f32 %v3241_v56, %v261_v40  ;;  %v1446_v60 = vadd.f32 %v3244_v57, %v262_v45  ;;  %v1447_v19 = vadd.f32 %v3247_v63, %v263_v46 }
  0x77   : > { %5249 = vst [vmem:[#allocation24_spill] sm:$0xff] %v3225_v38  ;;  %5250 = vst [vmem:[#allocation25_spill] sm:$0xff] %v3228_v39  ;;  %v3268_v35 = vrot.slane %v741_v0, %v3000_v2  ;;  %v3271_v40 = vrot.slane %v741_v0, %v3002_v3  ;;  %v3274_v45 = vrot.slane %v741_v0, %v3004_v4 }
  0x78   : > { %1948 = vst [vmem:[%s3065_s21 + $0xe0] sm:$0xff] %v1436_v30  ;;  %1949 = vst [vmem:[%s3065_s21 + $0xe8] sm:$0xff] %v1437_v29  ;;  %v1442_v30 = vadd.f32 %v3225_v38, %v258_v33  ;;  %v1443_v29 = vadd.f32 %v3228_v39, %v259_v34  ;;  %v267_v33 = vld [vmem:[%s2994_s16 + $0x158] sm:$0xff]  ;;  %v268_v34 = vld [vmem:[%s2994_s16 + $0x160] sm:$0xff]  ;;  %v3277_v46 = vrot.slane %v741_v0, %v3006_v5 }
  0x79   : > { %1950 = vst [vmem:[%s3065_s21 + $0xf0] sm:$0xff] %v1438_v31  ;;  %1951 = vst [vmem:[%s3065_s21 + $0xf8] sm:$0xff] %v1439_v32  ;;  %v264_v31 = vld [vmem:[%s2994_s16 + $0x140] sm:$0xff]  ;;  %v265_v32 = vld [vmem:[%s2994_s16 + $0x148] sm:$0xff] }
  0x7a   : > { %5251 = vst [vmem:[#allocation26_spill] sm:$0xff] %v3238_v55  ;;  %5252 = vst [vmem:[#allocation27_spill] sm:$0xff] %v3241_v56  ;;  %v3296_v56 = vrot.slane %v741_v0, %v3014_v9  ;;  %v1451_v55 = vadd.f32 %v3277_v46, %v267_v33  ;;  %v272_v39 = vld [vmem:[%s2994_s16 + $0x180] sm:$0xff]  ;;  %v273_v38 = vld [vmem:[%s2994_s16 + $0x188] sm:$0xff] }
  0x7b   : > { %5253 = vst [vmem:[#allocation28_spill] sm:$0xff] %v3244_v57  ;;  %5254 = vst [vmem:[#allocation29_spill] sm:$0xff] %v3247_v63  ;;  %v269_v63 = vld [vmem:[%s2994_s16 + $0x168] sm:$0xff]  ;;  %v270_v57 = vld [vmem:[%s2994_s16 + $0x170] sm:$0xff] }
  0x7c   : > { %1952 = vst [vmem:[%s3065_s21 + $0x100] sm:$0xff] %v1440_v1  ;;  %1953 = vst [vmem:[%s3065_s21 + $0x108] sm:$0xff] %v1441_v17  ;;  %v271_v1 = vld [vmem:[%s2994_s16 + $0x178] sm:$0xff]  ;;  %v3287_v17 = vrot.slane %v741_v0, %v3008_v6  ;;  %v276_v33 = vld [vmem:[%s2994_s16 + $0x1a0] sm:$0xff] }
  0x7d   : > { %1954 = vst [vmem:[%s3065_s21 + $0x110] sm:$0xff] %v1442_v30  ;;  %1955 = vst [vmem:[%s3065_s21 + $0x118] sm:$0xff] %v1443_v29  ;;  %v3290_v30 = vrot.slane %v741_v0, %v3010_v7  ;;  %v3293_v29 = vrot.slane %v741_v0, %v3012_v8 }
  0x7e   : > { %5255 = vst [vmem:[#allocation30_spill] sm:$0xff] %v3268_v35  ;;  %5256 = vst [vmem:[#allocation31_spill] sm:$0xff] %v3271_v40  ;;  %v1452_v37 = vadd.f32 %v3287_v17, %v268_v34 }
  0x7f   : > { %5257 = vst [vmem:[#allocation32_spill] sm:$0xff] %v3274_v45  ;;  %5258 = vst [vmem:[#allocation33_spill] sm:$0xff] %v3277_v46  ;;  %v1453_v0 = vadd.f32 %v3290_v30, %v269_v63  ;;  %v1454_v36 = vadd.f32 %v3293_v29, %v270_v57  ;;  %v280_v46 = vld [vmem:[%s2994_s16 + $0x1c0] sm:$0xff] }
  0x80   : > { %1956 = vst [vmem:[%s3065_s21 + $0x120] sm:$0xff] %v1444_v61  ;;  %1957 = vst [vmem:[%s3065_s21 + $0x128] sm:$0xff] %v1445_v62  ;;  %v742_v61 = vld [vmem:[%s2984_s6 + $0x30] sm:$0xff]  ;;  %v1449_v62 = vadd.f32 %v3271_v40, %v265_v32 }
  0x81   : > { %1958 = vst [vmem:[%s3065_s21 + $0x130] sm:$0xff] %v1446_v60  ;;  %1959 = vst [vmem:[%s3065_s21 + $0x138] sm:$0xff] %v1447_v19  ;;  %v1448_v60 = vadd.f32 %v3268_v35, %v264_v31  ;;  %v1450_v19 = vadd.f32 %v3274_v45, %v266_v21  ;;  %v1455_v31 = vadd.f32 %v3296_v56, %v271_v1  ;;  %v274_v32 = vld [vmem:[%s2994_s16 + $0x190] sm:$0xff]  ;;  %v275_v21 = vld [vmem:[%s2994_s16 + $0x198] sm:$0xff] }
  0x82   : > { %5259 = vst [vmem:[#allocation34_spill] sm:$0xff] %v3287_v17  ;;  %5260 = vst [vmem:[#allocation35_spill] sm:$0xff] %v3290_v30  ;;  %v3317_v34 = vrot.slane %v742_v61, %v3000_v2  ;;  %v3320_v63 = vrot.slane %v742_v61, %v3002_v3  ;;  %v3323_v57 = vrot.slane %v742_v61, %v3004_v4  ;;  %v281_v45 = vld [vmem:[%s2994_s16 + $0x1c8] sm:$0xff] }
  0x83   : > { %5261 = vst [vmem:[#allocation36_spill] sm:$0xff] %v3293_v29  ;;  %5262 = vst [vmem:[#allocation37_spill] sm:$0xff] %v3296_v56  ;;  %v3326_v1 = vrot.slane %v742_v61, %v3006_v5  ;;  %v277_v56 = vld [vmem:[%s2994_s16 + $0x1a8] sm:$0xff]  ;;  %v278_v29 = vld [vmem:[%s2994_s16 + $0x1b0] sm:$0xff]  ;;  %v3345_v30 = vrot.slane %v742_v61, %v3014_v9 }
  0x84   : > { %1960 = vst [vmem:[%s3065_s21 + $0x140] sm:$0xff] %v1448_v60  ;;  %1961 = vst [vmem:[%s3065_s21 + $0x148] sm:$0xff] %v1449_v62  ;;  %v279_v60 = vld [vmem:[%s2994_s16 + $0x1b8] sm:$0xff]  ;;  %v3339_v62 = vrot.slane %v742_v61, %v3010_v7 }
  0x85   : > { %1962 = vst [vmem:[%s3065_s21 + $0x150] sm:$0xff] %v1450_v19  ;;  %1963 = vst [vmem:[%s3065_s21 + $0x158] sm:$0xff] %v1451_v55  ;;  %v3336_v55 = vrot.slane %v742_v61, %v3008_v6  ;;  %v3342_v19 = vrot.slane %v742_v61, %v3012_v8  ;;  %v1459_v17 = vadd.f32 %v3326_v1, %v275_v21  ;;  %v284_v21 = vld [vmem:[%s2994_s16 + $0x1e0] sm:$0xff] }
  0x86   : > { %5263 = vst [vmem:[#allocation38_spill] sm:$0xff] %v3317_v34  ;;  %5264 = vst [vmem:[#allocation39_spill] sm:$0xff] %v3320_v63  ;;  %v1461_v61 = vadd.f32 %v3339_v62, %v277_v56 }
  0x87   : > { %5265 = vst [vmem:[#allocation40_spill] sm:$0xff] %v3323_v57  ;;  %5266 = vst [vmem:[#allocation41_spill] sm:$0xff] %v3326_v1  ;;  %v1460_v40 = vadd.f32 %v3336_v55, %v276_v33  ;;  %v1462_v35 = vadd.f32 %v3342_v19, %v278_v29  ;;  %v288_v1 = vld [vmem:[%s2994_s16 + $0x200] sm:$0xff] }
  0x88   : > { %1964 = vst [vmem:[%s3065_s21 + $0x160] sm:$0xff] %v1452_v37  ;;  %1965 = vst [vmem:[%s3065_s21 + $0x168] sm:$0xff] %v1453_v0  ;;  %v743_v37 = vld [vmem:[%s2984_s6 + $0x38] sm:$0xff]  ;;  %v1457_v0 = vadd.f32 %v3320_v63, %v273_v38  ;;  %v282_v38 = vld [vmem:[%s2994_s16 + $0x1d0] sm:$0xff] }
  0x89   : > { %1966 = vst [vmem:[%s3065_s21 + $0x170] sm:$0xff] %v1454_v36  ;;  %1967 = vst [vmem:[%s3065_s21 + $0x178] sm:$0xff] %v1455_v31  ;;  %v1456_v36 = vadd.f32 %v3317_v34, %v272_v39  ;;  %v1458_v31 = vadd.f32 %v3323_v57, %v274_v32  ;;  %v1463_v39 = vadd.f32 %v3345_v30, %v279_v60  ;;  %v283_v32 = vld [vmem:[%s2994_s16 + $0x1d8] sm:$0xff]  ;;  %v289_v57 = vld [vmem:[%s2994_s16 + $0x208] sm:$0xff] }
  0x8a   : > { %5267 = vst [vmem:[#allocation42_spill] sm:$0xff] %v3336_v55  ;;  %5268 = vst [vmem:[#allocation43_spill] sm:$0xff] %v3339_v62  ;;  %v3366_v33 = vrot.slane %v743_v37, %v3000_v2  ;;  %v3369_v56 = vrot.slane %v743_v37, %v3002_v3  ;;  %v3372_v29 = vrot.slane %v743_v37, %v3004_v4 }
  0x8b   : > { %5269 = vst [vmem:[#allocation44_spill] sm:$0xff] %v3342_v19  ;;  %5270 = vst [vmem:[#allocation45_spill] sm:$0xff] %v3345_v30  ;;  %v3375_v60 = vrot.slane %v743_v37, %v3006_v5  ;;  %v285_v30 = vld [vmem:[%s2994_s16 + $0x1e8] sm:$0xff]  ;;  %v286_v19 = vld [vmem:[%s2994_s16 + $0x1f0] sm:$0xff]  ;;  %v3394_v62 = vrot.slane %v743_v37, %v3014_v9 }
  0x8c   : > { %1968 = vst [vmem:[%s3065_s21 + $0x180] sm:$0xff] %v1456_v36  ;;  %1969 = vst [vmem:[%s3065_s21 + $0x188] sm:$0xff] %v1457_v0  ;;  %v287_v36 = vld [vmem:[%s2994_s16 + $0x1f8] sm:$0xff]  ;;  %v3388_v0 = vrot.slane %v743_v37, %v3010_v7 }
  0x8d   : > { %1970 = vst [vmem:[%s3065_s21 + $0x190] sm:$0xff] %v1458_v31  ;;  %1971 = vst [vmem:[%s3065_s21 + $0x198] sm:$0xff] %v1459_v17  ;;  %v3385_v17 = vrot.slane %v743_v37, %v3008_v6  ;;  %v3391_v31 = vrot.slane %v743_v37, %v3012_v8  ;;  %v1467_v55 = vadd.f32 %v3375_v60, %v283_v32  ;;  %v292_v32 = vld [vmem:[%s2994_s16 + $0x220] sm:$0xff] }
  0x8e   : > { %5271 = vst [vmem:[#allocation46_spill] sm:$0xff] %v3366_v33  ;;  %5272 = vst [vmem:[#allocation47_spill] sm:$0xff] %v3369_v56  ;;  %v1469_v37 = vadd.f32 %v3388_v0, %v285_v30 }
  0x8f   : > { %5273 = vst [vmem:[#allocation48_spill] sm:$0xff] %v3372_v29  ;;  %5274 = vst [vmem:[#allocation49_spill] sm:$0xff] %v3375_v60  ;;  %v1468_v63 = vadd.f32 %v3385_v17, %v284_v21  ;;  %v1470_v34 = vadd.f32 %v3391_v31, %v286_v19  ;;  %v296_v60 = vld [vmem:[%s2994_s16 + $0x240] sm:$0xff] }
  0x90   : > { %1972 = vst [vmem:[%s3065_s21 + $0x1a0] sm:$0xff] %v1460_v40  ;;  %1973 = vst [vmem:[%s3065_s21 + $0x1a8] sm:$0xff] %v1461_v61  ;;  %v744_v40 = vld [vmem:[%s2984_s6 + $0x40] sm:$0xff]  ;;  %v1465_v61 = vadd.f32 %v3369_v56, %v281_v45  ;;  %v290_v45 = vld [vmem:[%s2994_s16 + $0x210] sm:$0xff] }
  0x91   : > { %1974 = vst [vmem:[%s3065_s21 + $0x1b0] sm:$0xff] %v1462_v35  ;;  %1975 = vst [vmem:[%s3065_s21 + $0x1b8] sm:$0xff] %v1463_v39  ;;  %v1464_v35 = vadd.f32 %v3366_v33, %v280_v46  ;;  %v1466_v39 = vadd.f32 %v3372_v29, %v282_v38  ;;  %v1471_v46 = vadd.f32 %v3394_v62, %v287_v36  ;;  %v291_v38 = vld [vmem:[%s2994_s16 + $0x218] sm:$0xff]  ;;  %v297_v29 = vld [vmem:[%s2994_s16 + $0x248] sm:$0xff] }
  0x92   : > { %5275 = vst [vmem:[#allocation50_spill] sm:$0xff] %v3385_v17  ;;  %5276 = vst [vmem:[#allocation51_spill] sm:$0xff] %v3388_v0  ;;  %v3415_v21 = vrot.slane %v744_v40, %v3000_v2  ;;  %v3418_v30 = vrot.slane %v744_v40, %v3002_v3  ;;  %v3421_v19 = vrot.slane %v744_v40, %v3004_v4 }
  0x93   : > { %5277 = vst [vmem:[#allocation52_spill] sm:$0xff] %v3391_v31  ;;  %5278 = vst [vmem:[#allocation53_spill] sm:$0xff] %v3394_v62  ;;  %v3424_v36 = vrot.slane %v744_v40, %v3006_v5  ;;  %v293_v62 = vld [vmem:[%s2994_s16 + $0x228] sm:$0xff]  ;;  %v294_v31 = vld [vmem:[%s2994_s16 + $0x230] sm:$0xff]  ;;  %v3443_v0 = vrot.slane %v744_v40, %v3014_v9 }
  0x94   : > { %1976 = vst [vmem:[%s3065_s21 + $0x1c0] sm:$0xff] %v1464_v35  ;;  %1977 = vst [vmem:[%s3065_s21 + $0x1c8] sm:$0xff] %v1465_v61  ;;  %v295_v35 = vld [vmem:[%s2994_s16 + $0x238] sm:$0xff]  ;;  %v3437_v61 = vrot.slane %v744_v40, %v3010_v7 }
  0x95   : > { %1978 = vst [vmem:[%s3065_s21 + $0x1d0] sm:$0xff] %v1466_v39  ;;  %1979 = vst [vmem:[%s3065_s21 + $0x1d8] sm:$0xff] %v1467_v55  ;;  %v3434_v55 = vrot.slane %v744_v40, %v3008_v6  ;;  %v3440_v39 = vrot.slane %v744_v40, %v3012_v8  ;;  %v1475_v17 = vadd.f32 %v3424_v36, %v291_v38  ;;  %v300_v38 = vld [vmem:[%s2994_s16 + $0x260] sm:$0xff] }
  0x96   : > { %5279 = vst [vmem:[#allocation54_spill] sm:$0xff] %v3415_v21  ;;  %5280 = vst [vmem:[#allocation55_spill] sm:$0xff] %v3418_v30  ;;  %v1477_v40 = vadd.f32 %v3437_v61, %v293_v62 }
  0x97   : > { %5281 = vst [vmem:[#allocation56_spill] sm:$0xff] %v3421_v19  ;;  %5282 = vst [vmem:[#allocation57_spill] sm:$0xff] %v3424_v36  ;;  %v1476_v56 = vadd.f32 %v3434_v55, %v292_v32  ;;  %v1478_v33 = vadd.f32 %v3440_v39, %v294_v31  ;;  %v304_v36 = vld [vmem:[%s2994_s16 + $0x280] sm:$0xff] }
  0x98   : > { %1980 = vst [vmem:[%s3065_s21 + $0x1e0] sm:$0xff] %v1468_v63  ;;  %1981 = vst [vmem:[%s3065_s21 + $0x1e8] sm:$0xff] %v1469_v37  ;;  %v745_v63 = vld [vmem:[%s2984_s6 + $0x48] sm:$0xff]  ;;  %v1473_v37 = vadd.f32 %v3418_v30, %v289_v57  ;;  %v298_v57 = vld [vmem:[%s2994_s16 + $0x250] sm:$0xff] }
  0x99   : > { %1982 = vst [vmem:[%s3065_s21 + $0x1f0] sm:$0xff] %v1470_v34  ;;  %1983 = vst [vmem:[%s3065_s21 + $0x1f8] sm:$0xff] %v1471_v46  ;;  %v1472_v34 = vadd.f32 %v3415_v21, %v288_v1  ;;  %v1474_v46 = vadd.f32 %v3421_v19, %v290_v45  ;;  %v1479_v1 = vadd.f32 %v3443_v0, %v295_v35  ;;  %v299_v45 = vld [vmem:[%s2994_s16 + $0x258] sm:$0xff]  ;;  %v305_v19 = vld [vmem:[%s2994_s16 + $0x288] sm:$0xff] }
  0x9a   : > { %5283 = vst [vmem:[#allocation58_spill] sm:$0xff] %v3434_v55  ;;  %5284 = vst [vmem:[#allocation59_spill] sm:$0xff] %v3437_v61  ;;  %v3464_v32 = vrot.slane %v745_v63, %v3000_v2  ;;  %v3467_v62 = vrot.slane %v745_v63, %v3002_v3  ;;  %v3470_v31 = vrot.slane %v745_v63, %v3004_v4 }
  0x9b   : > { %5285 = vst [vmem:[#allocation60_spill] sm:$0xff] %v3440_v39  ;;  %5286 = vst [vmem:[#allocation61_spill] sm:$0xff] %v3443_v0  ;;  %v3473_v35 = vrot.slane %v745_v63, %v3006_v5  ;;  %v301_v0 = vld [vmem:[%s2994_s16 + $0x268] sm:$0xff]  ;;  %v302_v39 = vld [vmem:[%s2994_s16 + $0x270] sm:$0xff]  ;;  %v3492_v61 = vrot.slane %v745_v63, %v3014_v9 }
  0x9c   : > { %1984 = vst [vmem:[%s3065_s21 + $0x200] sm:$0xff] %v1472_v34  ;;  %1985 = vst [vmem:[%s3065_s21 + $0x208] sm:$0xff] %v1473_v37  ;;  %v303_v34 = vld [vmem:[%s2994_s16 + $0x278] sm:$0xff]  ;;  %v3486_v37 = vrot.slane %v745_v63, %v3010_v7 }
  0x9d   : > { %1986 = vst [vmem:[%s3065_s21 + $0x210] sm:$0xff] %v1474_v46  ;;  %1987 = vst [vmem:[%s3065_s21 + $0x218] sm:$0xff] %v1475_v17  ;;  %v3483_v17 = vrot.slane %v745_v63, %v3008_v6  ;;  %v3489_v46 = vrot.slane %v745_v63, %v3012_v8  ;;  %v1483_v55 = vadd.f32 %v3473_v35, %v299_v45  ;;  %v308_v45 = vld [vmem:[%s2994_s16 + $0x2a0] sm:$0xff] }
  0x9e   : > { %5287 = vst [vmem:[#allocation62_spill] sm:$0xff] %v3464_v32  ;;  %5288 = vst [vmem:[#allocation63_spill] sm:$0xff] %v3467_v62  ;;  %v1485_v63 = vadd.f32 %v3486_v37, %v301_v0 }
  0x9f   : > { %5289 = vst [vmem:[#allocation64_spill] sm:$0xff] %v3470_v31  ;;  %5290 = vst [vmem:[#allocation65_spill] sm:$0xff] %v3473_v35  ;;  %v1484_v30 = vadd.f32 %v3483_v17, %v300_v38  ;;  %v1486_v21 = vadd.f32 %v3489_v46, %v302_v39  ;;  %v312_v35 = vld [vmem:[%s2994_s16 + $0x2c0] sm:$0xff] }
  0xa0   : > { %1988 = vst [vmem:[%s3065_s21 + $0x220] sm:$0xff] %v1476_v56  ;;  %1989 = vst [vmem:[%s3065_s21 + $0x228] sm:$0xff] %v1477_v40  ;;  %v746_v56 = vld [vmem:[%s2984_s6 + $0x50] sm:$0xff]  ;;  %v1481_v40 = vadd.f32 %v3467_v62, %v297_v29 }
  0xa1   : > { %1990 = vst [vmem:[%s3065_s21 + $0x230] sm:$0xff] %v1478_v33  ;;  %1991 = vst [vmem:[%s3065_s21 + $0x238] sm:$0xff] %v1479_v1  ;;  %v1480_v33 = vadd.f32 %v3464_v32, %v296_v60  ;;  %v1482_v1 = vadd.f32 %v3470_v31, %v298_v57  ;;  %v1487_v60 = vadd.f32 %v3492_v61, %v303_v34  ;;  %v306_v29 = vld [vmem:[%s2994_s16 + $0x290] sm:$0xff]  ;;  %v307_v57 = vld [vmem:[%s2994_s16 + $0x298] sm:$0xff] }
  0xa2   : > { %5291 = vst [vmem:[#allocation66_spill] sm:$0xff] %v3483_v17  ;;  %5292 = vst [vmem:[#allocation67_spill] sm:$0xff] %v3486_v37  ;;  %v3513_v38 = vrot.slane %v746_v56, %v3000_v2  ;;  %v3516_v0 = vrot.slane %v746_v56, %v3002_v3  ;;  %v3519_v39 = vrot.slane %v746_v56, %v3004_v4  ;;  %v313_v31 = vld [vmem:[%s2994_s16 + $0x2c8] sm:$0xff] }
  0xa3   : > { %5293 = vst [vmem:[#allocation68_spill] sm:$0xff] %v3489_v46  ;;  %5294 = vst [vmem:[#allocation69_spill] sm:$0xff] %v3492_v61  ;;  %v3522_v34 = vrot.slane %v746_v56, %v3006_v5  ;;  %v309_v61 = vld [vmem:[%s2994_s16 + $0x2a8] sm:$0xff]  ;;  %v310_v46 = vld [vmem:[%s2994_s16 + $0x2b0] sm:$0xff]  ;;  %v3541_v37 = vrot.slane %v746_v56, %v3014_v9 }
  0xa4   : > { %1992 = vst [vmem:[%s3065_s21 + $0x240] sm:$0xff] %v1480_v33  ;;  %1993 = vst [vmem:[%s3065_s21 + $0x248] sm:$0xff] %v1481_v40  ;;  %v311_v33 = vld [vmem:[%s2994_s16 + $0x2b8] sm:$0xff]  ;;  %v3535_v40 = vrot.slane %v746_v56, %v3010_v7 }
  0xa5   : > { %1994 = vst [vmem:[%s3065_s21 + $0x250] sm:$0xff] %v1482_v1  ;;  %1995 = vst [vmem:[%s3065_s21 + $0x258] sm:$0xff] %v1483_v55  ;;  %v3532_v55 = vrot.slane %v746_v56, %v3008_v6  ;;  %v3538_v1 = vrot.slane %v746_v56, %v3012_v8  ;;  %v1491_v17 = vadd.f32 %v3522_v34, %v307_v57  ;;  %v316_v57 = vld [vmem:[%s2994_s16 + $0x2e0] sm:$0xff] }
  0xa6   : > { %5295 = vst [vmem:[#allocation70_spill] sm:$0xff] %v3513_v38  ;;  %5296 = vst [vmem:[#allocation71_spill] sm:$0xff] %v3516_v0  ;;  %v1493_v56 = vadd.f32 %v3535_v40, %v309_v61 }
  0xa7   : > { %5297 = vst [vmem:[#allocation72_spill] sm:$0xff] %v3519_v39  ;;  %5298 = vst [vmem:[#allocation73_spill] sm:$0xff] %v3522_v34  ;;  %v1492_v62 = vadd.f32 %v3532_v55, %v308_v45  ;;  %v1494_v32 = vadd.f32 %v3538_v1, %v310_v46  ;;  %v320_v34 = vld [vmem:[%s2994_s16 + $0x300] sm:$0xff] }
  0xa8   : > { %1996 = vst [vmem:[%s3065_s21 + $0x260] sm:$0xff] %v1484_v30  ;;  %1997 = vst [vmem:[%s3065_s21 + $0x268] sm:$0xff] %v1485_v63  ;;  %v747_v30 = vld [vmem:[%s2984_s6 + $0x58] sm:$0xff]  ;;  %v1489_v63 = vadd.f32 %v3516_v0, %v305_v19  ;;  %v314_v19 = vld [vmem:[%s2994_s16 + $0x2d0] sm:$0xff] }
  0xa9   : > { %1998 = vst [vmem:[%s3065_s21 + $0x270] sm:$0xff] %v1486_v21  ;;  %1999 = vst [vmem:[%s3065_s21 + $0x278] sm:$0xff] %v1487_v60  ;;  %v1488_v21 = vadd.f32 %v3513_v38, %v304_v36  ;;  %v1490_v60 = vadd.f32 %v3519_v39, %v306_v29  ;;  %v1495_v36 = vadd.f32 %v3541_v37, %v311_v33  ;;  %v315_v29 = vld [vmem:[%s2994_s16 + $0x2d8] sm:$0xff]  ;;  %v321_v39 = vld [vmem:[%s2994_s16 + $0x308] sm:$0xff] }
  0xaa   : > { %5299 = vst [vmem:[#allocation74_spill] sm:$0xff] %v3532_v55  ;;  %5300 = vst [vmem:[#allocation75_spill] sm:$0xff] %v3535_v40  ;;  %v3562_v45 = vrot.slane %v747_v30, %v3000_v2  ;;  %v3565_v61 = vrot.slane %v747_v30, %v3002_v3  ;;  %v3568_v46 = vrot.slane %v747_v30, %v3004_v4 }
  0xab   : > { %5301 = vst [vmem:[#allocation76_spill] sm:$0xff] %v3538_v1  ;;  %5302 = vst [vmem:[#allocation77_spill] sm:$0xff] %v3541_v37  ;;  %v3571_v33 = vrot.slane %v747_v30, %v3006_v5  ;;  %v317_v37 = vld [vmem:[%s2994_s16 + $0x2e8] sm:$0xff]  ;;  %v318_v1 = vld [vmem:[%s2994_s16 + $0x2f0] sm:$0xff]  ;;  %v3590_v40 = vrot.slane %v747_v30, %v3014_v9 }
  0xac   : > { %2000 = vst [vmem:[%s3065_s21 + $0x280] sm:$0xff] %v1488_v21  ;;  %2001 = vst [vmem:[%s3065_s21 + $0x288] sm:$0xff] %v1489_v63  ;;  %v319_v21 = vld [vmem:[%s2994_s16 + $0x2f8] sm:$0xff]  ;;  %v3584_v63 = vrot.slane %v747_v30, %v3010_v7 }
  0xad   : > { %2002 = vst [vmem:[%s3065_s21 + $0x290] sm:$0xff] %v1490_v60  ;;  %2003 = vst [vmem:[%s3065_s21 + $0x298] sm:$0xff] %v1491_v17  ;;  %v3581_v17 = vrot.slane %v747_v30, %v3008_v6  ;;  %v3587_v60 = vrot.slane %v747_v30, %v3012_v8  ;;  %v1499_v55 = vadd.f32 %v3571_v33, %v315_v29  ;;  %v324_v29 = vld [vmem:[%s2994_s16 + $0x320] sm:$0xff] }
  0xae   : > { %5303 = vst [vmem:[#allocation78_spill] sm:$0xff] %v3562_v45  ;;  %5304 = vst [vmem:[#allocation79_spill] sm:$0xff] %v3565_v61  ;;  %v1501_v30 = vadd.f32 %v3584_v63, %v317_v37 }
  0xaf   : > { %5305 = vst [vmem:[#allocation80_spill] sm:$0xff] %v3568_v46  ;;  %5306 = vst [vmem:[#allocation81_spill] sm:$0xff] %v3571_v33  ;;  %v1500_v0 = vadd.f32 %v3581_v17, %v316_v57  ;;  %v1502_v38 = vadd.f32 %v3587_v60, %v318_v1  ;;  %v328_v33 = vld [vmem:[%s2994_s16 + $0x340] sm:$0xff] }
  0xb0   : > { %2004 = vst [vmem:[%s3065_s21 + $0x2a0] sm:$0xff] %v1492_v62  ;;  %2005 = vst [vmem:[%s3065_s21 + $0x2a8] sm:$0xff] %v1493_v56  ;;  %v748_v62 = vld [vmem:[%s2984_s6 + $0x60] sm:$0xff]  ;;  %v1497_v56 = vadd.f32 %v3565_v61, %v313_v31  ;;  %v322_v31 = vld [vmem:[%s2994_s16 + $0x310] sm:$0xff] }
  0xb1   : > { %2006 = vst [vmem:[%s3065_s21 + $0x2b0] sm:$0xff] %v1494_v32  ;;  %2007 = vst [vmem:[%s3065_s21 + $0x2b8] sm:$0xff] %v1495_v36  ;;  %v1496_v32 = vadd.f32 %v3562_v45, %v312_v35  ;;  %v1498_v36 = vadd.f32 %v3568_v46, %v314_v19  ;;  %v1503_v35 = vadd.f32 %v3590_v40, %v319_v21  ;;  %v323_v19 = vld [vmem:[%s2994_s16 + $0x318] sm:$0xff]  ;;  %v329_v46 = vld [vmem:[%s2994_s16 + $0x348] sm:$0xff] }
  0xb2   : > { %5307 = vst [vmem:[#allocation82_spill] sm:$0xff] %v3581_v17  ;;  %5308 = vst [vmem:[#allocation83_spill] sm:$0xff] %v3584_v63  ;;  %v3611_v57 = vrot.slane %v748_v62, %v3000_v2  ;;  %v3614_v37 = vrot.slane %v748_v62, %v3002_v3  ;;  %v3617_v1 = vrot.slane %v748_v62, %v3004_v4 }
  0xb3   : > { %5309 = vst [vmem:[#allocation84_spill] sm:$0xff] %v3587_v60  ;;  %5310 = vst [vmem:[#allocation85_spill] sm:$0xff] %v3590_v40  ;;  %v3620_v21 = vrot.slane %v748_v62, %v3006_v5  ;;  %v325_v40 = vld [vmem:[%s2994_s16 + $0x328] sm:$0xff]  ;;  %v326_v60 = vld [vmem:[%s2994_s16 + $0x330] sm:$0xff]  ;;  %v3639_v63 = vrot.slane %v748_v62, %v3014_v9 }
  0xb4   : > { %2008 = vst [vmem:[%s3065_s21 + $0x2c0] sm:$0xff] %v1496_v32  ;;  %2009 = vst [vmem:[%s3065_s21 + $0x2c8] sm:$0xff] %v1497_v56  ;;  %v327_v32 = vld [vmem:[%s2994_s16 + $0x338] sm:$0xff]  ;;  %v3633_v56 = vrot.slane %v748_v62, %v3010_v7 }
  0xb5   : > { %2010 = vst [vmem:[%s3065_s21 + $0x2d0] sm:$0xff] %v1498_v36  ;;  %2011 = vst [vmem:[%s3065_s21 + $0x2d8] sm:$0xff] %v1499_v55  ;;  %v3630_v55 = vrot.slane %v748_v62, %v3008_v6  ;;  %v3636_v36 = vrot.slane %v748_v62, %v3012_v8  ;;  %v1507_v17 = vadd.f32 %v3620_v21, %v323_v19  ;;  %v332_v19 = vld [vmem:[%s2994_s16 + $0x360] sm:$0xff] }
  0xb6   : > { %5311 = vst [vmem:[#allocation86_spill] sm:$0xff] %v3611_v57  ;;  %5312 = vst [vmem:[#allocation87_spill] sm:$0xff] %v3614_v37  ;;  %v1509_v62 = vadd.f32 %v3633_v56, %v325_v40 }
  0xb7   : > { %5313 = vst [vmem:[#allocation88_spill] sm:$0xff] %v3617_v1  ;;  %5314 = vst [vmem:[#allocation89_spill] sm:$0xff] %v3620_v21  ;;  %v1508_v61 = vadd.f32 %v3630_v55, %v324_v29  ;;  %v1510_v45 = vadd.f32 %v3636_v36, %v326_v60  ;;  %v336_v21 = vld [vmem:[%s2994_s16 + $0x380] sm:$0xff] }
  0xb8   : > { %2012 = vst [vmem:[%s3065_s21 + $0x2e0] sm:$0xff] %v1500_v0  ;;  %2013 = vst [vmem:[%s3065_s21 + $0x2e8] sm:$0xff] %v1501_v30  ;;  %v749_v0 = vld [vmem:[%s2984_s6 + $0x68] sm:$0xff]  ;;  %v1505_v30 = vadd.f32 %v3614_v37, %v321_v39  ;;  %v330_v39 = vld [vmem:[%s2994_s16 + $0x350] sm:$0xff] }
  0xb9   : > { %2014 = vst [vmem:[%s3065_s21 + $0x2f0] sm:$0xff] %v1502_v38  ;;  %2015 = vst [vmem:[%s3065_s21 + $0x2f8] sm:$0xff] %v1503_v35  ;;  %v1504_v38 = vadd.f32 %v3611_v57, %v320_v34  ;;  %v1506_v35 = vadd.f32 %v3617_v1, %v322_v31  ;;  %v1511_v34 = vadd.f32 %v3639_v63, %v327_v32  ;;  %v331_v31 = vld [vmem:[%s2994_s16 + $0x358] sm:$0xff]  ;;  %v337_v1 = vld [vmem:[%s2994_s16 + $0x388] sm:$0xff] }
  0xba   : > { %5315 = vst [vmem:[#allocation90_spill] sm:$0xff] %v3630_v55  ;;  %5316 = vst [vmem:[#allocation91_spill] sm:$0xff] %v3633_v56  ;;  %v3660_v29 = vrot.slane %v749_v0, %v3000_v2  ;;  %v3663_v40 = vrot.slane %v749_v0, %v3002_v3  ;;  %v3666_v60 = vrot.slane %v749_v0, %v3004_v4  ;;  %v338_v37 = vld [vmem:[%s2994_s16 + $0x390] sm:$0xff] }
  0xbb   : > { %5317 = vst [vmem:[#allocation92_spill] sm:$0xff] %v3636_v36  ;;  %5318 = vst [vmem:[#allocation93_spill] sm:$0xff] %v3639_v63  ;;  %v3669_v32 = vrot.slane %v749_v0, %v3006_v5  ;;  %v333_v63 = vld [vmem:[%s2994_s16 + $0x368] sm:$0xff]  ;;  %v334_v36 = vld [vmem:[%s2994_s16 + $0x370] sm:$0xff]  ;;  %v3688_v56 = vrot.slane %v749_v0, %v3014_v9 }
  0xbc   : > { %2016 = vst [vmem:[%s3065_s21 + $0x300] sm:$0xff] %v1504_v38  ;;  %2017 = vst [vmem:[%s3065_s21 + $0x308] sm:$0xff] %v1505_v30  ;;  %v335_v38 = vld [vmem:[%s2994_s16 + $0x378] sm:$0xff]  ;;  %v3682_v30 = vrot.slane %v749_v0, %v3010_v7 }
  0xbd   : > { %2018 = vst [vmem:[%s3065_s21 + $0x310] sm:$0xff] %v1506_v35  ;;  %2019 = vst [vmem:[%s3065_s21 + $0x318] sm:$0xff] %v1507_v17  ;;  %v3679_v17 = vrot.slane %v749_v0, %v3008_v6  ;;  %v3685_v35 = vrot.slane %v749_v0, %v3012_v8  ;;  %v1515_v55 = vadd.f32 %v3669_v32, %v331_v31  ;;  %v341_v31 = vld [vmem:[%s2994_s16 + $0x3a8] sm:$0xff] }
  0xbe   : > { %5319 = vst [vmem:[#allocation94_spill] sm:$0xff] %v3660_v29  ;;  %5320 = vst [vmem:[#allocation95_spill] sm:$0xff] %v3663_v40  ;;  %v1517_v57 = vadd.f32 %v3682_v30, %v333_v63 }
  0xbf   : > { %5321 = vst [vmem:[#allocation96_spill] sm:$0xff] %v3666_v60  ;;  %5322 = vst [vmem:[#allocation97_spill] sm:$0xff] %v3669_v32  ;;  %v1516_v0 = vadd.f32 %v3679_v17, %v332_v19 }
  0xc0   : > { %2020 = vst [vmem:[%s3065_s21 + $0x320] sm:$0xff] %v1508_v61  ;;  %2021 = vst [vmem:[%s3065_s21 + $0x328] sm:$0xff] %v1509_v62  ;;  %v750_v61 = vld [vmem:[%s2984_s6 + $0x70] sm:$0xff]  ;;  %v1513_v62 = vadd.f32 %v3663_v40, %v329_v46  ;;  %v1519_v46 = vadd.f32 %v3688_v56, %v335_v38  ;;  %v339_v40 = vld [vmem:[%s2994_s16 + $0x398] sm:$0xff] }
  0xc1   : > { %2022 = vst [vmem:[%s3065_s21 + $0x330] sm:$0xff] %v1510_v45  ;;  %2023 = vst [vmem:[%s3065_s21 + $0x338] sm:$0xff] %v1511_v34  ;;  %v1512_v45 = vadd.f32 %v3660_v29, %v328_v33  ;;  %v1514_v34 = vadd.f32 %v3666_v60, %v330_v39  ;;  %v1518_v33 = vadd.f32 %v3685_v35, %v334_v36  ;;  %v340_v39 = vld [vmem:[%s2994_s16 + $0x3a0] sm:$0xff] }
  0xc2   : > { %5323 = vst [vmem:[#allocation98_spill] sm:$0xff] %v3679_v17  ;;  %5324 = vst [vmem:[#allocation99_spill] sm:$0xff] %v3682_v30  ;;  %v3710_v19 = vrot.slane %v750_v61, %v3000_v2  ;;  %v3713_v63 = vrot.slane %v750_v61, %v3002_v3  ;;  %v3716_v36 = vrot.slane %v750_v61, %v3004_v4  ;;  %v348_v29 = vld [vmem:[%s2994_s16 + $0x3e0] sm:$0xff] }
  0xc3   : > { %5325 = vst [vmem:[#allocation100_spill] sm:$0xff] %v3685_v35  ;;  %5326 = vst [vmem:[#allocation101_spill] sm:$0xff] %v3688_v56  ;;  %v3719_v38 = vrot.slane %v750_v61, %v3006_v5  ;;  %v3732_v56 = vrot.slane %v750_v61, %v3010_v7  ;;  %v3735_v35 = vrot.slane %v750_v61, %v3012_v8 }
  0xc4   : > { %2024 = vst [vmem:[%s3065_s21 + $0x340] sm:$0xff] %v1512_v45  ;;  %2025 = vst [vmem:[%s3065_s21 + $0x348] sm:$0xff] %v1513_v62  ;;  %v342_v45 = vld [vmem:[%s2994_s16 + $0x3b0] sm:$0xff]  ;;  %v343_v62 = vld [vmem:[%s2994_s16 + $0x3b8] sm:$0xff]  ;;  %v3738_v30 = vrot.slane %v750_v61, %v3014_v9  ;;  %v1520_v17 = vadd.f32 %v3710_v19, %v336_v21  ;;  %v1521_v32 = vadd.f32 %v3713_v63, %v337_v1 }
  0xc5   : > { %2026 = vst [vmem:[%s3065_s21 + $0x350] sm:$0xff] %v1514_v34  ;;  %2027 = vst [vmem:[%s3065_s21 + $0x358] sm:$0xff] %v1515_v55  ;;  %v751_v34 = vld [vmem:[%s2984_s6 + $0x78] sm:$0xff]  ;;  %v3729_v55 = vrot.slane %v750_v61, %v3008_v6  ;;  %v1522_v60 = vadd.f32 %v3716_v36, %v338_v37  ;;  %v1523_v61 = vadd.f32 %v3719_v38, %v339_v40  ;;  %v352_v37 = vld [vmem:[%s2994_s16 + $0x400] sm:$0xff] }
  0xc6   : > { %5327 = vst [vmem:[#allocation102_spill] sm:$0xff] %v3710_v19  ;;  %5328 = vst [vmem:[#allocation103_spill] sm:$0xff] %v3713_v63  ;;  %v1525_v52 = vadd.f32 %v3732_v56, %v341_v31  ;;  %v1526_v21 = vadd.f32 %v3735_v35, %v342_v45  ;;  %v1527_v1 = vadd.f32 %v3738_v30, %v343_v62  ;;  %v353_v40 = vld [vmem:[%s2994_s16 + $0x408] sm:$0xff] }
  0xc7   : > { %5329 = vst [vmem:[#allocation104_spill] sm:$0xff] %v3716_v36  ;;  %5330 = vst [vmem:[#allocation105_spill] sm:$0xff] %v3719_v38  ;;  %v1524_v53 = vadd.f32 %v3729_v55, %v340_v39  ;;  %v354_v38 = vld [vmem:[%s2994_s16 + $0x410] sm:$0xff]  ;;  %v355_v36 = vld [vmem:[%s2994_s16 + $0x418] sm:$0xff]  ;;  %v3765_v39 = vrot.slane %v751_v34, %v3000_v2  ;;  %v3768_v31 = vrot.slane %v751_v34, %v3002_v3 }
  0xc8   : > { %2028 = vst [vmem:[%s3065_s21 + $0x360] sm:$0xff] %v1516_v0  ;;  %2029 = vst [vmem:[%s3065_s21 + $0x368] sm:$0xff] %v1517_v57  ;;  %v344_v0 = vld [vmem:[%s2994_s16 + $0x3c0] sm:$0xff]  ;;  %v345_v57 = vld [vmem:[%s2994_s16 + $0x3c8] sm:$0xff]  ;;  %v3771_v45 = vrot.slane %v751_v34, %v3004_v4  ;;  %v3774_v62 = vrot.slane %v751_v34, %v3006_v5  ;;  %v3785_v2 = vrot.slane %v751_v34, %v3008_v6 }
  0xc9   : > { %2030 = vst [vmem:[%s3065_s21 + $0x370] sm:$0xff] %v1518_v33  ;;  %2031 = vst [vmem:[%s3065_s21 + $0x378] sm:$0xff] %v1519_v46  ;;  %v346_v33 = vld [vmem:[%s2994_s16 + $0x3d0] sm:$0xff]  ;;  %v347_v46 = vld [vmem:[%s2994_s16 + $0x3d8] sm:$0xff]  ;;  %v3788_v3 = vrot.slane %v751_v34, %v3010_v7  ;;  %v3791_v4 = vrot.slane %v751_v34, %v3012_v8  ;;  %v3794_v5 = vrot.slane %v751_v34, %v3014_v9 }
  0xca   : > { %5331 = vst [vmem:[#allocation106_spill] sm:$0xff] %v3729_v55  ;;  %5332 = vst [vmem:[#allocation107_spill] sm:$0xff] %v3732_v56  ;;  %v1528_v6 = vadd.f32 %v3765_v39, %v344_v0  ;;  %v1529_v7 = vadd.f32 %v3768_v31, %v345_v57  ;;  %v1530_v8 = vadd.f32 %v3771_v45, %v346_v33  ;;  %v364_v34 = vld [vmem:[%s2994_s16 + $0x460] sm:$0xff]  ;;  %v367_v56 = vld [vmem:[%s2994_s16 + $0x478] sm:$0xff] }
  0xcb   : > { %5333 = vst [vmem:[#allocation108_spill] sm:$0xff] %v3735_v35  ;;  %5334 = vst [vmem:[#allocation109_spill] sm:$0xff] %v3738_v30  ;;  %v1531_v9 = vadd.f32 %v3774_v62, %v347_v46  ;;  %v365_v30 = vld [vmem:[%s2994_s16 + $0x468] sm:$0xff]  ;;  %v366_v35 = vld [vmem:[%s2994_s16 + $0x470] sm:$0xff]  ;;  %v1532_v55 = vadd.f32 %v3785_v2, %v348_v29  ;;  %v1533_v63 = vadd.f32 %v3788_v3, %v349_v59 }
  0xcc   : > { %2032 = vst [vmem:[%s3065_s21 + $0x380] sm:$0xff] %v1520_v17  ;;  %2033 = vst [vmem:[%s3065_s21 + $0x388] sm:$0xff] %v1521_v32  ;;  %v356_v17 = vld [vmem:[%s2994_s16 + $0x420] sm:$0xff]  ;;  %v357_v32 = vld [vmem:[%s2994_s16 + $0x428] sm:$0xff]  ;;  %v1534_v0 = vadd.f32 %v3791_v4, %v350_v58  ;;  %v1535_v57 = vadd.f32 %v3794_v5, %v351_v54  ;;  %v1536_v59 = vadd.f32 %v3020_v13, %v352_v37 }
  0xcd   : > { %2034 = vst [vmem:[%s3065_s21 + $0x390] sm:$0xff] %v1522_v60  ;;  %2035 = vst [vmem:[%s3065_s21 + $0x398] sm:$0xff] %v1523_v61  ;;  %v358_v60 = vld [vmem:[%s2994_s16 + $0x430] sm:$0xff]  ;;  %v359_v61 = vld [vmem:[%s2994_s16 + $0x438] sm:$0xff]  ;;  %v1537_v58 = vadd.f32 %v3023_v14, %v353_v40  ;;  %v1538_v54 = vadd.f32 %v3027_v16, %v354_v38  ;;  %v1539_v29 = vadd.f32 %v3031_v18, %v355_v36 }
  0xce   : > { %5335 = vst [vmem:[#allocation110_spill] sm:$0xff] %v3765_v39  ;;  %5336 = vst [vmem:[#allocation111_spill] sm:$0xff] %v3771_v45  ;;  %v368_v33 = vld [vmem:[%s2994_s16 + $0x480] sm:$0xff]  ;;  %v369_v46 = vld [vmem:[%s2994_s16 + $0x488] sm:$0xff]  ;;  %v1540_v37 = vadd.f32 %v3035_v20, %v356_v17  ;;  %v1541_v38 = vadd.f32 %v3039_v22, %v357_v32  ;;  %v1542_v36 = vadd.f32 %v3043_v24, %v358_v60 }
  0xcf   : > { %5337 = vst [vmem:[#allocation112_spill] sm:$0xff] %v3774_v62  ;;  %2036 = vst [vmem:[%s3065_s21 + $0x3a0] sm:$0xff] %v1524_v53  ;;  %v360_v53 = vld [vmem:[%s2994_s16 + $0x440] sm:$0xff]  ;;  %v370_v62 = vld [vmem:[%s2994_s16 + $0x490] sm:$0xff]  ;;  %v1543_v40 = vadd.f32 %v3047_v26, %v359_v61 }
  0xd0   : > { %2037 = vst [vmem:[%s3065_s21 + $0x3a8] sm:$0xff] %v1525_v52  ;;  %2038 = vst [vmem:[%s3065_s21 + $0x3b0] sm:$0xff] %v1526_v21  ;;  %v361_v52 = vld [vmem:[%s2994_s16 + $0x448] sm:$0xff]  ;;  %v362_v21 = vld [vmem:[%s2994_s16 + $0x450] sm:$0xff]  ;;  %v1544_v17 = vadd.f32 %v3072_v41, %v360_v53  ;;  %v1548_v53 = vadd.f32 %v3091_v48, %v364_v34 }
  0xd1   : > { %2039 = vst [vmem:[%s3065_s21 + $0x3b8] sm:$0xff] %v1527_v1  ;;  %5338 = vst [vmem:[#allocation113_spill] sm:$0xff] %v3791_v4  ;;  %v363_v1 = vld [vmem:[%s2994_s16 + $0x458] sm:$0xff]  ;;  %v373_v4 = vld [vmem:[%s2994_s16 + $0x4a8] sm:$0xff]  ;;  %v1545_v32 = vadd.f32 %v3075_v42, %v361_v52  ;;  %v1546_v60 = vadd.f32 %v3078_v43, %v362_v21  ;;  %v1549_v52 = vadd.f32 %v3094_v49, %v365_v30 }
  0xd2   : > { %5339 = vst [vmem:[#allocation114_spill] sm:$0xff] %v3794_v5  ;;  %v371_v45 = vld [vmem:[%s2994_s16 + $0x498] sm:$0xff]  ;;  %2040 = vst [vmem:[%s3065_s21 + $0x3c0] sm:$0xff] %v1528_v6  ;;  %v372_v5 = vld [vmem:[%s2994_s16 + $0x4a0] sm:$0xff]  ;;  %v1547_v61 = vadd.f32 %v3081_v44, %v363_v1  ;;  %v1550_v21 = vadd.f32 %v3097_v50, %v366_v35  ;;  %v1551_v1 = vadd.f32 %v3100_v51, %v367_v56 }
  0xd3   : > { %2041 = vst [vmem:[%s3065_s21 + $0x3c8] sm:$0xff] %v1529_v7  ;;  %2042 = vst [vmem:[%s3065_s21 + $0x3d0] sm:$0xff] %v1530_v8  ;;  %v374_v6 = vld [vmem:[%s2994_s16 + $0x4b0] sm:$0xff]  ;;  %v375_v7 = vld [vmem:[%s2994_s16 + $0x4b8] sm:$0xff]  ;;  %v1552_v30 = vadd.f32 %v3121_v10, %v368_v33  ;;  %v1553_v35 = vadd.f32 %v3124_v11, %v369_v46  ;;  %v1554_v56 = vadd.f32 %v3127_v12, %v370_v62 }
  0xd4   : > { %2043 = vst [vmem:[%s3065_s21 + $0x3d8] sm:$0xff] %v1531_v9  ;;  %2044 = vst [vmem:[%s3065_s21 + $0x3e0] sm:$0xff] %v1532_v55  ;;  %v376_v8 = vld [vmem:[%s2994_s16 + $0x4c0] sm:$0xff]  ;;  %v377_v9 = vld [vmem:[%s2994_s16 + $0x4c8] sm:$0xff]  ;;  %v1555_v34 = vadd.f32 %v3130_v15, %v371_v45  ;;  %v1556_v33 = vadd.f32 %v3140_v23, %v372_v5  ;;  %v1557_v62 = vadd.f32 %v3143_v25, %v373_v4 }
  0xd5   : > { %2045 = vst [vmem:[%s3065_s21 + $0x3e8] sm:$0xff] %v1533_v63  ;;  %2046 = vst [vmem:[%s3065_s21 + $0x3f0] sm:$0xff] %v1534_v0  ;;  %v378_v55 = vld [vmem:[%s2994_s16 + $0x4d0] sm:$0xff]  ;;  %v379_v63 = vld [vmem:[%s2994_s16 + $0x4d8] sm:$0xff]  ;;  %v1558_v45 = vadd.f32 %v3146_v27, %v374_v6  ;;  %v1559_v46 = vadd.f32 %v3149_v28, %v375_v7  ;;  %v1560_v4 = vadd.f32 %v3170_v47, %v376_v8 }
  0xd6   : > { %2047 = vst [vmem:[%s3065_s21 + $0x3f8] sm:$0xff] %v1535_v57  ;;  %2048 = vst [vmem:[%s3065_s21 + $0x400] sm:$0xff] %v1536_v59  ;;  %v380_v0 = vld [vmem:[%s2994_s16 + $0x4e0] sm:$0xff]  ;;  %v381_v57 = vld [vmem:[%s2994_s16 + $0x4e8] sm:$0xff] }
  0xd7   : > { %2049 = vst [vmem:[%s3065_s21 + $0x408] sm:$0xff] %v1537_v58  ;;  %2050 = vst [vmem:[%s3065_s21 + $0x410] sm:$0xff] %v1538_v54  ;;  %v382_v59 = vld [vmem:[%s2994_s16 + $0x4f0] sm:$0xff]  ;;  %v383_v58 = vld [vmem:[%s2994_s16 + $0x4f8] sm:$0xff] }
  0xd8   : > { %2051 = vst [vmem:[%s3065_s21 + $0x418] sm:$0xff] %v1539_v29  ;;  %2052 = vst [vmem:[%s3065_s21 + $0x420] sm:$0xff] %v1540_v37  ;;  %v384_v54 = vld [vmem:[%s2994_s16 + $0x500] sm:$0xff]  ;;  %v385_v29 = vld [vmem:[%s2994_s16 + $0x508] sm:$0xff] }
  0xd9   : > { %2053 = vst [vmem:[%s3065_s21 + $0x428] sm:$0xff] %v1541_v38  ;;  %2054 = vst [vmem:[%s3065_s21 + $0x430] sm:$0xff] %v1542_v36  ;;  %v386_v37 = vld [vmem:[%s2994_s16 + $0x510] sm:$0xff]  ;;  %v387_v38 = vld [vmem:[%s2994_s16 + $0x518] sm:$0xff] }
  0xda   : > { %2055 = vst [vmem:[%s3065_s21 + $0x438] sm:$0xff] %v1543_v40  ;;  %2056 = vst [vmem:[%s3065_s21 + $0x440] sm:$0xff] %v1544_v17  ;;  %v388_v36 = vld [vmem:[%s2994_s16 + $0x520] sm:$0xff]  ;;  %v389_v40 = vld [vmem:[%s2994_s16 + $0x528] sm:$0xff] }
  0xdb   : > { %2057 = vst [vmem:[%s3065_s21 + $0x448] sm:$0xff] %v1545_v32  ;;  %2058 = vst [vmem:[%s3065_s21 + $0x450] sm:$0xff] %v1546_v60  ;;  %v390_v17 = vld [vmem:[%s2994_s16 + $0x530] sm:$0xff]  ;;  %v391_v32 = vld [vmem:[%s2994_s16 + $0x538] sm:$0xff] }
  0xdc   : > { %2059 = vst [vmem:[%s3065_s21 + $0x458] sm:$0xff] %v1547_v61  ;;  %2060 = vst [vmem:[%s3065_s21 + $0x460] sm:$0xff] %v1548_v53  ;;  %v392_v60 = vld [vmem:[%s2994_s16 + $0x540] sm:$0xff]  ;;  %v393_v61 = vld [vmem:[%s2994_s16 + $0x548] sm:$0xff] }
  0xdd   : > { %2061 = vst [vmem:[%s3065_s21 + $0x468] sm:$0xff] %v1549_v52  ;;  %2062 = vst [vmem:[%s3065_s21 + $0x470] sm:$0xff] %v1550_v21  ;;  %v394_v53 = vld [vmem:[%s2994_s16 + $0x550] sm:$0xff]  ;;  %v395_v52 = vld [vmem:[%s2994_s16 + $0x558] sm:$0xff] }
  0xde   : > { %2063 = vst [vmem:[%s3065_s21 + $0x478] sm:$0xff] %v1551_v1  ;;  %2064 = vst [vmem:[%s3065_s21 + $0x480] sm:$0xff] %v1552_v30  ;;  %v5340_v5 = vld [vmem:[#allocation15_spill] sm:$0xff]  ;;  %v5341_v21 = vld [vmem:[#allocation16_spill] sm:$0xff] }
  0xdf   : > { %2065 = vst [vmem:[%s3065_s21 + $0x488] sm:$0xff] %v1553_v35  ;;  %2066 = vst [vmem:[%s3065_s21 + $0x490] sm:$0xff] %v1554_v56  ;;  %v1561_v6 = vadd.f32 %v5340_v5, %v377_v9  ;;  %v1562_v7 = vadd.f32 %v5341_v21, %v378_v55  ;;  %v5342_v1 = vld [vmem:[#allocation17_spill] sm:$0xff]  ;;  %v396_v27 = vld [vmem:[%s2994_s16 + $0x560] sm:$0xff] }
  0xe0   : > { %2067 = vst [vmem:[%s3065_s21 + $0x498] sm:$0xff] %v1555_v34  ;;  %v1563_v28 = vadd.f32 %v5342_v1, %v379_v63  ;;  %v397_v25 = vld [vmem:[%s2994_s16 + $0x568] sm:$0xff]  ;;  %v398_v30 = vld [vmem:[%s2994_s16 + $0x570] sm:$0xff]  ;;  %v399_v35 = vld [vmem:[%s2994_s16 + $0x578] sm:$0xff] }
  0xe1   : > { %2068 = vst [vmem:[%s3065_s21 + $0x4a0] sm:$0xff] %v1556_v33  ;;  %2069 = vst [vmem:[%s3065_s21 + $0x4a8] sm:$0xff] %v1557_v62  ;;  %v5343_v8 = vld [vmem:[#allocation18_spill] sm:$0xff]  ;;  %v5344_v56 = vld [vmem:[#allocation19_spill] sm:$0xff] }
  0xe2   : > { %2070 = vst [vmem:[%s3065_s21 + $0x4b0] sm:$0xff] %v1558_v45  ;;  %2071 = vst [vmem:[%s3065_s21 + $0x4b8] sm:$0xff] %v1559_v46  ;;  %v1564_v9 = vadd.f32 %v5343_v8, %v380_v0  ;;  %v1565_v55 = vadd.f32 %v5344_v56, %v381_v57  ;;  %v5345_v34 = vld [vmem:[#allocation20_spill] sm:$0xff]  ;;  %v5346_v1 = vld [vmem:[#allocation21_spill] sm:$0xff] }
  0xe3   : > { %v1566_v63 = vadd.f32 %v5345_v34, %v382_v59  ;;  %v1567_v21 = vadd.f32 %v5346_v1, %v383_v58  ;;  %v400_v5 = vld [vmem:[%s2994_s16 + $0x580] sm:$0xff]  ;;  %v401_v47 = vld [vmem:[%s2994_s16 + $0x588] sm:$0xff]  ;;  %v402_v33 = vld [vmem:[%s2994_s16 + $0x590] sm:$0xff]  ;;  %2072 = vst [vmem:[%s3065_s21 + $0x4c0] sm:$0xff] %v1560_v4 }
  0xe4   : > { %v403_v62 = vld [vmem:[%s2994_s16 + $0x598] sm:$0xff]  ;;  %2073 = vst [vmem:[%s3065_s21 + $0x4c8] sm:$0xff] %v1561_v6  ;;  %2074 = vst [vmem:[%s3065_s21 + $0x4d0] sm:$0xff] %v1562_v7  ;;  %v5348_v45 = vld [vmem:[#allocation23_spill] sm:$0xff] }
  0xe5   : > { %2075 = vst [vmem:[%s3065_s21 + $0x4d8] sm:$0xff] %v1563_v28  ;;  %v5347_v0 = vld [vmem:[#allocation22_spill] sm:$0xff]  ;;  %v1569_v59 = vadd.f32 %v5348_v45, %v385_v29  ;;  %v5349_v46 = vld [vmem:[#allocation24_spill] sm:$0xff]  ;;  %v5350_v1 = vld [vmem:[#allocation25_spill] sm:$0xff] }
  0xe6   : > { %v1568_v57 = vadd.f32 %v5347_v0, %v384_v54  ;;  %v1570_v58 = vadd.f32 %v5349_v46, %v386_v37  ;;  %v1571_v34 = vadd.f32 %v5350_v1, %v387_v38  ;;  %v404_v56 = vld [vmem:[%s2994_s16 + $0x5a0] sm:$0xff]  ;;  %v405_v8 = vld [vmem:[%s2994_s16 + $0x5a8] sm:$0xff]  ;;  %v406_v4 = vld [vmem:[%s2994_s16 + $0x5b0] sm:$0xff]  ;;  %2076 = vst [vmem:[%s3065_s21 + $0x4e0] sm:$0xff] %v1564_v9 }
  0xe7   : > { %v407_v6 = vld [vmem:[%s2994_s16 + $0x5b8] sm:$0xff]  ;;  %2077 = vst [vmem:[%s3065_s21 + $0x4e8] sm:$0xff] %v1565_v55  ;;  %2078 = vst [vmem:[%s3065_s21 + $0x4f0] sm:$0xff] %v1566_v63  ;;  %v5352_v29 = vld [vmem:[#allocation27_spill] sm:$0xff] }
  0xe8   : > { %2079 = vst [vmem:[%s3065_s21 + $0x4f8] sm:$0xff] %v1567_v21  ;;  %v5351_v28 = vld [vmem:[#allocation26_spill] sm:$0xff]  ;;  %v1573_v37 = vadd.f32 %v5352_v29, %v389_v40  ;;  %v5353_v7 = vld [vmem:[#allocation28_spill] sm:$0xff]  ;;  %v5354_v1 = vld [vmem:[#allocation29_spill] sm:$0xff] }
  0xe9   : > { %v1572_v54 = vadd.f32 %v5351_v28, %v388_v36  ;;  %v1574_v38 = vadd.f32 %v5353_v7, %v390_v17  ;;  %v1575_v46 = vadd.f32 %v5354_v1, %v391_v32  ;;  %v408_v45 = vld [vmem:[%s2994_s16 + $0x5c0] sm:$0xff]  ;;  %v409_v0 = vld [vmem:[%s2994_s16 + $0x5c8] sm:$0xff]  ;;  %v410_v9 = vld [vmem:[%s2994_s16 + $0x5d0] sm:$0xff]  ;;  %2080 = vst [vmem:[%s3065_s21 + $0x500] sm:$0xff] %v1568_v57 }
  0xea   : > { %v411_v55 = vld [vmem:[%s2994_s16 + $0x5d8] sm:$0xff]  ;;  %2081 = vst [vmem:[%s3065_s21 + $0x508] sm:$0xff] %v1569_v59  ;;  %2082 = vst [vmem:[%s3065_s21 + $0x510] sm:$0xff] %v1570_v58  ;;  %v5356_v21 = vld [vmem:[#allocation31_spill] sm:$0xff] }
  0xeb   : > { %2083 = vst [vmem:[%s3065_s21 + $0x518] sm:$0xff] %v1571_v34  ;;  %v5355_v36 = vld [vmem:[#allocation30_spill] sm:$0xff]  ;;  %v1577_v17 = vadd.f32 %v5356_v21, %v393_v61  ;;  %v5357_v63 = vld [vmem:[#allocation32_spill] sm:$0xff]  ;;  %v5358_v1 = vld [vmem:[#allocation33_spill] sm:$0xff] }
  0xec   : > { %v1576_v40 = vadd.f32 %v5355_v36, %v392_v60  ;;  %v1578_v32 = vadd.f32 %v5357_v63, %v394_v53  ;;  %v1579_v7 = vadd.f32 %v5358_v1, %v395_v52  ;;  %v412_v29 = vld [vmem:[%s2994_s16 + $0x5e0] sm:$0xff]  ;;  %v413_v28 = vld [vmem:[%s2994_s16 + $0x5e8] sm:$0xff]  ;;  %v414_v57 = vld [vmem:[%s2994_s16 + $0x5f0] sm:$0xff]  ;;  %2084 = vst [vmem:[%s3065_s21 + $0x520] sm:$0xff] %v1572_v54 }
  0xed   : > { %v415_v59 = vld [vmem:[%s2994_s16 + $0x5f8] sm:$0xff]  ;;  %2085 = vst [vmem:[%s3065_s21 + $0x528] sm:$0xff] %v1573_v37  ;;  %2086 = vst [vmem:[%s3065_s21 + $0x530] sm:$0xff] %v1574_v38  ;;  %v5360_v34 = vld [vmem:[#allocation35_spill] sm:$0xff] }
  0xee   : > { %2087 = vst [vmem:[%s3065_s21 + $0x538] sm:$0xff] %v1575_v46  ;;  %v5359_v60 = vld [vmem:[#allocation34_spill] sm:$0xff]  ;;  %v1581_v53 = vadd.f32 %v5360_v34, %v397_v25  ;;  %v5361_v58 = vld [vmem:[#allocation36_spill] sm:$0xff]  ;;  %v5362_v1 = vld [vmem:[#allocation37_spill] sm:$0xff] }
  0xef   : > { %v1580_v61 = vadd.f32 %v5359_v60, %v396_v27  ;;  %v1582_v52 = vadd.f32 %v5361_v58, %v398_v30  ;;  %v1583_v63 = vadd.f32 %v5362_v1, %v399_v35  ;;  %v416_v21 = vld [vmem:[%s2994_s16 + $0x600] sm:$0xff]  ;;  %v417_v36 = vld [vmem:[%s2994_s16 + $0x608] sm:$0xff]  ;;  %v418_v54 = vld [vmem:[%s2994_s16 + $0x610] sm:$0xff]  ;;  %2088 = vst [vmem:[%s3065_s21 + $0x540] sm:$0xff] %v1576_v40 }
  0xf0   : > { %v419_v37 = vld [vmem:[%s2994_s16 + $0x618] sm:$0xff]  ;;  %2089 = vst [vmem:[%s3065_s21 + $0x548] sm:$0xff] %v1577_v17  ;;  %2090 = vst [vmem:[%s3065_s21 + $0x550] sm:$0xff] %v1578_v32  ;;  %v5364_v46 = vld [vmem:[#allocation39_spill] sm:$0xff] }
  0xf1   : > { %2091 = vst [vmem:[%s3065_s21 + $0x558] sm:$0xff] %v1579_v7  ;;  %v5363_v25 = vld [vmem:[#allocation38_spill] sm:$0xff]  ;;  %v1585_v30 = vadd.f32 %v5364_v46, %v401_v47  ;;  %v5365_v38 = vld [vmem:[#allocation40_spill] sm:$0xff]  ;;  %v5366_v1 = vld [vmem:[#allocation41_spill] sm:$0xff] }
  0xf2   : > { %v1584_v27 = vadd.f32 %v5363_v25, %v400_v5  ;;  %v1586_v35 = vadd.f32 %v5365_v38, %v402_v33  ;;  %v1587_v58 = vadd.f32 %v5366_v1, %v403_v62  ;;  %v420_v34 = vld [vmem:[%s2994_s16 + $0x620] sm:$0xff]  ;;  %v421_v60 = vld [vmem:[%s2994_s16 + $0x628] sm:$0xff]  ;;  %v422_v40 = vld [vmem:[%s2994_s16 + $0x630] sm:$0xff]  ;;  %2092 = vst [vmem:[%s3065_s21 + $0x560] sm:$0xff] %v1580_v61 }
  0xf3   : > { %v423_v17 = vld [vmem:[%s2994_s16 + $0x638] sm:$0xff]  ;;  %2093 = vst [vmem:[%s3065_s21 + $0x568] sm:$0xff] %v1581_v53  ;;  %2094 = vst [vmem:[%s3065_s21 + $0x570] sm:$0xff] %v1582_v52  ;;  %v5368_v7 = vld [vmem:[#allocation43_spill] sm:$0xff] }
  0xf4   : > { %2095 = vst [vmem:[%s3065_s21 + $0x578] sm:$0xff] %v1583_v63  ;;  %v5367_v47 = vld [vmem:[#allocation42_spill] sm:$0xff]  ;;  %v1589_v33 = vadd.f32 %v5368_v7, %v405_v8  ;;  %v5369_v32 = vld [vmem:[#allocation44_spill] sm:$0xff]  ;;  %v5370_v1 = vld [vmem:[#allocation45_spill] sm:$0xff] }
  0xf5   : > { %v1588_v5 = vadd.f32 %v5367_v47, %v404_v56  ;;  %v1590_v62 = vadd.f32 %v5369_v32, %v406_v4  ;;  %v1591_v38 = vadd.f32 %v5370_v1, %v407_v6  ;;  %v424_v46 = vld [vmem:[%s2994_s16 + $0x640] sm:$0xff]  ;;  %v425_v25 = vld [vmem:[%s2994_s16 + $0x648] sm:$0xff]  ;;  %v426_v61 = vld [vmem:[%s2994_s16 + $0x650] sm:$0xff]  ;;  %2096 = vst [vmem:[%s3065_s21 + $0x580] sm:$0xff] %v1584_v27 }
  0xf6   : > { %v427_v53 = vld [vmem:[%s2994_s16 + $0x658] sm:$0xff]  ;;  %2097 = vst [vmem:[%s3065_s21 + $0x588] sm:$0xff] %v1585_v30  ;;  %2098 = vst [vmem:[%s3065_s21 + $0x590] sm:$0xff] %v1586_v35  ;;  %v5372_v63 = vld [vmem:[#allocation47_spill] sm:$0xff] }
  0xf7   : > { %2099 = vst [vmem:[%s3065_s21 + $0x598] sm:$0xff] %v1587_v58  ;;  %v5371_v8 = vld [vmem:[#allocation46_spill] sm:$0xff]  ;;  %v1593_v4 = vadd.f32 %v5372_v63, %v409_v0  ;;  %v5373_v52 = vld [vmem:[#allocation48_spill] sm:$0xff]  ;;  %v5374_v1 = vld [vmem:[#allocation49_spill] sm:$0xff] }
  0xf8   : > { %v1592_v56 = vadd.f32 %v5371_v8, %v408_v45  ;;  %v1594_v6 = vadd.f32 %v5373_v52, %v410_v9  ;;  %v1595_v32 = vadd.f32 %v5374_v1, %v411_v55  ;;  %v428_v7 = vld [vmem:[%s2994_s16 + $0x660] sm:$0xff]  ;;  %v429_v47 = vld [vmem:[%s2994_s16 + $0x668] sm:$0xff]  ;;  %v430_v27 = vld [vmem:[%s2994_s16 + $0x670] sm:$0xff]  ;;  %2100 = vst [vmem:[%s3065_s21 + $0x5a0] sm:$0xff] %v1588_v5 }
  0xf9   : > { %v431_v30 = vld [vmem:[%s2994_s16 + $0x678] sm:$0xff]  ;;  %2101 = vst [vmem:[%s3065_s21 + $0x5a8] sm:$0xff] %v1589_v33  ;;  %2102 = vst [vmem:[%s3065_s21 + $0x5b0] sm:$0xff] %v1590_v62  ;;  %v5376_v58 = vld [vmem:[#allocation51_spill] sm:$0xff] }
  0xfa   : > { %2103 = vst [vmem:[%s3065_s21 + $0x5b8] sm:$0xff] %v1591_v38  ;;  %v5375_v0 = vld [vmem:[#allocation50_spill] sm:$0xff]  ;;  %v1597_v9 = vadd.f32 %v5376_v58, %v413_v28  ;;  %v5377_v35 = vld [vmem:[#allocation52_spill] sm:$0xff]  ;;  %v5378_v1 = vld [vmem:[#allocation53_spill] sm:$0xff] }
  0xfb   : > { %v1596_v45 = vadd.f32 %v5375_v0, %v412_v29  ;;  %v1598_v55 = vadd.f32 %v5377_v35, %v414_v57  ;;  %v1599_v52 = vadd.f32 %v5378_v1, %v415_v59  ;;  %v432_v63 = vld [vmem:[%s2994_s16 + $0x680] sm:$0xff]  ;;  %v433_v8 = vld [vmem:[%s2994_s16 + $0x688] sm:$0xff]  ;;  %v434_v5 = vld [vmem:[%s2994_s16 + $0x690] sm:$0xff]  ;;  %2104 = vst [vmem:[%s3065_s21 + $0x5c0] sm:$0xff] %v1592_v56 }
  0xfc   : > { %v435_v33 = vld [vmem:[%s2994_s16 + $0x698] sm:$0xff]  ;;  %2105 = vst [vmem:[%s3065_s21 + $0x5c8] sm:$0xff] %v1593_v4  ;;  %2106 = vst [vmem:[%s3065_s21 + $0x5d0] sm:$0xff] %v1594_v6  ;;  %v5380_v38 = vld [vmem:[#allocation55_spill] sm:$0xff] }
  0xfd   : > { %2107 = vst [vmem:[%s3065_s21 + $0x5d8] sm:$0xff] %v1595_v32  ;;  %v5379_v28 = vld [vmem:[#allocation54_spill] sm:$0xff]  ;;  %v1601_v57 = vadd.f32 %v5380_v38, %v417_v36  ;;  %v5381_v62 = vld [vmem:[#allocation56_spill] sm:$0xff]  ;;  %v5382_v1 = vld [vmem:[#allocation57_spill] sm:$0xff] }
  0xfe   : > { %v1600_v29 = vadd.f32 %v5379_v28, %v416_v21  ;;  %v1602_v59 = vadd.f32 %v5381_v62, %v418_v54  ;;  %v1603_v35 = vadd.f32 %v5382_v1, %v419_v37  ;;  %v436_v58 = vld [vmem:[%s2994_s16 + $0x6a0] sm:$0xff]  ;;  %v437_v0 = vld [vmem:[%s2994_s16 + $0x6a8] sm:$0xff]  ;;  %v438_v56 = vld [vmem:[%s2994_s16 + $0x6b0] sm:$0xff]  ;;  %2108 = vst [vmem:[%s3065_s21 + $0x5e0] sm:$0xff] %v1596_v45 }
  0xff   : > { %v439_v4 = vld [vmem:[%s2994_s16 + $0x6b8] sm:$0xff]  ;;  %2109 = vst [vmem:[%s3065_s21 + $0x5e8] sm:$0xff] %v1597_v9  ;;  %2110 = vst [vmem:[%s3065_s21 + $0x5f0] sm:$0xff] %v1598_v55  ;;  %v5384_v32 = vld [vmem:[#allocation59_spill] sm:$0xff] }
 0x100   : > { %2111 = vst [vmem:[%s3065_s21 + $0x5f8] sm:$0xff] %v1599_v52  ;;  %v5383_v36 = vld [vmem:[#allocation58_spill] sm:$0xff]  ;;  %v1605_v54 = vadd.f32 %v5384_v32, %v421_v60  ;;  %v5385_v6 = vld [vmem:[#allocation60_spill] sm:$0xff]  ;;  %v5386_v1 = vld [vmem:[#allocation61_spill] sm:$0xff] }
 0x101   : > { %v1604_v21 = vadd.f32 %v5383_v36, %v420_v34  ;;  %v1606_v37 = vadd.f32 %v5385_v6, %v422_v40  ;;  %v1607_v62 = vadd.f32 %v5386_v1, %v423_v17  ;;  %v440_v38 = vld [vmem:[%s2994_s16 + $0x6c0] sm:$0xff]  ;;  %v441_v28 = vld [vmem:[%s2994_s16 + $0x6c8] sm:$0xff]  ;;  %v442_v45 = vld [vmem:[%s2994_s16 + $0x6d0] sm:$0xff]  ;;  %2112 = vst [vmem:[%s3065_s21 + $0x600] sm:$0xff] %v1600_v29 }
 0x102   : > { %v443_v9 = vld [vmem:[%s2994_s16 + $0x6d8] sm:$0xff]  ;;  %2113 = vst [vmem:[%s3065_s21 + $0x608] sm:$0xff] %v1601_v57  ;;  %2114 = vst [vmem:[%s3065_s21 + $0x610] sm:$0xff] %v1602_v59  ;;  %v5388_v52 = vld [vmem:[#allocation63_spill] sm:$0xff] }
 0x103   : > { %2115 = vst [vmem:[%s3065_s21 + $0x618] sm:$0xff] %v1603_v35  ;;  %v5387_v60 = vld [vmem:[#allocation62_spill] sm:$0xff]  ;;  %v1609_v40 = vadd.f32 %v5388_v52, %v425_v25  ;;  %v5389_v55 = vld [vmem:[#allocation64_spill] sm:$0xff]  ;;  %v5390_v1 = vld [vmem:[#allocation65_spill] sm:$0xff] }
 0x104   : > { %v1608_v34 = vadd.f32 %v5387_v60, %v424_v46  ;;  %v1610_v17 = vadd.f32 %v5389_v55, %v426_v61  ;;  %v1611_v6 = vadd.f32 %v5390_v1, %v427_v53  ;;  %v444_v32 = vld [vmem:[%s2994_s16 + $0x6e0] sm:$0xff]  ;;  %v445_v36 = vld [vmem:[%s2994_s16 + $0x6e8] sm:$0xff]  ;;  %v446_v29 = vld [vmem:[%s2994_s16 + $0x6f0] sm:$0xff]  ;;  %2116 = vst [vmem:[%s3065_s21 + $0x620] sm:$0xff] %v1604_v21 }
 0x105   : > { %v447_v57 = vld [vmem:[%s2994_s16 + $0x6f8] sm:$0xff]  ;;  %2117 = vst [vmem:[%s3065_s21 + $0x628] sm:$0xff] %v1605_v54  ;;  %2118 = vst [vmem:[%s3065_s21 + $0x630] sm:$0xff] %v1606_v37  ;;  %v5392_v35 = vld [vmem:[#allocation67_spill] sm:$0xff] }
 0x106   : > { %2119 = vst [vmem:[%s3065_s21 + $0x638] sm:$0xff] %v1607_v62  ;;  %v5391_v25 = vld [vmem:[#allocation66_spill] sm:$0xff]  ;;  %v1613_v61 = vadd.f32 %v5392_v35, %v429_v47  ;;  %v5393_v59 = vld [vmem:[#allocation68_spill] sm:$0xff]  ;;  %v5394_v1 = vld [vmem:[#allocation69_spill] sm:$0xff] }
 0x107   : > { %v1612_v46 = vadd.f32 %v5391_v25, %v428_v7  ;;  %v1614_v53 = vadd.f32 %v5393_v59, %v430_v27  ;;  %v1615_v55 = vadd.f32 %v5394_v1, %v431_v30  ;;  %v448_v52 = vld [vmem:[%s2994_s16 + $0x700] sm:$0xff]  ;;  %v449_v60 = vld [vmem:[%s2994_s16 + $0x708] sm:$0xff]  ;;  %v450_v21 = vld [vmem:[%s2994_s16 + $0x710] sm:$0xff]  ;;  %2120 = vst [vmem:[%s3065_s21 + $0x640] sm:$0xff] %v1608_v34 }
 0x108   : > { %v451_v54 = vld [vmem:[%s2994_s16 + $0x718] sm:$0xff]  ;;  %2121 = vst [vmem:[%s3065_s21 + $0x648] sm:$0xff] %v1609_v40  ;;  %2122 = vst [vmem:[%s3065_s21 + $0x650] sm:$0xff] %v1610_v17  ;;  %v5396_v62 = vld [vmem:[#allocation71_spill] sm:$0xff] }
 0x109   : > { %2123 = vst [vmem:[%s3065_s21 + $0x658] sm:$0xff] %v1611_v6  ;;  %v5395_v47 = vld [vmem:[#allocation70_spill] sm:$0xff]  ;;  %v1617_v27 = vadd.f32 %v5396_v62, %v433_v8  ;;  %v5397_v37 = vld [vmem:[#allocation72_spill] sm:$0xff]  ;;  %v5398_v1 = vld [vmem:[#allocation73_spill] sm:$0xff] }
 0x10a   : > { %v1616_v7 = vadd.f32 %v5395_v47, %v432_v63  ;;  %v1618_v30 = vadd.f32 %v5397_v37, %v434_v5  ;;  %v1619_v59 = vadd.f32 %v5398_v1, %v435_v33  ;;  %v452_v35 = vld [vmem:[%s2994_s16 + $0x720] sm:$0xff]  ;;  %v453_v25 = vld [vmem:[%s2994_s16 + $0x728] sm:$0xff]  ;;  %v454_v34 = vld [vmem:[%s2994_s16 + $0x730] sm:$0xff]  ;;  %2124 = vst [vmem:[%s3065_s21 + $0x660] sm:$0xff] %v1612_v46 }
 0x10b   : > { %v455_v40 = vld [vmem:[%s2994_s16 + $0x738] sm:$0xff]  ;;  %2125 = vst [vmem:[%s3065_s21 + $0x668] sm:$0xff] %v1613_v61  ;;  %2126 = vst [vmem:[%s3065_s21 + $0x670] sm:$0xff] %v1614_v53  ;;  %v5400_v6 = vld [vmem:[#allocation75_spill] sm:$0xff] }
 0x10c   : > { %2127 = vst [vmem:[%s3065_s21 + $0x678] sm:$0xff] %v1615_v55  ;;  %v5399_v8 = vld [vmem:[#allocation74_spill] sm:$0xff]  ;;  %v1621_v5 = vadd.f32 %v5400_v6, %v437_v0  ;;  %v5401_v17 = vld [vmem:[#allocation76_spill] sm:$0xff]  ;;  %v5402_v1 = vld [vmem:[#allocation77_spill] sm:$0xff] }
 0x10d   : > { %v1620_v63 = vadd.f32 %v5399_v8, %v436_v58  ;;  %v1622_v33 = vadd.f32 %v5401_v17, %v438_v56  ;;  %v1623_v37 = vadd.f32 %v5402_v1, %v439_v4  ;;  %v456_v62 = vld [vmem:[%s2994_s16 + $0x740] sm:$0xff]  ;;  %v457_v47 = vld [vmem:[%s2994_s16 + $0x748] sm:$0xff]  ;;  %v458_v46 = vld [vmem:[%s2994_s16 + $0x750] sm:$0xff]  ;;  %2128 = vst [vmem:[%s3065_s21 + $0x680] sm:$0xff] %v1616_v7 }
 0x10e   : > { %v459_v61 = vld [vmem:[%s2994_s16 + $0x758] sm:$0xff]  ;;  %2129 = vst [vmem:[%s3065_s21 + $0x688] sm:$0xff] %v1617_v27  ;;  %2130 = vst [vmem:[%s3065_s21 + $0x690] sm:$0xff] %v1618_v30  ;;  %v5404_v55 = vld [vmem:[#allocation79_spill] sm:$0xff] }
 0x10f   : > { %2131 = vst [vmem:[%s3065_s21 + $0x698] sm:$0xff] %v1619_v59  ;;  %v5403_v0 = vld [vmem:[#allocation78_spill] sm:$0xff]  ;;  %v1625_v56 = vadd.f32 %v5404_v55, %v441_v28  ;;  %v5405_v53 = vld [vmem:[#allocation80_spill] sm:$0xff]  ;;  %v5406_v1 = vld [vmem:[#allocation81_spill] sm:$0xff] }
 0x110   : > { %v1624_v58 = vadd.f32 %v5403_v0, %v440_v38  ;;  %v1626_v4 = vadd.f32 %v5405_v53, %v442_v45  ;;  %v1627_v17 = vadd.f32 %v5406_v1, %v443_v9  ;;  %v460_v6 = vld [vmem:[%s2994_s16 + $0x760] sm:$0xff]  ;;  %v461_v8 = vld [vmem:[%s2994_s16 + $0x768] sm:$0xff]  ;;  %v462_v7 = vld [vmem:[%s2994_s16 + $0x770] sm:$0xff]  ;;  %2132 = vst [vmem:[%s3065_s21 + $0x6a0] sm:$0xff] %v1620_v63 }
 0x111   : > { %v463_v27 = vld [vmem:[%s2994_s16 + $0x778] sm:$0xff]  ;;  %2133 = vst [vmem:[%s3065_s21 + $0x6a8] sm:$0xff] %v1621_v5  ;;  %2134 = vst [vmem:[%s3065_s21 + $0x6b0] sm:$0xff] %v1622_v33  ;;  %v5408_v59 = vld [vmem:[#allocation83_spill] sm:$0xff] }
 0x112   : > { %2135 = vst [vmem:[%s3065_s21 + $0x6b8] sm:$0xff] %v1623_v37  ;;  %v5407_v28 = vld [vmem:[#allocation82_spill] sm:$0xff]  ;;  %v1629_v45 = vadd.f32 %v5408_v59, %v445_v36  ;;  %v5409_v30 = vld [vmem:[#allocation84_spill] sm:$0xff]  ;;  %v5410_v1 = vld [vmem:[#allocation85_spill] sm:$0xff] }
 0x113   : > { %v1628_v38 = vadd.f32 %v5407_v28, %v444_v32  ;;  %v1630_v9 = vadd.f32 %v5409_v30, %v446_v29  ;;  %v1631_v53 = vadd.f32 %v5410_v1, %v447_v57  ;;  %v464_v55 = vld [vmem:[%s2994_s16 + $0x780] sm:$0xff]  ;;  %v465_v0 = vld [vmem:[%s2994_s16 + $0x788] sm:$0xff]  ;;  %v466_v63 = vld [vmem:[%s2994_s16 + $0x790] sm:$0xff]  ;;  %2136 = vst [vmem:[%s3065_s21 + $0x6c0] sm:$0xff] %v1624_v58 }
 0x114   : > { %v467_v5 = vld [vmem:[%s2994_s16 + $0x798] sm:$0xff]  ;;  %2137 = vst [vmem:[%s3065_s21 + $0x6c8] sm:$0xff] %v1625_v56  ;;  %2138 = vst [vmem:[%s3065_s21 + $0x6d0] sm:$0xff] %v1626_v4  ;;  %v5412_v37 = vld [vmem:[#allocation87_spill] sm:$0xff] }
 0x115   : > { %2139 = vst [vmem:[%s3065_s21 + $0x6d8] sm:$0xff] %v1627_v17  ;;  %v5411_v36 = vld [vmem:[#allocation86_spill] sm:$0xff]  ;;  %v1633_v29 = vadd.f32 %v5412_v37, %v449_v60  ;;  %v5413_v33 = vld [vmem:[#allocation88_spill] sm:$0xff]  ;;  %v5414_v1 = vld [vmem:[#allocation89_spill] sm:$0xff] }
 0x116   : > { %v1632_v32 = vadd.f32 %v5411_v36, %v448_v52  ;;  %v1634_v57 = vadd.f32 %v5413_v33, %v450_v21  ;;  %v1635_v30 = vadd.f32 %v5414_v1, %v451_v54  ;;  %v468_v59 = vld [vmem:[%s2994_s16 + $0x7a0] sm:$0xff]  ;;  %v469_v28 = vld [vmem:[%s2994_s16 + $0x7a8] sm:$0xff]  ;;  %v470_v58 = vld [vmem:[%s2994_s16 + $0x7b0] sm:$0xff]  ;;  %2140 = vst [vmem:[%s3065_s21 + $0x6e0] sm:$0xff] %v1628_v38 }
 0x117   : > { %v471_v56 = vld [vmem:[%s2994_s16 + $0x7b8] sm:$0xff]  ;;  %2141 = vst [vmem:[%s3065_s21 + $0x6e8] sm:$0xff] %v1629_v45  ;;  %2142 = vst [vmem:[%s3065_s21 + $0x6f0] sm:$0xff] %v1630_v9  ;;  %v5416_v17 = vld [vmem:[#allocation91_spill] sm:$0xff] }
 0x118   : > { %2143 = vst [vmem:[%s3065_s21 + $0x6f8] sm:$0xff] %v1631_v53  ;;  %v5415_v60 = vld [vmem:[#allocation90_spill] sm:$0xff]  ;;  %v1637_v21 = vadd.f32 %v5416_v17, %v453_v25  ;;  %v5417_v4 = vld [vmem:[#allocation92_spill] sm:$0xff]  ;;  %v5418_v1 = vld [vmem:[#allocation93_spill] sm:$0xff] }
 0x119   : > { %v1636_v52 = vadd.f32 %v5415_v60, %v452_v35  ;;  %v1638_v54 = vadd.f32 %v5417_v4, %v454_v34  ;;  %v1639_v33 = vadd.f32 %v5418_v1, %v455_v40  ;;  %v472_v37 = vld [vmem:[%s2994_s16 + $0x7c0] sm:$0xff]  ;;  %v473_v36 = vld [vmem:[%s2994_s16 + $0x7c8] sm:$0xff]  ;;  %v474_v38 = vld [vmem:[%s2994_s16 + $0x7d0] sm:$0xff]  ;;  %2144 = vst [vmem:[%s3065_s21 + $0x700] sm:$0xff] %v1632_v32 }
 0x11a   : > { %v475_v45 = vld [vmem:[%s2994_s16 + $0x7d8] sm:$0xff]  ;;  %2145 = vst [vmem:[%s3065_s21 + $0x708] sm:$0xff] %v1633_v29  ;;  %2146 = vst [vmem:[%s3065_s21 + $0x710] sm:$0xff] %v1634_v57  ;;  %v5420_v53 = vld [vmem:[#allocation95_spill] sm:$0xff] }
 0x11b   : > { %2147 = vst [vmem:[%s3065_s21 + $0x718] sm:$0xff] %v1635_v30  ;;  %v5419_v25 = vld [vmem:[#allocation94_spill] sm:$0xff]  ;;  %v1641_v34 = vadd.f32 %v5420_v53, %v457_v47  ;;  %v5421_v9 = vld [vmem:[#allocation96_spill] sm:$0xff]  ;;  %v5422_v1 = vld [vmem:[#allocation97_spill] sm:$0xff] }
 0x11c   : > { %v1640_v35 = vadd.f32 %v5419_v25, %v456_v62  ;;  %v1642_v40 = vadd.f32 %v5421_v9, %v458_v46  ;;  %v1643_v4 = vadd.f32 %v5422_v1, %v459_v61  ;;  %v476_v17 = vld [vmem:[%s2994_s16 + $0x7e0] sm:$0xff]  ;;  %v477_v60 = vld [vmem:[%s2994_s16 + $0x7e8] sm:$0xff]  ;;  %v478_v32 = vld [vmem:[%s2994_s16 + $0x7f0] sm:$0xff]  ;;  %2148 = vst [vmem:[%s3065_s21 + $0x720] sm:$0xff] %v1636_v52 }
 0x11d   : > { %v479_v29 = vld [vmem:[%s2994_s16 + $0x7f8] sm:$0xff]  ;;  %2149 = vst [vmem:[%s3065_s21 + $0x728] sm:$0xff] %v1637_v21  ;;  %2150 = vst [vmem:[%s3065_s21 + $0x730] sm:$0xff] %v1638_v54  ;;  %v5424_v30 = vld [vmem:[#allocation99_spill] sm:$0xff] }
 0x11e   : > { %2151 = vst [vmem:[%s3065_s21 + $0x738] sm:$0xff] %v1639_v33  ;;  %v5423_v47 = vld [vmem:[#allocation98_spill] sm:$0xff]  ;;  %v1645_v46 = vadd.f32 %v5424_v30, %v461_v8  ;;  %v5425_v57 = vld [vmem:[#allocation100_spill] sm:$0xff]  ;;  %v5426_v1 = vld [vmem:[#allocation101_spill] sm:$0xff]  ;;  %v1648_v8 = vadd.f32 %v3710_v19, %v464_v55 }
 0x11f   : > { %v1644_v62 = vadd.f32 %v5423_v47, %v460_v6  ;;  %v1646_v61 = vadd.f32 %v5425_v57, %v462_v7  ;;  %v1647_v9 = vadd.f32 %v5426_v1, %v463_v27  ;;  %v480_v53 = vld [vmem:[%s2994_s16 + $0x800] sm:$0xff]  ;;  %v481_v25 = vld [vmem:[%s2994_s16 + $0x808] sm:$0xff]  ;;  %v482_v52 = vld [vmem:[%s2994_s16 + $0x810] sm:$0xff]  ;;  %2152 = vst [vmem:[%s3065_s21 + $0x740] sm:$0xff] %v1640_v35 }
 0x120   : > { %v483_v21 = vld [vmem:[%s2994_s16 + $0x818] sm:$0xff]  ;;  %2153 = vst [vmem:[%s3065_s21 + $0x748] sm:$0xff] %v1641_v34  ;;  %2154 = vst [vmem:[%s3065_s21 + $0x750] sm:$0xff] %v1642_v40  ;;  %v5427_v6 = vld [vmem:[#allocation103_spill] sm:$0xff] }
 0x121   : > { %2155 = vst [vmem:[%s3065_s21 + $0x758] sm:$0xff] %v1643_v4  ;;  %v1649_v7 = vadd.f32 %v5427_v6, %v465_v0  ;;  %v5428_v33 = vld [vmem:[#allocation104_spill] sm:$0xff]  ;;  %v5429_v54 = vld [vmem:[#allocation105_spill] sm:$0xff]  ;;  %v484_v57 = vld [vmem:[%s2994_s16 + $0x820] sm:$0xff] }
 0x122   : > { %v1650_v27 = vadd.f32 %v5428_v33, %v466_v63  ;;  %v1651_v1 = vadd.f32 %v5429_v54, %v467_v5  ;;  %v485_v30 = vld [vmem:[%s2994_s16 + $0x828] sm:$0xff]  ;;  %v486_v35 = vld [vmem:[%s2994_s16 + $0x830] sm:$0xff]  ;;  %v487_v34 = vld [vmem:[%s2994_s16 + $0x838] sm:$0xff]  ;;  %2156 = vst [vmem:[%s3065_s21 + $0x760] sm:$0xff] %v1644_v62 }
 0x123   : > { %2157 = vst [vmem:[%s3065_s21 + $0x768] sm:$0xff] %v1645_v46  ;;  %2158 = vst [vmem:[%s3065_s21 + $0x770] sm:$0xff] %v1646_v61  ;;  %v5430_v0 = vld [vmem:[#allocation106_spill] sm:$0xff]  ;;  %v5431_v4 = vld [vmem:[#allocation107_spill] sm:$0xff] }
 0x124   : > { %2159 = vst [vmem:[%s3065_s21 + $0x778] sm:$0xff] %v1647_v9  ;;  %v1652_v55 = vadd.f32 %v5430_v0, %v468_v59  ;;  %v1653_v63 = vadd.f32 %v5431_v4, %v469_v28  ;;  %v5432_v40 = vld [vmem:[#allocation108_spill] sm:$0xff]  ;;  %v5433_v54 = vld [vmem:[#allocation109_spill] sm:$0xff]  ;;  %v488_v6 = vld [vmem:[%s2994_s16 + $0x840] sm:$0xff]  ;;  %v1656_v28 = vadd.f32 %v3765_v39, %v472_v37  ;;  %v1657_v59 = vadd.f32 %v3768_v31, %v473_v36 }
 0x125   : > { %v1654_v5 = vadd.f32 %v5432_v40, %v470_v58  ;;  %v1655_v33 = vadd.f32 %v5433_v54, %v471_v56  ;;  %v489_v19 = vld [vmem:[%s2994_s16 + $0x848] sm:$0xff]  ;;  %v490_v62 = vld [vmem:[%s2994_s16 + $0x850] sm:$0xff]  ;;  %v491_v46 = vld [vmem:[%s2994_s16 + $0x858] sm:$0xff]  ;;  %2160 = vst [vmem:[%s3065_s21 + $0x780] sm:$0xff] %v1648_v8  ;;  %v1661_v36 = vadd.f32 %v3788_v3, %v477_v60  ;;  %v1665_v60 = vadd.f32 %v3023_v14, %v481_v25 }
 0x126   : > { %2161 = vst [vmem:[%s3065_s21 + $0x788] sm:$0xff] %v1649_v7  ;;  %2162 = vst [vmem:[%s3065_s21 + $0x790] sm:$0xff] %v1650_v27  ;;  %v5434_v58 = vld [vmem:[#allocation111_spill] sm:$0xff]  ;;  %v5435_v9 = vld [vmem:[#allocation112_spill] sm:$0xff]  ;;  %v1669_v25 = vadd.f32 %v3039_v22, %v485_v30  ;;  %v1673_v30 = vadd.f32 %v3075_v42, %v489_v19 }
 0x127   : > { %2163 = vst [vmem:[%s3065_s21 + $0x798] sm:$0xff] %v1651_v1  ;;  %v1658_v56 = vadd.f32 %v5434_v58, %v474_v38  ;;  %v1659_v61 = vadd.f32 %v5435_v9, %v475_v45  ;;  %v492_v54 = vld [vmem:[%s2994_s16 + $0x860] sm:$0xff]  ;;  %v493_v40 = vld [vmem:[%s2994_s16 + $0x868] sm:$0xff]  ;;  %v494_v8 = vld [vmem:[%s2994_s16 + $0x870] sm:$0xff]  ;;  %v1660_v1 = vadd.f32 %v3785_v2, %v476_v17  ;;  %v1664_v17 = vadd.f32 %v3020_v13, %v480_v53 }
 0x128   : > { %v495_v7 = vld [vmem:[%s2994_s16 + $0x878] sm:$0xff]  ;;  %2164 = vst [vmem:[%s3065_s21 + $0x7a0] sm:$0xff] %v1652_v55  ;;  %2165 = vst [vmem:[%s3065_s21 + $0x7a8] sm:$0xff] %v1653_v63  ;;  %v5436_v37 = vld [vmem:[#allocation113_spill] sm:$0xff]  ;;  %v1668_v53 = vadd.f32 %v3035_v20, %v484_v57  ;;  %v1672_v57 = vadd.f32 %v3072_v41, %v488_v6  ;;  %v1676_v6 = vadd.f32 %v3091_v48, %v492_v54 }
 0x129   : > { %2166 = vst [vmem:[%s3065_s21 + $0x7b0] sm:$0xff] %v1654_v5  ;;  %2167 = vst [vmem:[%s3065_s21 + $0x7b8] sm:$0xff] %v1655_v33  ;;  %v1662_v38 = vadd.f32 %v5436_v37, %v478_v32  ;;  %v5437_v45 = vld [vmem:[#allocation114_spill] sm:$0xff]  ;;  %v496_v9 = vld [vmem:[%s2994_s16 + $0x880] sm:$0xff]  ;;  %v1666_v32 = vadd.f32 %v3027_v16, %v482_v52  ;;  %v1670_v52 = vadd.f32 %v3043_v24, %v486_v35 }
 0x12a   : > { %v1663_v27 = vadd.f32 %v5437_v45, %v479_v29  ;;  %v497_v58 = vld [vmem:[%s2994_s16 + $0x888] sm:$0xff]  ;;  %v498_v55 = vld [vmem:[%s2994_s16 + $0x890] sm:$0xff]  ;;  %2168 = vst [vmem:[%s3065_s21 + $0x7c0] sm:$0xff] %v1656_v28  ;;  %2169 = vst [vmem:[%s3065_s21 + $0x7c8] sm:$0xff] %v1657_v59  ;;  %v1667_v29 = vadd.f32 %v3031_v18, %v483_v21  ;;  %v1671_v21 = vadd.f32 %v3047_v26, %v487_v34 }
 0x12b   : > { %2170 = vst [vmem:[%s3065_s21 + $0x7d0] sm:$0xff] %v1658_v56  ;;  %2171 = vst [vmem:[%s3065_s21 + $0x7d8] sm:$0xff] %v1659_v61  ;;  %v499_v33 = vld [vmem:[%s2994_s16 + $0x898] sm:$0xff]  ;;  %v500_v63 = vld [vmem:[%s2994_s16 + $0x8a0] sm:$0xff]  ;;  %v1674_v35 = vadd.f32 %v3078_v43, %v490_v62  ;;  %v1675_v34 = vadd.f32 %v3081_v44, %v491_v46  ;;  %v1677_v19 = vadd.f32 %v3094_v49, %v493_v40 }
 0x12c   : > { %v501_v5 = vld [vmem:[%s2994_s16 + $0x8a8] sm:$0xff]  ;;  %2172 = vst [vmem:[%s3065_s21 + $0x7e0] sm:$0xff] %v1660_v1  ;;  %2173 = vst [vmem:[%s3065_s21 + $0x7e8] sm:$0xff] %v1661_v36  ;;  %v502_v28 = vld [vmem:[%s2994_s16 + $0x8b0] sm:$0xff]  ;;  %v1678_v62 = vadd.f32 %v3097_v50, %v494_v8  ;;  %v1679_v46 = vadd.f32 %v3100_v51, %v495_v7  ;;  %v1680_v54 = vadd.f32 %v3121_v10, %v496_v9 }
 0x12d   : > { %2174 = vst [vmem:[%s3065_s21 + $0x7f0] sm:$0xff] %v1662_v38  ;;  %2175 = vst [vmem:[%s3065_s21 + $0x7f8] sm:$0xff] %v1663_v27  ;;  %v503_v59 = vld [vmem:[%s2994_s16 + $0x8b8] sm:$0xff]  ;;  %v504_v56 = vld [vmem:[%s2994_s16 + $0x8c0] sm:$0xff]  ;;  %v1681_v40 = vadd.f32 %v3124_v11, %v497_v58  ;;  %v1682_v8 = vadd.f32 %v3127_v12, %v498_v55  ;;  %v1683_v7 = vadd.f32 %v3130_v15, %v499_v33 }
 0x12e   : > { %2176 = vst [vmem:[%s3065_s21 + $0x800] sm:$0xff] %v1664_v17  ;;  %2177 = vst [vmem:[%s3065_s21 + $0x808] sm:$0xff] %v1665_v60  ;;  %v505_v61 = vld [vmem:[%s2994_s16 + $0x8c8] sm:$0xff]  ;;  %v506_v1 = vld [vmem:[%s2994_s16 + $0x8d0] sm:$0xff]  ;;  %v1684_v9 = vadd.f32 %v3140_v23, %v500_v63 }
 0x12f   : > { %2178 = vst [vmem:[%s3065_s21 + $0x810] sm:$0xff] %v1666_v32  ;;  %2179 = vst [vmem:[%s3065_s21 + $0x818] sm:$0xff] %v1667_v29  ;;  %v507_v36 = vld [vmem:[%s2994_s16 + $0x8d8] sm:$0xff]  ;;  %v508_v38 = vld [vmem:[%s2994_s16 + $0x8e0] sm:$0xff] }
 0x130   : > { %2180 = vst [vmem:[%s3065_s21 + $0x820] sm:$0xff] %v1668_v53  ;;  %2181 = vst [vmem:[%s3065_s21 + $0x828] sm:$0xff] %v1669_v25  ;;  %v509_v27 = vld [vmem:[%s2994_s16 + $0x8e8] sm:$0xff]  ;;  %v510_v17 = vld [vmem:[%s2994_s16 + $0x8f0] sm:$0xff] }
 0x131   : > { %2182 = vst [vmem:[%s3065_s21 + $0x830] sm:$0xff] %v1670_v52  ;;  %2183 = vst [vmem:[%s3065_s21 + $0x838] sm:$0xff] %v1671_v21  ;;  %v511_v60 = vld [vmem:[%s2994_s16 + $0x8f8] sm:$0xff]  ;;  %v512_v32 = vld [vmem:[%s2994_s16 + $0x900] sm:$0xff] }
 0x132   : > { %2184 = vst [vmem:[%s3065_s21 + $0x840] sm:$0xff] %v1672_v57  ;;  %2185 = vst [vmem:[%s3065_s21 + $0x848] sm:$0xff] %v1673_v30  ;;  %v513_v29 = vld [vmem:[%s2994_s16 + $0x908] sm:$0xff]  ;;  %v5438_v58 = vld [vmem:[#allocation11_spill] sm:$0xff] }
 0x133   : > { %2186 = vst [vmem:[%s3065_s21 + $0x850] sm:$0xff] %v1674_v35  ;;  %2187 = vst [vmem:[%s3065_s21 + $0x858] sm:$0xff] %v1675_v34  ;;  %v1685_v53 = vadd.f32 %v5438_v58, %v501_v5  ;;  %v5439_v55 = vld [vmem:[#allocation12_spill] sm:$0xff]  ;;  %v5440_v33 = vld [vmem:[#allocation13_spill] sm:$0xff] }
 0x134   : > { %2188 = vst [vmem:[%s3065_s21 + $0x860] sm:$0xff] %v1676_v6  ;;  %2189 = vst [vmem:[%s3065_s21 + $0x868] sm:$0xff] %v1677_v19  ;;  %v1686_v25 = vadd.f32 %v5439_v55, %v502_v28  ;;  %v1687_v52 = vadd.f32 %v5440_v33, %v503_v59  ;;  %v514_v21 = vld [vmem:[%s2994_s16 + $0x910] sm:$0xff]  ;;  %v515_v57 = vld [vmem:[%s2994_s16 + $0x918] sm:$0xff] }
 0x135   : > { %2190 = vst [vmem:[%s3065_s21 + $0x870] sm:$0xff] %v1678_v62  ;;  %2191 = vst [vmem:[%s3065_s21 + $0x878] sm:$0xff] %v1679_v46  ;;  %v516_v30 = vld [vmem:[%s2994_s16 + $0x920] sm:$0xff]  ;;  %v5441_v63 = vld [vmem:[#allocation14_spill] sm:$0xff] }
 0x136   : > { %2192 = vst [vmem:[%s3065_s21 + $0x880] sm:$0xff] %v1680_v54  ;;  %2193 = vst [vmem:[%s3065_s21 + $0x888] sm:$0xff] %v1681_v40  ;;  %v1688_v35 = vadd.f32 %v5441_v63, %v504_v56  ;;  %v5442_v5 = vld [vmem:[#allocation15_spill] sm:$0xff]  ;;  %v5443_v28 = vld [vmem:[#allocation16_spill] sm:$0xff] }
 0x137   : > { %2194 = vst [vmem:[%s3065_s21 + $0x890] sm:$0xff] %v1682_v8  ;;  %2195 = vst [vmem:[%s3065_s21 + $0x898] sm:$0xff] %v1683_v7  ;;  %v1689_v34 = vadd.f32 %v5442_v5, %v505_v61  ;;  %v1690_v6 = vadd.f32 %v5443_v28, %v506_v1  ;;  %v5444_v59 = vld [vmem:[#allocation17_spill] sm:$0xff]  ;;  %v517_v62 = vld [vmem:[%s2994_s16 + $0x928] sm:$0xff] }
 0x138   : > { %v1691_v19 = vadd.f32 %v5444_v59, %v507_v36  ;;  %v518_v46 = vld [vmem:[%s2994_s16 + $0x930] sm:$0xff]  ;;  %v519_v54 = vld [vmem:[%s2994_s16 + $0x938] sm:$0xff]  ;;  %2196 = vst [vmem:[%s3065_s21 + $0x8a0] sm:$0xff] %v1684_v9  ;;  %2197 = vst [vmem:[%s3065_s21 + $0x8a8] sm:$0xff] %v1685_v53 }
 0x139   : > { %2198 = vst [vmem:[%s3065_s21 + $0x8b0] sm:$0xff] %v1686_v25  ;;  %2199 = vst [vmem:[%s3065_s21 + $0x8b8] sm:$0xff] %v1687_v52  ;;  %v5445_v56 = vld [vmem:[#allocation18_spill] sm:$0xff]  ;;  %v5446_v61 = vld [vmem:[#allocation19_spill] sm:$0xff] }
 0x13a   : > { %v1692_v40 = vadd.f32 %v5445_v56, %v508_v38  ;;  %v1693_v8 = vadd.f32 %v5446_v61, %v509_v27  ;;  %v5447_v1 = vld [vmem:[#allocation20_spill] sm:$0xff]  ;;  %v5448_v36 = vld [vmem:[#allocation21_spill] sm:$0xff]  ;;  %v520_v28 = vld [vmem:[%s2994_s16 + $0x940] sm:$0xff]  ;;  %2200 = vst [vmem:[%s3065_s21 + $0x8c0] sm:$0xff] %v1688_v35 }
 0x13b   : > { %v1694_v7 = vadd.f32 %v5447_v1, %v510_v17  ;;  %v1695_v59 = vadd.f32 %v5448_v36, %v511_v60  ;;  %v521_v5 = vld [vmem:[%s2994_s16 + $0x948] sm:$0xff]  ;;  %v522_v9 = vld [vmem:[%s2994_s16 + $0x950] sm:$0xff]  ;;  %2201 = vst [vmem:[%s3065_s21 + $0x8c8] sm:$0xff] %v1689_v34  ;;  %2202 = vst [vmem:[%s3065_s21 + $0x8d0] sm:$0xff] %v1690_v6 }
 0x13c   : > { %2203 = vst [vmem:[%s3065_s21 + $0x8d8] sm:$0xff] %v1691_v19  ;;  %v5449_v38 = vld [vmem:[#allocation22_spill] sm:$0xff]  ;;  %v5450_v27 = vld [vmem:[#allocation23_spill] sm:$0xff]  ;;  %v5451_v17 = vld [vmem:[#allocation24_spill] sm:$0xff] }
 0x13d   : > { %v1696_v53 = vadd.f32 %v5449_v38, %v512_v32  ;;  %v1697_v25 = vadd.f32 %v5450_v27, %v513_v29  ;;  %v1698_v52 = vadd.f32 %v5451_v17, %v514_v21  ;;  %v5452_v60 = vld [vmem:[#allocation25_spill] sm:$0xff]  ;;  %v523_v1 = vld [vmem:[%s2994_s16 + $0x958] sm:$0xff]  ;;  %v524_v61 = vld [vmem:[%s2994_s16 + $0x960] sm:$0xff]  ;;  %2204 = vst [vmem:[%s3065_s21 + $0x8e0] sm:$0xff] %v1692_v40 }
 0x13e   : > { %v1699_v36 = vadd.f32 %v5452_v60, %v515_v57  ;;  %v525_v35 = vld [vmem:[%s2994_s16 + $0x968] sm:$0xff]  ;;  %2205 = vst [vmem:[%s3065_s21 + $0x8e8] sm:$0xff] %v1693_v8  ;;  %2206 = vst [vmem:[%s3065_s21 + $0x8f0] sm:$0xff] %v1694_v7  ;;  %v5453_v32 = vld [vmem:[#allocation26_spill] sm:$0xff] }
 0x13f   : > { %2207 = vst [vmem:[%s3065_s21 + $0x8f8] sm:$0xff] %v1695_v59  ;;  %v1700_v34 = vadd.f32 %v5453_v32, %v516_v30  ;;  %v5454_v29 = vld [vmem:[#allocation27_spill] sm:$0xff]  ;;  %v5455_v21 = vld [vmem:[#allocation28_spill] sm:$0xff]  ;;  %v5456_v57 = vld [vmem:[#allocation29_spill] sm:$0xff] }
 0x140   : > { %v1701_v6 = vadd.f32 %v5454_v29, %v517_v62  ;;  %v1702_v19 = vadd.f32 %v5455_v21, %v518_v46  ;;  %v1703_v60 = vadd.f32 %v5456_v57, %v519_v54  ;;  %v526_v17 = vld [vmem:[%s2994_s16 + $0x970] sm:$0xff]  ;;  %v527_v27 = vld [vmem:[%s2994_s16 + $0x978] sm:$0xff]  ;;  %v528_v40 = vld [vmem:[%s2994_s16 + $0x980] sm:$0xff]  ;;  %2208 = vst [vmem:[%s3065_s21 + $0x900] sm:$0xff] %v1696_v53 }
 0x141   : > { %2209 = vst [vmem:[%s3065_s21 + $0x908] sm:$0xff] %v1697_v25  ;;  %2210 = vst [vmem:[%s3065_s21 + $0x910] sm:$0xff] %v1698_v52  ;;  %v5457_v30 = vld [vmem:[#allocation30_spill] sm:$0xff]  ;;  %v5458_v62 = vld [vmem:[#allocation31_spill] sm:$0xff] }
 0x142   : > { %2211 = vst [vmem:[%s3065_s21 + $0x918] sm:$0xff] %v1699_v36  ;;  %v1704_v59 = vadd.f32 %v5457_v30, %v520_v28  ;;  %v1705_v8 = vadd.f32 %v5458_v62, %v521_v5  ;;  %v5459_v46 = vld [vmem:[#allocation32_spill] sm:$0xff]  ;;  %v5460_v54 = vld [vmem:[#allocation33_spill] sm:$0xff]  ;;  %v531_v53 = vld [vmem:[%s2994_s16 + $0x998] sm:$0xff] }
 0x143   : > { %v1706_v7 = vadd.f32 %v5459_v46, %v522_v9  ;;  %v1707_v57 = vadd.f32 %v5460_v54, %v523_v1  ;;  %v529_v21 = vld [vmem:[%s2994_s16 + $0x988] sm:$0xff]  ;;  %v530_v29 = vld [vmem:[%s2994_s16 + $0x990] sm:$0xff]  ;;  %2212 = vst [vmem:[%s3065_s21 + $0x920] sm:$0xff] %v1700_v34  ;;  %2213 = vst [vmem:[%s3065_s21 + $0x928] sm:$0xff] %v1701_v6 }
 0x144   : > { %2214 = vst [vmem:[%s3065_s21 + $0x930] sm:$0xff] %v1702_v19  ;;  %2215 = vst [vmem:[%s3065_s21 + $0x938] sm:$0xff] %v1703_v60  ;;  %v5461_v28 = vld [vmem:[#allocation34_spill] sm:$0xff]  ;;  %v5462_v5 = vld [vmem:[#allocation35_spill] sm:$0xff] }
 0x145   : > { %v1708_v36 = vadd.f32 %v5461_v28, %v524_v61  ;;  %v1709_v25 = vadd.f32 %v5462_v5, %v525_v35  ;;  %v5463_v9 = vld [vmem:[#allocation36_spill] sm:$0xff]  ;;  %v5464_v1 = vld [vmem:[#allocation37_spill] sm:$0xff]  ;;  %v532_v46 = vld [vmem:[%s2994_s16 + $0x9a0] sm:$0xff]  ;;  %2216 = vst [vmem:[%s3065_s21 + $0x940] sm:$0xff] %v1704_v59 }
 0x146   : > { %v1710_v52 = vadd.f32 %v5463_v9, %v526_v17  ;;  %v1711_v54 = vadd.f32 %v5464_v1, %v527_v27  ;;  %v533_v62 = vld [vmem:[%s2994_s16 + $0x9a8] sm:$0xff]  ;;  %v534_v34 = vld [vmem:[%s2994_s16 + $0x9b0] sm:$0xff]  ;;  %2217 = vst [vmem:[%s3065_s21 + $0x948] sm:$0xff] %v1705_v8  ;;  %2218 = vst [vmem:[%s3065_s21 + $0x950] sm:$0xff] %v1706_v7 }
 0x147   : > { %2219 = vst [vmem:[%s3065_s21 + $0x958] sm:$0xff] %v1707_v57  ;;  %v5465_v61 = vld [vmem:[#allocation38_spill] sm:$0xff]  ;;  %v5466_v35 = vld [vmem:[#allocation39_spill] sm:$0xff]  ;;  %v5467_v17 = vld [vmem:[#allocation40_spill] sm:$0xff] }
 0x148   : > { %v1712_v60 = vadd.f32 %v5465_v61, %v528_v40  ;;  %v1713_v6 = vadd.f32 %v5466_v35, %v529_v21  ;;  %v1714_v19 = vadd.f32 %v5467_v17, %v530_v29  ;;  %v5468_v27 = vld [vmem:[#allocation41_spill] sm:$0xff]  ;;  %v535_v9 = vld [vmem:[%s2994_s16 + $0x9b8] sm:$0xff]  ;;  %v536_v5 = vld [vmem:[%s2994_s16 + $0x9c0] sm:$0xff]  ;;  %2220 = vst [vmem:[%s3065_s21 + $0x960] sm:$0xff] %v1708_v36 }
 0x149   : > { %v1715_v1 = vadd.f32 %v5468_v27, %v531_v53  ;;  %v537_v59 = vld [vmem:[%s2994_s16 + $0x9c8] sm:$0xff]  ;;  %2221 = vst [vmem:[%s3065_s21 + $0x968] sm:$0xff] %v1709_v25  ;;  %2222 = vst [vmem:[%s3065_s21 + $0x970] sm:$0xff] %v1710_v52  ;;  %v5469_v57 = vld [vmem:[#allocation42_spill] sm:$0xff] }
 0x14a   : > { %2223 = vst [vmem:[%s3065_s21 + $0x978] sm:$0xff] %v1711_v54  ;;  %v1716_v40 = vadd.f32 %v5469_v57, %v532_v46  ;;  %v5470_v21 = vld [vmem:[#allocation43_spill] sm:$0xff]  ;;  %v5471_v29 = vld [vmem:[#allocation44_spill] sm:$0xff]  ;;  %v5472_v53 = vld [vmem:[#allocation45_spill] sm:$0xff] }
 0x14b   : > { %v1717_v8 = vadd.f32 %v5470_v21, %v533_v62  ;;  %v1718_v7 = vadd.f32 %v5471_v29, %v534_v34  ;;  %v1719_v27 = vadd.f32 %v5472_v53, %v535_v9  ;;  %v538_v17 = vld [vmem:[%s2994_s16 + $0x9d0] sm:$0xff]  ;;  %v539_v35 = vld [vmem:[%s2994_s16 + $0x9d8] sm:$0xff]  ;;  %v540_v36 = vld [vmem:[%s2994_s16 + $0x9e0] sm:$0xff]  ;;  %2224 = vst [vmem:[%s3065_s21 + $0x980] sm:$0xff] %v1712_v60 }
 0x14c   : > { %2225 = vst [vmem:[%s3065_s21 + $0x988] sm:$0xff] %v1713_v6  ;;  %2226 = vst [vmem:[%s3065_s21 + $0x990] sm:$0xff] %v1714_v19  ;;  %v5473_v46 = vld [vmem:[#allocation46_spill] sm:$0xff]  ;;  %v5474_v62 = vld [vmem:[#allocation47_spill] sm:$0xff] }
 0x14d   : > { %2227 = vst [vmem:[%s3065_s21 + $0x998] sm:$0xff] %v1715_v1  ;;  %v1720_v54 = vadd.f32 %v5473_v46, %v536_v5  ;;  %v1721_v25 = vadd.f32 %v5474_v62, %v537_v59  ;;  %v5475_v52 = vld [vmem:[#allocation48_spill] sm:$0xff]  ;;  %v5476_v9 = vld [vmem:[#allocation49_spill] sm:$0xff]  ;;  %v543_v60 = vld [vmem:[%s2994_s16 + $0x9f8] sm:$0xff] }
 0x14e   : > { %v1722_v34 = vadd.f32 %v5475_v52, %v538_v17  ;;  %v1723_v53 = vadd.f32 %v5476_v9, %v539_v35  ;;  %v541_v29 = vld [vmem:[%s2994_s16 + $0x9e8] sm:$0xff]  ;;  %v542_v21 = vld [vmem:[%s2994_s16 + $0x9f0] sm:$0xff]  ;;  %2228 = vst [vmem:[%s3065_s21 + $0x9a0] sm:$0xff] %v1716_v40  ;;  %2229 = vst [vmem:[%s3065_s21 + $0x9a8] sm:$0xff] %v1717_v8 }
 0x14f   : > { %2230 = vst [vmem:[%s3065_s21 + $0x9b0] sm:$0xff] %v1718_v7  ;;  %2231 = vst [vmem:[%s3065_s21 + $0x9b8] sm:$0xff] %v1719_v27  ;;  %v5477_v5 = vld [vmem:[#allocation50_spill] sm:$0xff]  ;;  %v5478_v6 = vld [vmem:[#allocation51_spill] sm:$0xff] }
 0x150   : > { %v1724_v1 = vadd.f32 %v5477_v5, %v540_v36  ;;  %v1725_v17 = vadd.f32 %v5478_v6, %v541_v29  ;;  %v5479_v19 = vld [vmem:[#allocation52_spill] sm:$0xff]  ;;  %v5480_v59 = vld [vmem:[#allocation53_spill] sm:$0xff]  ;;  %v544_v52 = vld [vmem:[%s2994_s16 + $0xa00] sm:$0xff]  ;;  %2232 = vst [vmem:[%s3065_s21 + $0x9c0] sm:$0xff] %v1720_v54 }
 0x151   : > { %v1726_v35 = vadd.f32 %v5479_v19, %v542_v21  ;;  %v1727_v9 = vadd.f32 %v5480_v59, %v543_v60  ;;  %v545_v40 = vld [vmem:[%s2994_s16 + $0xa08] sm:$0xff]  ;;  %v546_v8 = vld [vmem:[%s2994_s16 + $0xa10] sm:$0xff]  ;;  %2233 = vst [vmem:[%s3065_s21 + $0x9c8] sm:$0xff] %v1721_v25  ;;  %2234 = vst [vmem:[%s3065_s21 + $0x9d0] sm:$0xff] %v1722_v34 }
 0x152   : > { %2235 = vst [vmem:[%s3065_s21 + $0x9d8] sm:$0xff] %v1723_v53  ;;  %v5481_v27 = vld [vmem:[#allocation54_spill] sm:$0xff]  ;;  %v5482_v7 = vld [vmem:[#allocation55_spill] sm:$0xff]  ;;  %v5483_v36 = vld [vmem:[#allocation56_spill] sm:$0xff] }
 0x153   : > { %v1728_v29 = vadd.f32 %v5481_v27, %v544_v52  ;;  %v1729_v21 = vadd.f32 %v5482_v7, %v545_v40  ;;  %v1730_v60 = vadd.f32 %v5483_v36, %v546_v8  ;;  %v547_v59 = vld [vmem:[%s2994_s16 + $0xa18] sm:$0xff]  ;;  %v548_v19 = vld [vmem:[%s2994_s16 + $0xa20] sm:$0xff]  ;;  %v549_v6 = vld [vmem:[%s2994_s16 + $0xa28] sm:$0xff]  ;;  %2236 = vst [vmem:[%s3065_s21 + $0x9e0] sm:$0xff] %v1724_v1 }
 0x154   : > { %2237 = vst [vmem:[%s3065_s21 + $0x9e8] sm:$0xff] %v1725_v17  ;;  %2238 = vst [vmem:[%s3065_s21 + $0x9f0] sm:$0xff] %v1726_v35  ;;  %v5484_v53 = vld [vmem:[#allocation57_spill] sm:$0xff]  ;;  %v5485_v25 = vld [vmem:[#allocation58_spill] sm:$0xff] }
 0x155   : > { %2239 = vst [vmem:[%s3065_s21 + $0x9f8] sm:$0xff] %v1727_v9  ;;  %v1731_v54 = vadd.f32 %v5484_v53, %v547_v59  ;;  %v1732_v52 = vadd.f32 %v5485_v25, %v548_v19  ;;  %v5486_v34 = vld [vmem:[#allocation59_spill] sm:$0xff]  ;;  %v550_v8 = vld [vmem:[%s2994_s16 + $0xa30] sm:$0xff]  ;;  %v551_v36 = vld [vmem:[%s2994_s16 + $0xa38] sm:$0xff] }
 0x156   : > { %v1733_v40 = vadd.f32 %v5486_v34, %v549_v6  ;;  %v552_v7 = vld [vmem:[%s2994_s16 + $0xa40] sm:$0xff]  ;;  %2240 = vst [vmem:[%s3065_s21 + $0xa00] sm:$0xff] %v1728_v29  ;;  %2241 = vst [vmem:[%s3065_s21 + $0xa08] sm:$0xff] %v1729_v21  ;;  %v5487_v1 = vld [vmem:[#allocation60_spill] sm:$0xff] }
 0x157   : > { %2242 = vst [vmem:[%s3065_s21 + $0xa10] sm:$0xff] %v1730_v60  ;;  %v1734_v9 = vadd.f32 %v5487_v1, %v550_v8  ;;  %v5488_v17 = vld [vmem:[#allocation61_spill] sm:$0xff]  ;;  %v5489_v59 = vld [vmem:[#allocation62_spill] sm:$0xff]  ;;  %v553_v25 = vld [vmem:[%s2994_s16 + $0xa48] sm:$0xff] }
 0x158   : > { %v1735_v35 = vadd.f32 %v5488_v17, %v551_v36  ;;  %v1736_v19 = vadd.f32 %v5489_v59, %v552_v7  ;;  %v554_v6 = vld [vmem:[%s2994_s16 + $0xa50] sm:$0xff]  ;;  %v555_v34 = vld [vmem:[%s2994_s16 + $0xa58] sm:$0xff]  ;;  %2243 = vst [vmem:[%s3065_s21 + $0xa18] sm:$0xff] %v1731_v54  ;;  %2244 = vst [vmem:[%s3065_s21 + $0xa20] sm:$0xff] %v1732_v52 }
 0x159   : > { %2245 = vst [vmem:[%s3065_s21 + $0xa28] sm:$0xff] %v1733_v40  ;;  %v5490_v29 = vld [vmem:[#allocation63_spill] sm:$0xff]  ;;  %v5491_v60 = vld [vmem:[#allocation64_spill] sm:$0xff]  ;;  %v5492_v1 = vld [vmem:[#allocation65_spill] sm:$0xff] }
 0x15a   : > { %v1737_v21 = vadd.f32 %v5490_v29, %v553_v25  ;;  %v1738_v8 = vadd.f32 %v5491_v60, %v554_v6  ;;  %v1739_v36 = vadd.f32 %v5492_v1, %v555_v34  ;;  %v556_v17 = vld [vmem:[%s2994_s16 + $0xa60] sm:$0xff]  ;;  %v557_v7 = vld [vmem:[%s2994_s16 + $0xa68] sm:$0xff]  ;;  %v558_v59 = vld [vmem:[%s2994_s16 + $0xa70] sm:$0xff]  ;;  %2246 = vst [vmem:[%s3065_s21 + $0xa30] sm:$0xff] %v1734_v9 }
 0x15b   : > { %2247 = vst [vmem:[%s3065_s21 + $0xa38] sm:$0xff] %v1735_v35  ;;  %2248 = vst [vmem:[%s3065_s21 + $0xa40] sm:$0xff] %v1736_v19  ;;  %v5493_v54 = vld [vmem:[#allocation66_spill] sm:$0xff]  ;;  %v5494_v40 = vld [vmem:[#allocation67_spill] sm:$0xff] }
 0x15c   : > { %v1740_v52 = vadd.f32 %v5493_v54, %v556_v17  ;;  %v1741_v25 = vadd.f32 %v5494_v40, %v557_v7  ;;  %v5495_v29 = vld [vmem:[#allocation68_spill] sm:$0xff]  ;;  %v559_v60 = vld [vmem:[%s2994_s16 + $0xa78] sm:$0xff]  ;;  %v560_v34 = vld [vmem:[%s2994_s16 + $0xa80] sm:$0xff]  ;;  %2249 = vst [vmem:[%s3065_s21 + $0xa48] sm:$0xff] %v1737_v21 }
 0x15d   : > { %v1742_v6 = vadd.f32 %v5495_v29, %v558_v59  ;;  %v561_v1 = vld [vmem:[%s2994_s16 + $0xa88] sm:$0xff]  ;;  %2250 = vst [vmem:[%s3065_s21 + $0xa50] sm:$0xff] %v1738_v8  ;;  %2251 = vst [vmem:[%s3065_s21 + $0xa58] sm:$0xff] %v1739_v36  ;;  %v5496_v9 = vld [vmem:[#allocation69_spill] sm:$0xff] }
 0x15e   : > { %v1743_v35 = vadd.f32 %v5496_v9, %v559_v60  ;;  %v5497_v19 = vld [vmem:[#allocation70_spill] sm:$0xff]  ;;  %v5498_v54 = vld [vmem:[#allocation71_spill] sm:$0xff]  ;;  %v562_v40 = vld [vmem:[%s2994_s16 + $0xa90] sm:$0xff]  ;;  %2252 = vst [vmem:[%s3065_s21 + $0xa60] sm:$0xff] %v1740_v52 }
 0x15f   : > { %v1744_v17 = vadd.f32 %v5497_v19, %v560_v34  ;;  %v1745_v7 = vadd.f32 %v5498_v54, %v561_v1  ;;  %v563_v59 = vld [vmem:[%s2994_s16 + $0xa98] sm:$0xff]  ;;  %v564_v29 = vld [vmem:[%s2994_s16 + $0xaa0] sm:$0xff]  ;;  %2253 = vst [vmem:[%s3065_s21 + $0xa68] sm:$0xff] %v1741_v25  ;;  %2254 = vst [vmem:[%s3065_s21 + $0xa70] sm:$0xff] %v1742_v6 }
 0x160   : > { %v5499_v21 = vld [vmem:[#allocation72_spill] sm:$0xff]  ;;  %v5500_v36 = vld [vmem:[#allocation73_spill] sm:$0xff]  ;;  %v5501_v9 = vld [vmem:[#allocation74_spill] sm:$0xff]  ;;  %2255 = vst [vmem:[%s3065_s21 + $0xa78] sm:$0xff] %v1743_v35 }
 0x161   : > { %v1746_v8 = vadd.f32 %v5499_v21, %v562_v40  ;;  %v1747_v60 = vadd.f32 %v5500_v36, %v563_v59  ;;  %v1748_v34 = vadd.f32 %v5501_v9, %v564_v29  ;;  %v565_v19 = vld [vmem:[%s2994_s16 + $0xaa8] sm:$0xff]  ;;  %v566_v1 = vld [vmem:[%s2994_s16 + $0xab0] sm:$0xff]  ;;  %v567_v54 = vld [vmem:[%s2994_s16 + $0xab8] sm:$0xff]  ;;  %2256 = vst [vmem:[%s3065_s21 + $0xa80] sm:$0xff] %v1744_v17 }
 0x162   : > { %2257 = vst [vmem:[%s3065_s21 + $0xa88] sm:$0xff] %v1745_v7  ;;  %v5502_v52 = vld [vmem:[#allocation75_spill] sm:$0xff]  ;;  %v5503_v6 = vld [vmem:[#allocation76_spill] sm:$0xff]  ;;  %v5504_v21 = vld [vmem:[#allocation77_spill] sm:$0xff] }
 0x163   : > { %v1749_v25 = vadd.f32 %v5502_v52, %v565_v19  ;;  %v1750_v40 = vadd.f32 %v5503_v6, %v566_v1  ;;  %v1751_v59 = vadd.f32 %v5504_v21, %v567_v54  ;;  %v568_v36 = vld [vmem:[%s2994_s16 + $0xac0] sm:$0xff]  ;;  %v569_v29 = vld [vmem:[%s2994_s16 + $0xac8] sm:$0xff]  ;;  %v570_v9 = vld [vmem:[%s2994_s16 + $0xad0] sm:$0xff]  ;;  %2258 = vst [vmem:[%s3065_s21 + $0xa90] sm:$0xff] %v1746_v8 }
 0x164   : > { %2259 = vst [vmem:[%s3065_s21 + $0xa98] sm:$0xff] %v1747_v60  ;;  %2260 = vst [vmem:[%s3065_s21 + $0xaa0] sm:$0xff] %v1748_v34  ;;  %v5505_v35 = vld [vmem:[#allocation78_spill] sm:$0xff]  ;;  %v5506_v7 = vld [vmem:[#allocation79_spill] sm:$0xff] }
 0x165   : > { %v1752_v17 = vadd.f32 %v5505_v35, %v568_v36  ;;  %v1753_v19 = vadd.f32 %v5506_v7, %v569_v29  ;;  %v5507_v52 = vld [vmem:[#allocation80_spill] sm:$0xff]  ;;  %v571_v6 = vld [vmem:[%s2994_s16 + $0xad8] sm:$0xff]  ;;  %v572_v54 = vld [vmem:[%s2994_s16 + $0xae0] sm:$0xff]  ;;  %2261 = vst [vmem:[%s3065_s21 + $0xaa8] sm:$0xff] %v1749_v25 }
 0x166   : > { %v1754_v1 = vadd.f32 %v5507_v52, %v570_v9  ;;  %v573_v21 = vld [vmem:[%s2994_s16 + $0xae8] sm:$0xff]  ;;  %2262 = vst [vmem:[%s3065_s21 + $0xab0] sm:$0xff] %v1750_v40  ;;  %2263 = vst [vmem:[%s3065_s21 + $0xab8] sm:$0xff] %v1751_v59  ;;  %v5508_v8 = vld [vmem:[#allocation81_spill] sm:$0xff] }
 0x167   : > { %v1755_v60 = vadd.f32 %v5508_v8, %v571_v6  ;;  %v5509_v34 = vld [vmem:[#allocation82_spill] sm:$0xff]  ;;  %v5510_v35 = vld [vmem:[#allocation83_spill] sm:$0xff]  ;;  %v574_v7 = vld [vmem:[%s2994_s16 + $0xaf0] sm:$0xff]  ;;  %2264 = vst [vmem:[%s3065_s21 + $0xac0] sm:$0xff] %v1752_v17 }
 0x168   : > { %v1756_v36 = vadd.f32 %v5509_v34, %v572_v54  ;;  %v1757_v29 = vadd.f32 %v5510_v35, %v573_v21  ;;  %v575_v9 = vld [vmem:[%s2994_s16 + $0xaf8] sm:$0xff]  ;;  %v576_v52 = vld [vmem:[%s2994_s16 + $0xb00] sm:$0xff]  ;;  %2265 = vst [vmem:[%s3065_s21 + $0xac8] sm:$0xff] %v1753_v19  ;;  %2266 = vst [vmem:[%s3065_s21 + $0xad0] sm:$0xff] %v1754_v1 }
 0x169   : > { %v5511_v25 = vld [vmem:[#allocation84_spill] sm:$0xff]  ;;  %v5512_v59 = vld [vmem:[#allocation85_spill] sm:$0xff]  ;;  %v5513_v8 = vld [vmem:[#allocation86_spill] sm:$0xff]  ;;  %2267 = vst [vmem:[%s3065_s21 + $0xad8] sm:$0xff] %v1755_v60 }
 0x16a   : > { %v1758_v40 = vadd.f32 %v5511_v25, %v574_v7  ;;  %v1759_v6 = vadd.f32 %v5512_v59, %v575_v9  ;;  %v1760_v54 = vadd.f32 %v5513_v8, %v576_v52  ;;  %v577_v34 = vld [vmem:[%s2994_s16 + $0xb08] sm:$0xff]  ;;  %v578_v21 = vld [vmem:[%s2994_s16 + $0xb10] sm:$0xff]  ;;  %v579_v35 = vld [vmem:[%s2994_s16 + $0xb18] sm:$0xff]  ;;  %2268 = vst [vmem:[%s3065_s21 + $0xae0] sm:$0xff] %v1756_v36 }
 0x16b   : > { %2269 = vst [vmem:[%s3065_s21 + $0xae8] sm:$0xff] %v1757_v29  ;;  %v5514_v17 = vld [vmem:[#allocation87_spill] sm:$0xff]  ;;  %v5515_v1 = vld [vmem:[#allocation88_spill] sm:$0xff]  ;;  %v5516_v25 = vld [vmem:[#allocation89_spill] sm:$0xff] }
 0x16c   : > { %v1761_v19 = vadd.f32 %v5514_v17, %v577_v34  ;;  %v1762_v7 = vadd.f32 %v5515_v1, %v578_v21  ;;  %v1763_v9 = vadd.f32 %v5516_v25, %v579_v35  ;;  %v580_v59 = vld [vmem:[%s2994_s16 + $0xb20] sm:$0xff]  ;;  %v581_v52 = vld [vmem:[%s2994_s16 + $0xb28] sm:$0xff]  ;;  %v582_v8 = vld [vmem:[%s2994_s16 + $0xb30] sm:$0xff]  ;;  %2270 = vst [vmem:[%s3065_s21 + $0xaf0] sm:$0xff] %v1758_v40 }
 0x16d   : > { %2271 = vst [vmem:[%s3065_s21 + $0xaf8] sm:$0xff] %v1759_v6  ;;  %2272 = vst [vmem:[%s3065_s21 + $0xb00] sm:$0xff] %v1760_v54  ;;  %v5517_v60 = vld [vmem:[#allocation90_spill] sm:$0xff]  ;;  %v5518_v29 = vld [vmem:[#allocation91_spill] sm:$0xff] }
 0x16e   : > { %v1764_v36 = vadd.f32 %v5517_v60, %v580_v59  ;;  %v1765_v34 = vadd.f32 %v5518_v29, %v581_v52  ;;  %v5519_v17 = vld [vmem:[#allocation92_spill] sm:$0xff]  ;;  %v583_v1 = vld [vmem:[%s2994_s16 + $0xb38] sm:$0xff]  ;;  %v584_v35 = vld [vmem:[%s2994_s16 + $0xb40] sm:$0xff]  ;;  %2273 = vst [vmem:[%s3065_s21 + $0xb08] sm:$0xff] %v1761_v19 }
 0x16f   : > { %v1766_v21 = vadd.f32 %v5519_v17, %v582_v8  ;;  %v585_v25 = vld [vmem:[%s2994_s16 + $0xb48] sm:$0xff]  ;;  %2274 = vst [vmem:[%s3065_s21 + $0xb10] sm:$0xff] %v1762_v7  ;;  %2275 = vst [vmem:[%s3065_s21 + $0xb18] sm:$0xff] %v1763_v9  ;;  %v5520_v40 = vld [vmem:[#allocation93_spill] sm:$0xff] }
 0x170   : > { %v1767_v6 = vadd.f32 %v5520_v40, %v583_v1  ;;  %v5521_v54 = vld [vmem:[#allocation94_spill] sm:$0xff]  ;;  %v5522_v60 = vld [vmem:[#allocation95_spill] sm:$0xff]  ;;  %v586_v29 = vld [vmem:[%s2994_s16 + $0xb50] sm:$0xff]  ;;  %2276 = vst [vmem:[%s3065_s21 + $0xb20] sm:$0xff] %v1764_v36 }
 0x171   : > { %v1768_v59 = vadd.f32 %v5521_v54, %v584_v35  ;;  %v1769_v52 = vadd.f32 %v5522_v60, %v585_v25  ;;  %v587_v8 = vld [vmem:[%s2994_s16 + $0xb58] sm:$0xff]  ;;  %v588_v17 = vld [vmem:[%s2994_s16 + $0xb60] sm:$0xff]  ;;  %2277 = vst [vmem:[%s3065_s21 + $0xb28] sm:$0xff] %v1765_v34  ;;  %2278 = vst [vmem:[%s3065_s21 + $0xb30] sm:$0xff] %v1766_v21 }
 0x172   : > { %v5523_v19 = vld [vmem:[#allocation96_spill] sm:$0xff]  ;;  %v5524_v9 = vld [vmem:[#allocation97_spill] sm:$0xff]  ;;  %v1772_v35 = vadd.f32 %v5423_v47, %v588_v17  ;;  %v591_v60 = vld [vmem:[%s2994_s16 + $0xb78] sm:$0xff]  ;;  %2279 = vst [vmem:[%s3065_s21 + $0xb38] sm:$0xff] %v1767_v6 }
 0x173   : > { %v1770_v7 = vadd.f32 %v5523_v19, %v586_v29  ;;  %v1771_v1 = vadd.f32 %v5524_v9, %v587_v8  ;;  %v589_v54 = vld [vmem:[%s2994_s16 + $0xb68] sm:$0xff]  ;;  %v590_v25 = vld [vmem:[%s2994_s16 + $0xb70] sm:$0xff]  ;;  %2280 = vst [vmem:[%s3065_s21 + $0xb40] sm:$0xff] %v1768_v59  ;;  %2281 = vst [vmem:[%s3065_s21 + $0xb48] sm:$0xff] %v1769_v52 }
 0x174   : > { %v5525_v36 = vld [vmem:[#allocation99_spill] sm:$0xff]  ;;  %v5526_v21 = vld [vmem:[#allocation100_spill] sm:$0xff]  ;;  %v5527_v19 = vld [vmem:[#allocation101_spill] sm:$0xff]  ;;  %2284 = vst [vmem:[%s3065_s21 + $0xb60] sm:$0xff] %v1772_v35 }
 0x175   : > { %v1773_v34 = vadd.f32 %v5525_v36, %v589_v54  ;;  %v1774_v29 = vadd.f32 %v5526_v21, %v590_v25  ;;  %v1775_v8 = vadd.f32 %v5527_v19, %v591_v60  ;;  %v592_v9 = vld [vmem:[%s2994_s16 + $0xb80] sm:$0xff]  ;;  %v593_v17 = vld [vmem:[%s2994_s16 + $0xb88] sm:$0xff]  ;;  %v594_v47 = vld [vmem:[%s2994_s16 + $0xb90] sm:$0xff]  ;;  %2282 = vst [vmem:[%s3065_s21 + $0xb50] sm:$0xff] %v1770_v7 }
 0x176   : > { %2283 = vst [vmem:[%s3065_s21 + $0xb58] sm:$0xff] %v1771_v1  ;;  %v5528_v6 = vld [vmem:[#allocation102_spill] sm:$0xff]  ;;  %v5529_v52 = vld [vmem:[#allocation103_spill] sm:$0xff]  ;;  %v5530_v36 = vld [vmem:[#allocation104_spill] sm:$0xff] }
 0x177   : > { %v1776_v59 = vadd.f32 %v5528_v6, %v592_v9  ;;  %v1777_v54 = vadd.f32 %v5529_v52, %v593_v17  ;;  %v1778_v25 = vadd.f32 %v5530_v36, %v594_v47  ;;  %v595_v21 = vld [vmem:[%s2994_s16 + $0xb98] sm:$0xff]  ;;  %v596_v60 = vld [vmem:[%s2994_s16 + $0xba0] sm:$0xff]  ;;  %v597_v19 = vld [vmem:[%s2994_s16 + $0xba8] sm:$0xff]  ;;  %2285 = vst [vmem:[%s3065_s21 + $0xb68] sm:$0xff] %v1773_v34 }
 0x178   : > { %2286 = vst [vmem:[%s3065_s21 + $0xb70] sm:$0xff] %v1774_v29  ;;  %2287 = vst [vmem:[%s3065_s21 + $0xb78] sm:$0xff] %v1775_v8  ;;  %v5531_v7 = vld [vmem:[#allocation105_spill] sm:$0xff]  ;;  %v1780_v9 = vadd.f32 %v5430_v0, %v596_v60  ;;  %v1781_v35 = vadd.f32 %v5431_v4, %v597_v19  ;;  %v599_v47 = vld [vmem:[%s2994_s16 + $0xbb8] sm:$0xff] }
 0x179   : > { %v1779_v1 = vadd.f32 %v5531_v7, %v595_v21  ;;  %v598_v17 = vld [vmem:[%s2994_s16 + $0xbb0] sm:$0xff]  ;;  %v600_v36 = vld [vmem:[%s2994_s16 + $0xbc0] sm:$0xff]  ;;  %2288 = vst [vmem:[%s3065_s21 + $0xb80] sm:$0xff] %v1776_v59  ;;  %2289 = vst [vmem:[%s3065_s21 + $0xb88] sm:$0xff] %v1777_v54 }
 0x17a   : > { %2290 = vst [vmem:[%s3065_s21 + $0xb90] sm:$0xff] %v1778_v25  ;;  %v5532_v34 = vld [vmem:[#allocation108_spill] sm:$0xff]  ;;  %v5533_v8 = vld [vmem:[#allocation109_spill] sm:$0xff]  ;;  %v1784_v60 = vadd.f32 %v3765_v39, %v600_v36  ;;  %v603_v4 = vld [vmem:[%s2994_s16 + $0xbd8] sm:$0xff] }
 0x17b   : > { %v1782_v29 = vadd.f32 %v5532_v34, %v598_v17  ;;  %v1783_v21 = vadd.f32 %v5533_v8, %v599_v47  ;;  %v601_v0 = vld [vmem:[%s2994_s16 + $0xbc8] sm:$0xff]  ;;  %v602_v19 = vld [vmem:[%s2994_s16 + $0xbd0] sm:$0xff]  ;;  %2291 = vst [vmem:[%s3065_s21 + $0xb98] sm:$0xff] %v1779_v1  ;;  %2292 = vst [vmem:[%s3065_s21 + $0xba0] sm:$0xff] %v1780_v9 }
 0x17c   : > { %2293 = vst [vmem:[%s3065_s21 + $0xba8] sm:$0xff] %v1781_v35  ;;  %v1785_v59 = vadd.f32 %v3768_v31, %v601_v0  ;;  %v5534_v54 = vld [vmem:[#allocation111_spill] sm:$0xff]  ;;  %v5535_v17 = vld [vmem:[#allocation112_spill] sm:$0xff]  ;;  %v606_v39 = vld [vmem:[%s2994_s16 + $0xbf0] sm:$0xff] }
 0x17d   : > { %v1786_v25 = vadd.f32 %v5534_v54, %v602_v19  ;;  %v1787_v47 = vadd.f32 %v5535_v17, %v603_v4  ;;  %v604_v8 = vld [vmem:[%s2994_s16 + $0xbe0] sm:$0xff]  ;;  %v605_v36 = vld [vmem:[%s2994_s16 + $0xbe8] sm:$0xff]  ;;  %2294 = vst [vmem:[%s3065_s21 + $0xbb0] sm:$0xff] %v1782_v29  ;;  %2295 = vst [vmem:[%s3065_s21 + $0xbb8] sm:$0xff] %v1783_v21  ;;  %v1790_v9 = vadd.f32 %v5436_v37, %v606_v39 }
 0x17e   : > { %2296 = vst [vmem:[%s3065_s21 + $0xbc0] sm:$0xff] %v1784_v60  ;;  %v1788_v1 = vadd.f32 %v3785_v2, %v604_v8  ;;  %v1789_v0 = vadd.f32 %v3788_v3, %v605_v36  ;;  %v607_v35 = vld [vmem:[%s2994_s16 + $0xbf8] sm:$0xff]  ;;  %v608_v4 = vld [vmem:[%s2994_s16 + $0xc00] sm:$0xff]  ;;  %v609_v19 = vld [vmem:[%s2994_s16 + $0xc08] sm:$0xff] }
 0x17f   : > { %2297 = vst [vmem:[%s3065_s21 + $0xbc8] sm:$0xff] %v1785_v59  ;;  %2298 = vst [vmem:[%s3065_s21 + $0xbd0] sm:$0xff] %v1786_v25  ;;  %v1791_v29 = vadd.f32 %v5437_v45, %v607_v35  ;;  %v1792_v8 = vadd.f32 %v3020_v13, %v608_v4  ;;  %v1793_v21 = vadd.f32 %v3023_v14, %v609_v19  ;;  %v610_v60 = vld [vmem:[%s2994_s16 + $0xc10] sm:$0xff]  ;;  %v611_v39 = vld [vmem:[%s2994_s16 + $0xc18] sm:$0xff] }
 0x180   : > { %2299 = vst [vmem:[%s3065_s21 + $0xbd8] sm:$0xff] %v1787_v47  ;;  %v612_v36 = vld [vmem:[%s2994_s16 + $0xc20] sm:$0xff]  ;;  %2300 = vst [vmem:[%s3065_s21 + $0xbe0] sm:$0xff] %v1788_v1  ;;  %v1794_v59 = vadd.f32 %v3027_v16, %v610_v60  ;;  %v1795_v25 = vadd.f32 %v3031_v18, %v611_v39  ;;  %v613_v47 = vld [vmem:[%s2994_s16 + $0xc28] sm:$0xff] }
 0x181   : > { %2301 = vst [vmem:[%s3065_s21 + $0xbe8] sm:$0xff] %v1789_v0  ;;  %2302 = vst [vmem:[%s3065_s21 + $0xbf0] sm:$0xff] %v1790_v9  ;;  %v1796_v13 = vadd.f32 %v3035_v20, %v612_v36  ;;  %v614_v14 = vld [vmem:[%s2994_s16 + $0xc30] sm:$0xff]  ;;  %v615_v35 = vld [vmem:[%s2994_s16 + $0xc38] sm:$0xff]  ;;  %v1797_v1 = vadd.f32 %v3039_v22, %v613_v47 }
 0x182   : > { %2303 = vst [vmem:[%s3065_s21 + $0xbf8] sm:$0xff] %v1791_v29  ;;  %2304 = vst [vmem:[%s3065_s21 + $0xc00] sm:$0xff] %v1792_v8  ;;  %v1798_v16 = vadd.f32 %v3043_v24, %v614_v14  ;;  %v1799_v18 = vadd.f32 %v3047_v26, %v615_v35  ;;  %v616_v0 = vld [vmem:[%s2994_s16 + $0xc40] sm:$0xff]  ;;  %v617_v20 = vld [vmem:[%s2994_s16 + $0xc48] sm:$0xff] }
 0x183   : > { %2305 = vst [vmem:[%s3065_s21 + $0xc08] sm:$0xff] %v1793_v21  ;;  %v618_v9 = vld [vmem:[%s2994_s16 + $0xc50] sm:$0xff]  ;;  %2306 = vst [vmem:[%s3065_s21 + $0xc10] sm:$0xff] %v1794_v59  ;;  %v1800_v4 = vadd.f32 %v3072_v41, %v616_v0  ;;  %v1801_v22 = vadd.f32 %v3075_v42, %v617_v20  ;;  %v619_v19 = vld [vmem:[%s2994_s16 + $0xc58] sm:$0xff] }
 0x184   : > { %2307 = vst [vmem:[%s3065_s21 + $0xc18] sm:$0xff] %v1795_v25  ;;  %2308 = vst [vmem:[%s3065_s21 + $0xc20] sm:$0xff] %v1796_v13  ;;  %v1802_v24 = vadd.f32 %v3078_v43, %v618_v9  ;;  %v620_v26 = vld [vmem:[%s2994_s16 + $0xc60] sm:$0xff]  ;;  %v621_v29 = vld [vmem:[%s2994_s16 + $0xc68] sm:$0xff]  ;;  %v1803_v8 = vadd.f32 %v3081_v44, %v619_v19 }
 0x185   : > { %2309 = vst [vmem:[%s3065_s21 + $0xc28] sm:$0xff] %v1797_v1  ;;  %2310 = vst [vmem:[%s3065_s21 + $0xc30] sm:$0xff] %v1798_v16  ;;  %v1804_v41 = vadd.f32 %v3091_v48, %v620_v26  ;;  %v1805_v42 = vadd.f32 %v3094_v49, %v621_v29  ;;  %v622_v21 = vld [vmem:[%s2994_s16 + $0xc70] sm:$0xff]  ;;  %v623_v43 = vld [vmem:[%s2994_s16 + $0xc78] sm:$0xff] }
 0x186   : > { %2311 = vst [vmem:[%s3065_s21 + $0xc38] sm:$0xff] %v1799_v18  ;;  %v624_v60 = vld [vmem:[%s2994_s16 + $0xc80] sm:$0xff]  ;;  %2312 = vst [vmem:[%s3065_s21 + $0xc40] sm:$0xff] %v1800_v4  ;;  %v1806_v39 = vadd.f32 %v3097_v50, %v622_v21  ;;  %v1807_v44 = vadd.f32 %v3100_v51, %v623_v43  ;;  %v625_v36 = vld [vmem:[%s2994_s16 + $0xc88] sm:$0xff] }
 0x187   : > { %2313 = vst [vmem:[%s3065_s21 + $0xc48] sm:$0xff] %v1801_v22  ;;  %2314 = vst [vmem:[%s3065_s21 + $0xc50] sm:$0xff] %v1802_v24  ;;  %v1808_v48 = vadd.f32 %v3121_v10, %v624_v60  ;;  %v626_v49 = vld [vmem:[%s2994_s16 + $0xc90] sm:$0xff]  ;;  %v627_v59 = vld [vmem:[%s2994_s16 + $0xc98] sm:$0xff]  ;;  %v1809_v25 = vadd.f32 %v3124_v11, %v625_v36 }
 0x188   : > { %2315 = vst [vmem:[%s3065_s21 + $0xc58] sm:$0xff] %v1803_v8  ;;  %2316 = vst [vmem:[%s3065_s21 + $0xc60] sm:$0xff] %v1804_v41  ;;  %v1810_v50 = vadd.f32 %v3127_v12, %v626_v49  ;;  %v1811_v51 = vadd.f32 %v3130_v15, %v627_v59  ;;  %v628_v13 = vld [vmem:[%s2994_s16 + $0xca0] sm:$0xff]  ;;  %v629_v10 = vld [vmem:[%s2994_s16 + $0xca8] sm:$0xff] }
 0x189   : > { %2317 = vst [vmem:[%s3065_s21 + $0xc68] sm:$0xff] %v1805_v42  ;;  %v630_v47 = vld [vmem:[%s2994_s16 + $0xcb0] sm:$0xff]  ;;  %2318 = vst [vmem:[%s3065_s21 + $0xc70] sm:$0xff] %v1806_v39  ;;  %v1812_v14 = vadd.f32 %v3140_v23, %v628_v13  ;;  %v1813_v11 = vadd.f32 %v5438_v58, %v629_v10  ;;  %v631_v35 = vld [vmem:[%s2994_s16 + $0xcb8] sm:$0xff] }
 0x18a   : > { %2319 = vst [vmem:[%s3065_s21 + $0xc78] sm:$0xff] %v1807_v44  ;;  %2320 = vst [vmem:[%s3065_s21 + $0xc80] sm:$0xff] %v1808_v48  ;;  %v1814_v12 = vadd.f32 %v5439_v55, %v630_v47  ;;  %v632_v15 = vld [vmem:[%s2994_s16 + $0xcc0] sm:$0xff]  ;;  %v633_v1 = vld [vmem:[%s2994_s16 + $0xcc8] sm:$0xff]  ;;  %v1815_v16 = vadd.f32 %v5440_v33, %v631_v35 }
 0x18b   : > { %2321 = vst [vmem:[%s3065_s21 + $0xc88] sm:$0xff] %v1809_v25  ;;  %2322 = vst [vmem:[%s3065_s21 + $0xc90] sm:$0xff] %v1810_v50  ;;  %v1816_v23 = vadd.f32 %v5441_v63, %v632_v15  ;;  %v5536_v18 = vld [vmem:[#allocation15_spill] sm:$0xff]  ;;  %v634_v0 = vld [vmem:[%s2994_s16 + $0xcd0] sm:$0xff] }
 0x18c   : > { %2323 = vst [vmem:[%s3065_s21 + $0xc98] sm:$0xff] %v1811_v51  ;;  %v1817_v58 = vadd.f32 %v5536_v18, %v633_v1  ;;  %v635_v55 = vld [vmem:[%s2994_s16 + $0xcd8] sm:$0xff]  ;;  %v636_v20 = vld [vmem:[%s2994_s16 + $0xce0] sm:$0xff]  ;;  %2324 = vst [vmem:[%s3065_s21 + $0xca0] sm:$0xff] %v1812_v14 }
 0x18d   : > { %2325 = vst [vmem:[%s3065_s21 + $0xca8] sm:$0xff] %v1813_v11  ;;  %2326 = vst [vmem:[%s3065_s21 + $0xcb0] sm:$0xff] %v1814_v12  ;;  %v5537_v9 = vld [vmem:[#allocation16_spill] sm:$0xff]  ;;  %v5538_v22 = vld [vmem:[#allocation17_spill] sm:$0xff]  ;;  %v1820_v63 = vadd.f32 %v5445_v56, %v636_v20 }
 0x18e   : > { %v1818_v4 = vadd.f32 %v5537_v9, %v634_v0  ;;  %v1819_v33 = vadd.f32 %v5538_v22, %v635_v55  ;;  %v637_v24 = vld [vmem:[%s2994_s16 + $0xce8] sm:$0xff]  ;;  %v638_v19 = vld [vmem:[%s2994_s16 + $0xcf0] sm:$0xff]  ;;  %v639_v26 = vld [vmem:[%s2994_s16 + $0xcf8] sm:$0xff]  ;;  %2327 = vst [vmem:[%s3065_s21 + $0xcb8] sm:$0xff] %v1815_v16 }
 0x18f   : > { %2328 = vst [vmem:[%s3065_s21 + $0xcc0] sm:$0xff] %v1816_v23  ;;  %2329 = vst [vmem:[%s3065_s21 + $0xcc8] sm:$0xff] %v1817_v58  ;;  %v5539_v29 = vld [vmem:[#allocation19_spill] sm:$0xff]  ;;  %v5540_v41 = vld [vmem:[#allocation20_spill] sm:$0xff] }
 0x190   : > { %v1821_v8 = vadd.f32 %v5539_v29, %v637_v24  ;;  %v1822_v42 = vadd.f32 %v5540_v41, %v638_v19  ;;  %v5541_v21 = vld [vmem:[#allocation21_spill] sm:$0xff]  ;;  %v640_v60 = vld [vmem:[%s2994_s16 + $0xd00] sm:$0xff]  ;;  %v641_v56 = vld [vmem:[%s2994_s16 + $0xd08] sm:$0xff]  ;;  %2330 = vst [vmem:[%s3065_s21 + $0xcd0] sm:$0xff] %v1818_v4 }
 0x191   : > { %v1823_v43 = vadd.f32 %v5541_v21, %v639_v26  ;;  %v642_v39 = vld [vmem:[%s2994_s16 + $0xd10] sm:$0xff]  ;;  %2331 = vst [vmem:[%s3065_s21 + $0xcd8] sm:$0xff] %v1819_v33  ;;  %2332 = vst [vmem:[%s3065_s21 + $0xce0] sm:$0xff] %v1820_v63  ;;  %v1824_v44 = vadd.f32 %v5449_v38, %v640_v60  ;;  %v5542_v48 = vld [vmem:[#allocation23_spill] sm:$0xff] }
 0x192   : > { %v1825_v36 = vadd.f32 %v5542_v48, %v641_v56  ;;  %v5543_v49 = vld [vmem:[#allocation24_spill] sm:$0xff]  ;;  %v643_v25 = vld [vmem:[%s2994_s16 + $0xd18] sm:$0xff]  ;;  %v644_v50 = vld [vmem:[%s2994_s16 + $0xd20] sm:$0xff]  ;;  %2333 = vst [vmem:[%s3065_s21 + $0xce8] sm:$0xff] %v1821_v8 }
 0x193   : > { %v1826_v59 = vadd.f32 %v5543_v49, %v642_v39  ;;  %v645_v51 = vld [vmem:[%s2994_s16 + $0xd28] sm:$0xff]  ;;  %2334 = vst [vmem:[%s3065_s21 + $0xcf0] sm:$0xff] %v1822_v42  ;;  %2335 = vst [vmem:[%s3065_s21 + $0xcf8] sm:$0xff] %v1823_v43  ;;  %v5544_v13 = vld [vmem:[#allocation25_spill] sm:$0xff]  ;;  %v1828_v38 = vadd.f32 %v5453_v32, %v644_v50 }
 0x194   : > { %v1827_v10 = vadd.f32 %v5544_v13, %v643_v25  ;;  %v5545_v47 = vld [vmem:[#allocation27_spill] sm:$0xff]  ;;  %v646_v11 = vld [vmem:[%s2994_s16 + $0xd30] sm:$0xff]  ;;  %v647_v12 = vld [vmem:[%s2994_s16 + $0xd38] sm:$0xff]  ;;  %2336 = vst [vmem:[%s3065_s21 + $0xd00] sm:$0xff] %v1824_v44 }
 0x195   : > { %v1829_v14 = vadd.f32 %v5545_v47, %v645_v51  ;;  %v648_v35 = vld [vmem:[%s2994_s16 + $0xd40] sm:$0xff]  ;;  %2337 = vst [vmem:[%s3065_s21 + $0xd08] sm:$0xff] %v1825_v36  ;;  %2338 = vst [vmem:[%s3065_s21 + $0xd10] sm:$0xff] %v1826_v59  ;;  %v5546_v15 = vld [vmem:[#allocation28_spill] sm:$0xff] }
 0x196   : > { %v1830_v1 = vadd.f32 %v5546_v15, %v646_v11  ;;  %v5547_v16 = vld [vmem:[#allocation29_spill] sm:$0xff]  ;;  %v1832_v32 = vadd.f32 %v5457_v30, %v648_v35  ;;  %v649_v18 = vld [vmem:[%s2994_s16 + $0xd48] sm:$0xff]  ;;  %v651_v0 = vld [vmem:[%s2994_s16 + $0xd58] sm:$0xff]  ;;  %2339 = vst [vmem:[%s3065_s21 + $0xd18] sm:$0xff] %v1827_v10 }
 0x197   : > { %v1831_v23 = vadd.f32 %v5547_v16, %v647_v12  ;;  %v650_v58 = vld [vmem:[%s2994_s16 + $0xd50] sm:$0xff]  ;;  %2340 = vst [vmem:[%s3065_s21 + $0xd20] sm:$0xff] %v1828_v38  ;;  %2341 = vst [vmem:[%s3065_s21 + $0xd28] sm:$0xff] %v1829_v14  ;;  %v5548_v55 = vld [vmem:[#allocation31_spill] sm:$0xff] }
 0x198   : > { %v1833_v20 = vadd.f32 %v5548_v55, %v649_v18  ;;  %v5549_v9 = vld [vmem:[#allocation32_spill] sm:$0xff]  ;;  %v5550_v22 = vld [vmem:[#allocation33_spill] sm:$0xff]  ;;  %v652_v63 = vld [vmem:[%s2994_s16 + $0xd60] sm:$0xff]  ;;  %2342 = vst [vmem:[%s3065_s21 + $0xd30] sm:$0xff] %v1830_v1 }
 0x199   : > { %v1834_v4 = vadd.f32 %v5549_v9, %v650_v58  ;;  %v1835_v33 = vadd.f32 %v5550_v22, %v651_v0  ;;  %v653_v30 = vld [vmem:[%s2994_s16 + $0xd68] sm:$0xff]  ;;  %v654_v24 = vld [vmem:[%s2994_s16 + $0xd70] sm:$0xff]  ;;  %2343 = vst [vmem:[%s3065_s21 + $0xd38] sm:$0xff] %v1831_v23  ;;  %2344 = vst [vmem:[%s3065_s21 + $0xd40] sm:$0xff] %v1832_v32  ;;  %v1836_v19 = vadd.f32 %v5461_v28, %v652_v63 }
 0x19a   : > { %v5551_v26 = vld [vmem:[#allocation35_spill] sm:$0xff]  ;;  %v5552_v8 = vld [vmem:[#allocation36_spill] sm:$0xff]  ;;  %v655_v42 = vld [vmem:[%s2994_s16 + $0xd78] sm:$0xff]  ;;  %2345 = vst [vmem:[%s3065_s21 + $0xd48] sm:$0xff] %v1833_v20 }
 0x19b   : > { %v1837_v29 = vadd.f32 %v5551_v26, %v653_v30  ;;  %v1838_v41 = vadd.f32 %v5552_v8, %v654_v24  ;;  %v656_v21 = vld [vmem:[%s2994_s16 + $0xd80] sm:$0xff]  ;;  %v657_v43 = vld [vmem:[%s2994_s16 + $0xd88] sm:$0xff]  ;;  %2346 = vst [vmem:[%s3065_s21 + $0xd50] sm:$0xff] %v1834_v4  ;;  %2347 = vst [vmem:[%s3065_s21 + $0xd58] sm:$0xff] %v1835_v33 }
 0x19c   : > { %v5553_v60 = vld [vmem:[#allocation37_spill] sm:$0xff]  ;;  %v1840_v28 = vadd.f32 %v5465_v61, %v656_v21  ;;  %v5554_v39 = vld [vmem:[#allocation39_spill] sm:$0xff]  ;;  %v659_v36 = vld [vmem:[%s2994_s16 + $0xd98] sm:$0xff]  ;;  %2348 = vst [vmem:[%s3065_s21 + $0xd60] sm:$0xff] %v1836_v19 }
 0x19d   : > { %v1839_v56 = vadd.f32 %v5553_v60, %v655_v42  ;;  %v1841_v44 = vadd.f32 %v5554_v39, %v657_v43  ;;  %v658_v48 = vld [vmem:[%s2994_s16 + $0xd90] sm:$0xff]  ;;  %v660_v49 = vld [vmem:[%s2994_s16 + $0xda0] sm:$0xff]  ;;  %2349 = vst [vmem:[%s3065_s21 + $0xd68] sm:$0xff] %v1837_v29  ;;  %2350 = vst [vmem:[%s3065_s21 + $0xd70] sm:$0xff] %v1838_v41 }
 0x19e   : > { %v5555_v59 = vld [vmem:[#allocation40_spill] sm:$0xff]  ;;  %v5556_v50 = vld [vmem:[#allocation41_spill] sm:$0xff]  ;;  %v1844_v61 = vadd.f32 %v5469_v57, %v660_v49  ;;  %v663_v38 = vld [vmem:[%s2994_s16 + $0xdb8] sm:$0xff]  ;;  %2352 = vst [vmem:[%s3065_s21 + $0xd80] sm:$0xff] %v1840_v28 }
 0x19f   : > { %v1842_v25 = vadd.f32 %v5555_v59, %v658_v48  ;;  %v1843_v51 = vadd.f32 %v5556_v50, %v659_v36  ;;  %v661_v13 = vld [vmem:[%s2994_s16 + $0xda8] sm:$0xff]  ;;  %v662_v10 = vld [vmem:[%s2994_s16 + $0xdb0] sm:$0xff]  ;;  %2351 = vst [vmem:[%s3065_s21 + $0xd78] sm:$0xff] %v1839_v56  ;;  %2353 = vst [vmem:[%s3065_s21 + $0xd88] sm:$0xff] %v1841_v44 }
 0x1a0   : > { %v5557_v47 = vld [vmem:[#allocation43_spill] sm:$0xff]  ;;  %v5558_v11 = vld [vmem:[#allocation44_spill] sm:$0xff]  ;;  %v5559_v35 = vld [vmem:[#allocation45_spill] sm:$0xff]  ;;  %2356 = vst [vmem:[%s3065_s21 + $0xda0] sm:$0xff] %v1844_v61 }
 0x1a1   : > { %v1845_v14 = vadd.f32 %v5557_v47, %v661_v13  ;;  %v1846_v12 = vadd.f32 %v5558_v11, %v662_v10  ;;  %v1847_v15 = vadd.f32 %v5559_v35, %v663_v38  ;;  %v664_v1 = vld [vmem:[%s2994_s16 + $0xdc0] sm:$0xff]  ;;  %v665_v57 = vld [vmem:[%s2994_s16 + $0xdc8] sm:$0xff]  ;;  %v666_v16 = vld [vmem:[%s2994_s16 + $0xdd0] sm:$0xff]  ;;  %2354 = vst [vmem:[%s3065_s21 + $0xd90] sm:$0xff] %v1842_v25 }
 0x1a2   : > { %2355 = vst [vmem:[%s3065_s21 + $0xd98] sm:$0xff] %v1843_v51  ;;  %v1848_v23 = vadd.f32 %v5473_v46, %v664_v1  ;;  %v1849_v32 = vadd.f32 %v5474_v62, %v665_v57  ;;  %v5560_v18 = vld [vmem:[#allocation48_spill] sm:$0xff]  ;;  %v667_v0 = vld [vmem:[%s2994_s16 + $0xdd8] sm:$0xff]  ;;  %v668_v55 = vld [vmem:[%s2994_s16 + $0xde0] sm:$0xff] }
 0x1a3   : > { %v1850_v58 = vadd.f32 %v5560_v18, %v666_v16  ;;  %v669_v20 = vld [vmem:[%s2994_s16 + $0xde8] sm:$0xff]  ;;  %2357 = vst [vmem:[%s3065_s21 + $0xda8] sm:$0xff] %v1845_v14  ;;  %2358 = vst [vmem:[%s3065_s21 + $0xdb0] sm:$0xff] %v1846_v12  ;;  %v5561_v9 = vld [vmem:[#allocation49_spill] sm:$0xff]  ;;  %v1852_v46 = vadd.f32 %v5477_v5, %v668_v55 }
 0x1a4   : > { %2359 = vst [vmem:[%s3065_s21 + $0xdb8] sm:$0xff] %v1847_v15  ;;  %v1851_v4 = vadd.f32 %v5561_v9, %v667_v0  ;;  %v5562_v22 = vld [vmem:[#allocation51_spill] sm:$0xff]  ;;  %v670_v33 = vld [vmem:[%s2994_s16 + $0xdf0] sm:$0xff]  ;;  %v671_v63 = vld [vmem:[%s2994_s16 + $0xdf8] sm:$0xff] }
 0x1a5   : > { %v1853_v62 = vadd.f32 %v5562_v22, %v669_v20  ;;  %v672_v30 = vld [vmem:[%s2994_s16 + $0xe00] sm:$0xff]  ;;  %2360 = vst [vmem:[%s3065_s21 + $0xdc0] sm:$0xff] %v1848_v23  ;;  %2361 = vst [vmem:[%s3065_s21 + $0xdc8] sm:$0xff] %v1849_v32  ;;  %v5563_v24 = vld [vmem:[#allocation52_spill] sm:$0xff] }
 0x1a6   : > { %2362 = vst [vmem:[%s3065_s21 + $0xdd0] sm:$0xff] %v1850_v58  ;;  %v1854_v19 = vadd.f32 %v5563_v24, %v670_v33  ;;  %v5564_v26 = vld [vmem:[#allocation53_spill] sm:$0xff]  ;;  %v1856_v5 = vadd.f32 %v5481_v27, %v672_v30  ;;  %v673_v8 = vld [vmem:[%s2994_s16 + $0xe08] sm:$0xff]  ;;  %v675_v42 = vld [vmem:[%s2994_s16 + $0xe18] sm:$0xff] }
 0x1a7   : > { %v1855_v29 = vadd.f32 %v5564_v26, %v671_v63  ;;  %v674_v41 = vld [vmem:[%s2994_s16 + $0xe10] sm:$0xff]  ;;  %2363 = vst [vmem:[%s3065_s21 + $0xdd8] sm:$0xff] %v1851_v4  ;;  %2364 = vst [vmem:[%s3065_s21 + $0xde0] sm:$0xff] %v1852_v46  ;;  %v5565_v21 = vld [vmem:[#allocation55_spill] sm:$0xff]  ;;  %v1859_v28 = vadd.f32 %v5484_v53, %v675_v42 }
 0x1a8   : > { %2365 = vst [vmem:[%s3065_s21 + $0xde8] sm:$0xff] %v1853_v62  ;;  %v1857_v43 = vadd.f32 %v5565_v21, %v673_v8  ;;  %v5566_v60 = vld [vmem:[#allocation56_spill] sm:$0xff]  ;;  %v676_v39 = vld [vmem:[%s2994_s16 + $0xe20] sm:$0xff]  ;;  %v678_v44 = vld [vmem:[%s2994_s16 + $0xe30] sm:$0xff] }
 0x1a9   : > { %v1858_v56 = vadd.f32 %v5566_v60, %v674_v41  ;;  %v677_v27 = vld [vmem:[%s2994_s16 + $0xe28] sm:$0xff]  ;;  %2366 = vst [vmem:[%s3065_s21 + $0xdf0] sm:$0xff] %v1854_v19  ;;  %2367 = vst [vmem:[%s3065_s21 + $0xdf8] sm:$0xff] %v1855_v29  ;;  %v5567_v48 = vld [vmem:[#allocation58_spill] sm:$0xff] }
 0x1aa   : > { %2368 = vst [vmem:[%s3065_s21 + $0xe00] sm:$0xff] %v1856_v5  ;;  %v1860_v36 = vadd.f32 %v5567_v48, %v676_v39  ;;  %v5568_v49 = vld [vmem:[#allocation59_spill] sm:$0xff]  ;;  %v5569_v25 = vld [vmem:[#allocation60_spill] sm:$0xff]  ;;  %v679_v51 = vld [vmem:[%s2994_s16 + $0xe38] sm:$0xff] }
 0x1ab   : > { %v1861_v59 = vadd.f32 %v5568_v49, %v677_v27  ;;  %v1862_v50 = vadd.f32 %v5569_v25, %v678_v44  ;;  %v680_v53 = vld [vmem:[%s2994_s16 + $0xe40] sm:$0xff]  ;;  %v681_v61 = vld [vmem:[%s2994_s16 + $0xe48] sm:$0xff]  ;;  %2369 = vst [vmem:[%s3065_s21 + $0xe08] sm:$0xff] %v1857_v43  ;;  %2370 = vst [vmem:[%s3065_s21 + $0xe10] sm:$0xff] %v1858_v56 }
 0x1ac   : > { %2371 = vst [vmem:[%s3065_s21 + $0xe18] sm:$0xff] %v1859_v28  ;;  %v5570_v13 = vld [vmem:[#allocation61_spill] sm:$0xff]  ;;  %v5571_v38 = vld [vmem:[#allocation62_spill] sm:$0xff]  ;;  %v5572_v14 = vld [vmem:[#allocation63_spill] sm:$0xff] }
 0x1ad   : > { %v1863_v10 = vadd.f32 %v5570_v13, %v679_v51  ;;  %v1864_v47 = vadd.f32 %v5571_v38, %v680_v53  ;;  %v1865_v11 = vadd.f32 %v5572_v14, %v681_v61  ;;  %v682_v12 = vld [vmem:[%s2994_s16 + $0xe50] sm:$0xff]  ;;  %v683_v35 = vld [vmem:[%s2994_s16 + $0xe58] sm:$0xff]  ;;  %v684_v15 = vld [vmem:[%s2994_s16 + $0xe60] sm:$0xff]  ;;  %2372 = vst [vmem:[%s3065_s21 + $0xe20] sm:$0xff] %v1860_v36 }
 0x1ae   : > { %2373 = vst [vmem:[%s3065_s21 + $0xe28] sm:$0xff] %v1861_v59  ;;  %2374 = vst [vmem:[%s3065_s21 + $0xe30] sm:$0xff] %v1862_v50  ;;  %v5573_v1 = vld [vmem:[#allocation64_spill] sm:$0xff]  ;;  %v5574_v16 = vld [vmem:[#allocation65_spill] sm:$0xff] }
 0x1af   : > { %v1866_v57 = vadd.f32 %v5573_v1, %v682_v12  ;;  %v1867_v23 = vadd.f32 %v5574_v16, %v683_v35  ;;  %v5575_v32 = vld [vmem:[#allocation66_spill] sm:$0xff]  ;;  %v685_v58 = vld [vmem:[%s2994_s16 + $0xe68] sm:$0xff]  ;;  %v686_v0 = vld [vmem:[%s2994_s16 + $0xe70] sm:$0xff]  ;;  %2375 = vst [vmem:[%s3065_s21 + $0xe38] sm:$0xff] %v1863_v10 }
 0x1b0   : > { %v1868_v18 = vadd.f32 %v5575_v32, %v684_v15  ;;  %v687_v55 = vld [vmem:[%s2994_s16 + $0xe78] sm:$0xff]  ;;  %2376 = vst [vmem:[%s3065_s21 + $0xe40] sm:$0xff] %v1864_v47  ;;  %2377 = vst [vmem:[%s3065_s21 + $0xe48] sm:$0xff] %v1865_v11  ;;  %v5576_v20 = vld [vmem:[#allocation67_spill] sm:$0xff] }
 0x1b1   : > { %v1869_v9 = vadd.f32 %v5576_v20, %v685_v58  ;;  %v5577_v4 = vld [vmem:[#allocation68_spill] sm:$0xff]  ;;  %v5578_v22 = vld [vmem:[#allocation69_spill] sm:$0xff]  ;;  %v688_v33 = vld [vmem:[%s2994_s16 + $0xe80] sm:$0xff]  ;;  %2378 = vst [vmem:[%s3065_s21 + $0xe50] sm:$0xff] %v1866_v57 }
 0x1b2   : > { %v1870_v46 = vadd.f32 %v5577_v4, %v686_v0  ;;  %v1871_v62 = vadd.f32 %v5578_v22, %v687_v55  ;;  %v689_v63 = vld [vmem:[%s2994_s16 + $0xe88] sm:$0xff]  ;;  %v690_v30 = vld [vmem:[%s2994_s16 + $0xe90] sm:$0xff]  ;;  %2379 = vst [vmem:[%s3065_s21 + $0xe58] sm:$0xff] %v1867_v23  ;;  %2380 = vst [vmem:[%s3065_s21 + $0xe60] sm:$0xff] %v1868_v18 }
 0x1b3   : > { %v5579_v24 = vld [vmem:[#allocation70_spill] sm:$0xff]  ;;  %v5580_v26 = vld [vmem:[#allocation71_spill] sm:$0xff]  ;;  %v5581_v5 = vld [vmem:[#allocation72_spill] sm:$0xff]  ;;  %2381 = vst [vmem:[%s3065_s21 + $0xe68] sm:$0xff] %v1869_v9 }
 0x1b4   : > { %v1872_v19 = vadd.f32 %v5579_v24, %v688_v33  ;;  %v1873_v29 = vadd.f32 %v5580_v26, %v689_v63  ;;  %v1874_v8 = vadd.f32 %v5581_v5, %v690_v30  ;;  %v691_v41 = vld [vmem:[%s2994_s16 + $0xe98] sm:$0xff]  ;;  %v692_v42 = vld [vmem:[%s2994_s16 + $0xea0] sm:$0xff]  ;;  %v693_v21 = vld [vmem:[%s2994_s16 + $0xea8] sm:$0xff]  ;;  %2382 = vst [vmem:[%s3065_s21 + $0xe70] sm:$0xff] %v1870_v46 }
 0x1b5   : > { %2383 = vst [vmem:[%s3065_s21 + $0xe78] sm:$0xff] %v1871_v62  ;;  %v5582_v43 = vld [vmem:[#allocation73_spill] sm:$0xff]  ;;  %v5583_v56 = vld [vmem:[#allocation74_spill] sm:$0xff]  ;;  %v5584_v39 = vld [vmem:[#allocation75_spill] sm:$0xff] }
 0x1b6   : > { %v1875_v60 = vadd.f32 %v5582_v43, %v691_v41  ;;  %v1876_v28 = vadd.f32 %v5583_v56, %v692_v42  ;;  %v1877_v27 = vadd.f32 %v5584_v39, %v693_v21  ;;  %v694_v44 = vld [vmem:[%s2994_s16 + $0xeb0] sm:$0xff]  ;;  %v695_v48 = vld [vmem:[%s2994_s16 + $0xeb8] sm:$0xff]  ;;  %v696_v36 = vld [vmem:[%s2994_s16 + $0xec0] sm:$0xff]  ;;  %2384 = vst [vmem:[%s3065_s21 + $0xe80] sm:$0xff] %v1872_v19 }
 0x1b7   : > { %2385 = vst [vmem:[%s3065_s21 + $0xe88] sm:$0xff] %v1873_v29  ;;  %2386 = vst [vmem:[%s3065_s21 + $0xe90] sm:$0xff] %v1874_v8  ;;  %v5585_v49 = vld [vmem:[#allocation76_spill] sm:$0xff]  ;;  %v5586_v25 = vld [vmem:[#allocation77_spill] sm:$0xff] }
 0x1b8   : > { %v1878_v59 = vadd.f32 %v5585_v49, %v694_v44  ;;  %v1879_v50 = vadd.f32 %v5586_v25, %v695_v48  ;;  %v5587_v51 = vld [vmem:[#allocation78_spill] sm:$0xff]  ;;  %v697_v61 = vld [vmem:[%s2994_s16 + $0xec8] sm:$0xff]  ;;  %v698_v13 = vld [vmem:[%s2994_s16 + $0xed0] sm:$0xff]  ;;  %2387 = vst [vmem:[%s3065_s21 + $0xe98] sm:$0xff] %v1875_v60 }
 0x1b9   : > { %v1880_v53 = vadd.f32 %v5587_v51, %v696_v36  ;;  %v699_v10 = vld [vmem:[%s2994_s16 + $0xed8] sm:$0xff]  ;;  %2388 = vst [vmem:[%s3065_s21 + $0xea0] sm:$0xff] %v1876_v28  ;;  %2389 = vst [vmem:[%s3065_s21 + $0xea8] sm:$0xff] %v1877_v27  ;;  %v5588_v38 = vld [vmem:[#allocation79_spill] sm:$0xff] }
 0x1ba   : > { %v1881_v47 = vadd.f32 %v5588_v38, %v697_v61  ;;  %v5589_v14 = vld [vmem:[#allocation80_spill] sm:$0xff]  ;;  %v5590_v12 = vld [vmem:[#allocation81_spill] sm:$0xff]  ;;  %v700_v15 = vld [vmem:[%s2994_s16 + $0xee0] sm:$0xff]  ;;  %2390 = vst [vmem:[%s3065_s21 + $0xeb0] sm:$0xff] %v1878_v59 }
 0x1bb   : > { %v1882_v11 = vadd.f32 %v5589_v14, %v698_v13  ;;  %v1883_v35 = vadd.f32 %v5590_v12, %v699_v10  ;;  %v701_v1 = vld [vmem:[%s2994_s16 + $0xee8] sm:$0xff]  ;;  %v702_v57 = vld [vmem:[%s2994_s16 + $0xef0] sm:$0xff]  ;;  %2391 = vst [vmem:[%s3065_s21 + $0xeb8] sm:$0xff] %v1879_v50  ;;  %2392 = vst [vmem:[%s3065_s21 + $0xec0] sm:$0xff] %v1880_v53 }
 0x1bc   : > { %v5591_v16 = vld [vmem:[#allocation82_spill] sm:$0xff]  ;;  %v5592_v32 = vld [vmem:[#allocation83_spill] sm:$0xff]  ;;  %v5593_v58 = vld [vmem:[#allocation84_spill] sm:$0xff]  ;;  %2393 = vst [vmem:[%s3065_s21 + $0xec8] sm:$0xff] %v1881_v47 }
 0x1bd   : > { %v1884_v23 = vadd.f32 %v5591_v16, %v700_v15  ;;  %v1885_v18 = vadd.f32 %v5592_v32, %v701_v1  ;;  %v1886_v0 = vadd.f32 %v5593_v58, %v702_v57  ;;  %v703_v55 = vld [vmem:[%s2994_s16 + $0xef8] sm:$0xff]  ;;  %v704_v20 = vld [vmem:[%s2994_s16 + $0xf00] sm:$0xff]  ;;  %v705_v9 = vld [vmem:[%s2994_s16 + $0xf08] sm:$0xff]  ;;  %2394 = vst [vmem:[%s3065_s21 + $0xed0] sm:$0xff] %v1882_v11 }
 0x1be   : > { %2395 = vst [vmem:[%s3065_s21 + $0xed8] sm:$0xff] %v1883_v35  ;;  %v5594_v4 = vld [vmem:[#allocation85_spill] sm:$0xff]  ;;  %v5595_v22 = vld [vmem:[#allocation86_spill] sm:$0xff]  ;;  %v5596_v33 = vld [vmem:[#allocation87_spill] sm:$0xff] }
 0x1bf   : > { %v1887_v46 = vadd.f32 %v5594_v4, %v703_v55  ;;  %v1888_v62 = vadd.f32 %v5595_v22, %v704_v20  ;;  %v1889_v63 = vadd.f32 %v5596_v33, %v705_v9  ;;  %v706_v30 = vld [vmem:[%s2994_s16 + $0xf10] sm:$0xff]  ;;  %v707_v24 = vld [vmem:[%s2994_s16 + $0xf18] sm:$0xff]  ;;  %v708_v19 = vld [vmem:[%s2994_s16 + $0xf20] sm:$0xff]  ;;  %2396 = vst [vmem:[%s3065_s21 + $0xee0] sm:$0xff] %v1884_v23 }
 0x1c0   : > { %2397 = vst [vmem:[%s3065_s21 + $0xee8] sm:$0xff] %v1885_v18  ;;  %2398 = vst [vmem:[%s3065_s21 + $0xef0] sm:$0xff] %v1886_v0  ;;  %v5597_v26 = vld [vmem:[#allocation88_spill] sm:$0xff]  ;;  %v5598_v5 = vld [vmem:[#allocation89_spill] sm:$0xff] }
 0x1c1   : > { %v1890_v29 = vadd.f32 %v5597_v26, %v706_v30  ;;  %v1891_v8 = vadd.f32 %v5598_v5, %v707_v24  ;;  %v5599_v41 = vld [vmem:[#allocation90_spill] sm:$0xff]  ;;  %v709_v21 = vld [vmem:[%s2994_s16 + $0xf28] sm:$0xff]  ;;  %v710_v43 = vld [vmem:[%s2994_s16 + $0xf30] sm:$0xff]  ;;  %2399 = vst [vmem:[%s3065_s21 + $0xef8] sm:$0xff] %v1887_v46 }
 0x1c2   : > { %v1892_v42 = vadd.f32 %v5599_v41, %v708_v19  ;;  %v711_v60 = vld [vmem:[%s2994_s16 + $0xf38] sm:$0xff]  ;;  %2400 = vst [vmem:[%s3065_s21 + $0xf00] sm:$0xff] %v1888_v62  ;;  %2401 = vst [vmem:[%s3065_s21 + $0xf08] sm:$0xff] %v1889_v63  ;;  %v5600_v56 = vld [vmem:[#allocation91_spill] sm:$0xff] }
 0x1c3   : > { %v1893_v28 = vadd.f32 %v5600_v56, %v709_v21  ;;  %v5601_v39 = vld [vmem:[#allocation92_spill] sm:$0xff]  ;;  %v1895_v44 = vadd.f32 %v5520_v40, %v711_v60  ;;  %v712_v48 = vld [vmem:[%s2994_s16 + $0xf40] sm:$0xff]  ;;  %v714_v49 = vld [vmem:[%s2994_s16 + $0xf50] sm:$0xff]  ;;  %2402 = vst [vmem:[%s3065_s21 + $0xf10] sm:$0xff] %v1890_v29 }
 0x1c4   : > { %v1894_v27 = vadd.f32 %v5601_v39, %v710_v43  ;;  %v713_v36 = vld [vmem:[%s2994_s16 + $0xf48] sm:$0xff]  ;;  %2403 = vst [vmem:[%s3065_s21 + $0xf18] sm:$0xff] %v1891_v8  ;;  %2404 = vst [vmem:[%s3065_s21 + $0xf20] sm:$0xff] %v1892_v42  ;;  %v5602_v59 = vld [vmem:[#allocation94_spill] sm:$0xff] }
 0x1c5   : > { %v1896_v25 = vadd.f32 %v5602_v59, %v712_v48  ;;  %v5603_v50 = vld [vmem:[#allocation95_spill] sm:$0xff]  ;;  %v5604_v53 = vld [vmem:[#allocation96_spill] sm:$0xff]  ;;  %v715_v13 = vld [vmem:[%s2994_s16 + $0xf58] sm:$0xff]  ;;  %2405 = vst [vmem:[%s3065_s21 + $0xf28] sm:$0xff] %v1893_v28 }
 0x1c6   : > { %v1897_v51 = vadd.f32 %v5603_v50, %v713_v36  ;;  %v1898_v61 = vadd.f32 %v5604_v53, %v714_v49  ;;  %v716_v40 = vld [vmem:[%s2994_s16 + $0xf60] sm:$0xff]  ;;  %v717_v10 = vld [vmem:[%s2994_s16 + $0xf68] sm:$0xff]  ;;  %2406 = vst [vmem:[%s3065_s21 + $0xf30] sm:$0xff] %v1894_v27  ;;  %2407 = vst [vmem:[%s3065_s21 + $0xf38] sm:$0xff] %v1895_v44 }
 0x1c7   : > { %v5605_v38 = vld [vmem:[#allocation97_spill] sm:$0xff]  ;;  %v5606_v14 = vld [vmem:[#allocation98_spill] sm:$0xff]  ;;  %v5607_v12 = vld [vmem:[#allocation99_spill] sm:$0xff]  ;;  %2408 = vst [vmem:[%s3065_s21 + $0xf40] sm:$0xff] %v1896_v25 }
 0x1c8   : > { %v1899_v47 = vadd.f32 %v5605_v38, %v715_v13  ;;  %v1900_v11 = vadd.f32 %v5606_v14, %v716_v40  ;;  %v1901_v35 = vadd.f32 %v5607_v12, %v717_v10  ;;  %v718_v15 = vld [vmem:[%s2994_s16 + $0xf70] sm:$0xff]  ;;  %v719_v1 = vld [vmem:[%s2994_s16 + $0xf78] sm:$0xff]  ;;  %v720_v57 = vld [vmem:[%s2994_s16 + $0xf80] sm:$0xff]  ;;  %2409 = vst [vmem:[%s3065_s21 + $0xf48] sm:$0xff] %v1897_v51 }
 0x1c9   : > { %2410 = vst [vmem:[%s3065_s21 + $0xf50] sm:$0xff] %v1898_v61  ;;  %v5608_v16 = vld [vmem:[#allocation100_spill] sm:$0xff]  ;;  %v5609_v32 = vld [vmem:[#allocation101_spill] sm:$0xff]  ;;  %v1904_v58 = vadd.f32 %v5528_v6, %v720_v57  ;;  %v723_v20 = vld [vmem:[%s2994_s16 + $0xf98] sm:$0xff] }
 0x1ca   : > { %v1902_v23 = vadd.f32 %v5608_v16, %v718_v15  ;;  %v1903_v18 = vadd.f32 %v5609_v32, %v719_v1  ;;  %v721_v0 = vld [vmem:[%s2994_s16 + $0xf88] sm:$0xff]  ;;  %v722_v55 = vld [vmem:[%s2994_s16 + $0xf90] sm:$0xff]  ;;  %2411 = vst [vmem:[%s3065_s21 + $0xf58] sm:$0xff] %v1899_v47  ;;  %2412 = vst [vmem:[%s3065_s21 + $0xf60] sm:$0xff] %v1900_v11  ;;  %v1907_v6 = vadd.f32 %v5531_v7, %v723_v20 }
 0x1cb   : > { %2413 = vst [vmem:[%s3065_s21 + $0xf68] sm:$0xff] %v1901_v35  ;;  %v1905_v9 = vadd.f32 %v5529_v52, %v721_v0  ;;  %v5610_v4 = vld [vmem:[#allocation104_spill] sm:$0xff]  ;;  %v724_v22 = vld [vmem:[%s2994_s16 + $0xfa0] sm:$0xff]  ;;  %v726_v33 = vld [vmem:[%s2994_s16 + $0xfb0] sm:$0xff] }
 0x1cc   : > { %v1906_v46 = vadd.f32 %v5610_v4, %v722_v55  ;;  %v725_v62 = vld [vmem:[%s2994_s16 + $0xfa8] sm:$0xff]  ;;  %2414 = vst [vmem:[%s3065_s21 + $0xf70] sm:$0xff] %v1902_v23  ;;  %2415 = vst [vmem:[%s3065_s21 + $0xf78] sm:$0xff] %v1903_v18  ;;  %v5611_v63 = vld [vmem:[#allocation106_spill] sm:$0xff]  ;;  %v1910_v7 = vadd.f32 %v5532_v34, %v726_v33 }
 0x1cd   : > { %2416 = vst [vmem:[%s3065_s21 + $0xf80] sm:$0xff] %v1904_v58  ;;  %v1908_v52 = vadd.f32 %v5611_v63, %v724_v22  ;;  %v5612_v30 = vld [vmem:[#allocation107_spill] sm:$0xff]  ;;  %v727_v19 = vld [vmem:[%s2994_s16 + $0xfb8] sm:$0xff]  ;;  %v729_v29 = vld [vmem:[%s2994_s16 + $0xfc8] sm:$0xff] }
 0x1ce   : > { %v1909_v24 = vadd.f32 %v5612_v30, %v725_v62  ;;  %v728_v26 = vld [vmem:[%s2994_s16 + $0xfc0] sm:$0xff]  ;;  %2417 = vst [vmem:[%s3065_s21 + $0xf88] sm:$0xff] %v1905_v9  ;;  %2418 = vst [vmem:[%s3065_s21 + $0xf90] sm:$0xff] %v1906_v46  ;;  %v5613_v5 = vld [vmem:[#allocation109_spill] sm:$0xff]  ;;  %v1913_v21 = vadd.f32 %v3768_v31, %v729_v29 }
 0x1cf   : > { %2419 = vst [vmem:[%s3065_s21 + $0xf98] sm:$0xff] %v1907_v6  ;;  %v1911_v8 = vadd.f32 %v5613_v5, %v727_v19  ;;  %v5614_v41 = vld [vmem:[#allocation110_spill] sm:$0xff]  ;;  %v730_v43 = vld [vmem:[%s2994_s16 + $0xfd0] sm:$0xff]  ;;  %v732_v60 = vld [vmem:[%s2994_s16 + $0xfe0] sm:$0xff] }
 0x1d0   : > { %v1912_v42 = vadd.f32 %v5614_v41, %v728_v26  ;;  %v731_v34 = vld [vmem:[%s2994_s16 + $0xfd8] sm:$0xff]  ;;  %2420 = vst [vmem:[%s3065_s21 + $0xfa0] sm:$0xff] %v1908_v52  ;;  %2421 = vst [vmem:[%s3065_s21 + $0xfa8] sm:$0xff] %v1909_v24  ;;  %v1914_v56 = vadd.f32 %v5534_v54, %v730_v43  ;;  %v1916_v28 = vadd.f32 %v3785_v2, %v732_v60  ;;  %v733_v39 = vld [vmem:[%s2994_s16 + $0xfe8] sm:$0xff] }
 0x1d1   : > { %2422 = vst [vmem:[%s3065_s21 + $0xfb0] sm:$0xff] %v1910_v7  ;;  %v1915_v31 = vadd.f32 %v5535_v17, %v731_v34  ;;  %v734_v27 = vld [vmem:[%s2994_s16 + $0xff0] sm:$0xff]  ;;  %v735_v44 = vld [vmem:[%s2994_s16 + $0xff8] sm:$0xff]  ;;  %2423 = vst [vmem:[%s3065_s21 + $0xfb8] sm:$0xff] %v1911_v8  ;;  %v1917_v54 = vadd.f32 %v3788_v3, %v733_v39 }
 0x1d2   : > { %2424 = vst [vmem:[%s3065_s21 + $0xfc0] sm:$0xff] %v1912_v42  ;;  %2425 = vst [vmem:[%s3065_s21 + $0xfc8] sm:$0xff] %v1913_v21  ;;  %v1918_v17 = vadd.f32 %v5436_v37, %v734_v27  ;;  %v1919_v48 = vadd.f32 %v5437_v45, %v735_v44 }
 0x1d3   : > { %2426 = vst [vmem:[%s3065_s21 + $0xfd0] sm:$0xff] %v1914_v56  ;;  %2427 = vst [vmem:[%s3065_s21 + $0xfd8] sm:$0xff] %v1915_v31 }
 0x1d4   : > { %2428 = vst [vmem:[%s3065_s21 + $0xfe0] sm:$0xff] %v1916_v28  ;;  %2429 = vst [vmem:[%s3065_s21 + $0xfe8] sm:$0xff] %v1917_v54 }
 0x1d5   : > { %2430 = vst [vmem:[%s3065_s21 + $0xff0] sm:$0xff] %v1918_v17  ;;  %2431 = vst [vmem:[%s3065_s21 + $0xff8] sm:$0xff] %v1919_v48 }
 0x1d6   : > { %2727 = shalt.err (!%p2724_p5)
}
 0x1d7   : > { %s2728_s7 = scalar_lea.hbm %s4942_s3, 65536  ;;  %s2732_s6 = scalar_lea.hbm %s5016_s2, 131072 }
 0x1d8   : > { %p2729_p11 = scmp.ne.s32.totalorder %s4942_s3, %s2728_s7  ;;  %p2733_p3 = scmp.lt.u32.totalorder %s4942_s3, %s5016_s2 }
 0x1d9   : > { %p2734_p4 = scmp.lt.u32.totalorder %s2732_s6, %s2728_s7  ;;  %p2736_p0 = scmp.lt.u32.totalorder %s2728_s7, %s4942_s3 }
 0x1da   : > { %p2730_p10 = pnand %p2729_p11, %p5615_p2 }
 0x1db   : > { %p2735_p8 = por %p2734_p4, %p2733_p3 }
 0x1dc   : > { %p2731_p1 = pneg %p2730_p10 }
 0x1dd   : > { %p2737_p9 = por %p2736_p0, %p2735_p8 }
 0x1df   : > { %p2738_p13 = pnand %p2737_p9, %p2731_p1 }
 0x1e1   : > { %2741 = shalt.err (!%p2738_p13)
}
 0x1e2   : > { %s2808_s16 = smov 16384   ;;  %s2809_s21 = smov 32768  }
 0x1e3   : > { %s2810_s19 = smov 1024  }
 0x1e4   : > { %2585 = dma.vmem_to_hbm [thread:$0]  (%p5615_p2), %s4953_s20, 65536, %s4942_s3, %s2433_s12, %s2808_s16, %s2809_s21, %s2810_s19  }
 0x1e5 PF: > { %s2464_s30 = sand.u32 1, %s2780_s9   ;;  %p5616_p6 = scmp.ne.s32.totalorder %s5232_s24, 0 }
 0x1e6   : > { %p5617_p7 = scmp.ge.s32.totalorder %s2800_s14, 2  ;;  %s2465_s29 = scalar_lea.sflag [#allocation4], %s2464_s30 }
 0x1e8   : > { %p2595_p12 = pnand %p5617_p7, %p5616_p6 }
 0x1ea   : > { %2775 = dma.done.wait (!%p2595_p12), %s2465_s29, 65536  }
 0x1eb   : > { %2777 = vsyncadd (!%p2595_p12), %s2465_s29, 4294901760  ;;  %s21_s14 = sadd.s32 1, %s2800_s14   ;;  %s5618_s9 = smov %s2784_s10 }
 0x1ec   : > { %p18_p5 = scmp.ge.s32.totalorder %s21_s14, 4   ;;  %s5619_s10 = smov %s2788_s11 }
 0x1ed   : > { %s5620_s11 = smov %s2882_s23  ;;  %s5621_s12 = smov %s2796_s13 }
 0x1ee   : > { %s5622_s13 = smov %s5624_s17  ;;  %20 = sbr.rel (!%p18_p5) target bundleno = 8 (0x8), region = 86 }
 0x1f5   :  { %2470 = vsyncpa [#allocation3], 1 }
 0x1f6   :  { %2472 = vsyncpa [#allocation3 + $0x1], 1 }
 0x1f7   :  { %2473 = vsyncpa [#allocation6], 1 }
 0x1f8   :  { %2475 = vsyncpa [#allocation6 + $0x1], 1 }
 0x1f9   :  { %2476 = vsyncpa [#allocation4], 1 }
 0x1fa   :  { %2478 = vsyncpa [#allocation4 + $0x1], 1 }

</bundles_post_ra>
